<compile_context>
chip_gen: v7x
topology: tpu7x:2x2x1
jax: 0.10.0
libtpu: 0.0.40
codegen_flags: <defaults>
</compile_context>

<pallas_src>
import jax
import jax.numpy as jnp
from jax.experimental import pallas as pl
from jax.experimental.pallas import tpu as pltpu


_LANE = 128                        # pad Cout to a multiple of this (lane-dense stores)
_VMEM_LIMIT = 48 * 1024 * 1024     # explicit scoped-VMEM cap (safe on v5e/v6e/v7x)


def _cdiv(a, b):
    return -(-a // b)


def _round_up(x, m):
    return _cdiv(x, m) * m


def _pick_tm(m_total, tm_max=512):
    # Big tiles amortize per-grid-step overhead, but keep the grid length >= 2
    # where possible so both v7x TensorCores get work on small layers.
    return min(tm_max, max(128, _round_up(_cdiv(m_total, 2), 128)))


# ---------------------------------------------------------------------------
# Kernels
# ---------------------------------------------------------------------------

def _conv1x1_kernel(x_ref, w_ref, b_ref, o_ref):
    # x_ref: (tm, Cin) bf16, w_ref: (1, Cin, Coutp) bf16, b_ref: (1, Coutp) f32
    acc = jnp.dot(x_ref[...], w_ref[0], preferred_element_type=jnp.float32)
    y = acc + b_ref[...]
    o_ref[...] = jnp.maximum(y, 0.0).astype(o_ref.dtype)


def _make_conv_kernel(offsets, matmul_dtype):
    """KxK conv: sum_q x[m + off_q] @ W_q, then folded-BN bias + ReLU."""

    def kernel(x0_ref, x1_ref, w_ref, b_ref, o_ref, xbuf_ref):
        tm = o_ref.shape[0]
        # Stage current tile + next tile (halo) into one f32 scratch buffer.
        xbuf_ref[0:tm, :] = x0_ref[...].astype(jnp.float32)
        xbuf_ref[tm:2 * tm, :] = x1_ref[...].astype(jnp.float32)
        acc = jnp.zeros(o_ref.shape, jnp.float32)
        for q, off in enumerate(offsets):
            xs = xbuf_ref[pl.ds(off, tm), :].astype(matmul_dtype)
            acc = acc + jnp.dot(xs, w_ref[q], preferred_element_type=jnp.float32)
        y = acc + b_ref[...]
        o_ref[...] = jnp.maximum(y, 0.0).astype(o_ref.dtype)

    return kernel


def _make_pool_conv_kernel(offsets, matmul_dtype):
    """Fused MaxPool2d(3, stride=1, pad=1) + 1x1 conv + folded-BN bias + ReLU."""

    def kernel(x0_ref, x1_ref, w_ref, b_ref, o_ref, xbuf_ref):
        tm = o_ref.shape[0]
        xbuf_ref[0:tm, :] = x0_ref[...].astype(jnp.float32)
        xbuf_ref[tm:2 * tm, :] = x1_ref[...].astype(jnp.float32)
        xm = xbuf_ref[pl.ds(offsets[0], tm), :]
        for off in offsets[1:]:
            xm = jnp.maximum(xm, xbuf_ref[pl.ds(off, tm), :])   # f32 elementwise
        acc = jnp.dot(xm.astype(matmul_dtype), w_ref[0],
                      preferred_element_type=jnp.float32)
        y = acc + b_ref[...]
        o_ref[...] = jnp.maximum(y, 0.0).astype(o_ref.dtype)

    return kernel


# ---------------------------------------------------------------------------
# pallas_call builder shared by all BasicConv2d variants
# ---------------------------------------------------------------------------

def _flat_shift_matmul(kernel, x_flat, w_mat, b_vec, *, tm, grid_m, halo,
                       out_dtype, cout_p, cin):
    in_specs = [pl.BlockSpec((tm, cin), lambda i: (i, 0))]
    operands = [x_flat]
    scratch = []
    if halo:
        # Same array again, one block ahead -> provides the row halo.
        in_specs.append(pl.BlockSpec((tm, cin), lambda i: (i + 1, 0)))
        operands.append(x_flat)
        scratch.append(pltpu.VMEM((2 * tm, cin), jnp.float32))

    n_taps = w_mat.shape[0]
    in_specs += [
        pl.BlockSpec((n_taps, cin, cout_p), lambda i: (0, 0, 0)),  # weights (resident)
        pl.BlockSpec((1, cout_p), lambda i: (0, 0)),               # folded-BN bias
    ]
    operands += [w_mat, b_vec]

    return pl.pallas_call(
        kernel,
        out_shape=jax.ShapeDtypeStruct((grid_m * tm, cout_p), out_dtype),
        grid_spec=pltpu.PrefetchScalarGridSpec(
            num_scalar_prefetch=0,
            grid=(grid_m,),
            in_specs=in_specs,
            out_specs=pl.BlockSpec((tm, cout_p), lambda i: (i, 0)),
            scratch_shapes=tuple(scratch),
        ),
        compiler_params=pltpu.CompilerParams(
            dimension_semantics=("parallel",),
            vmem_limit_bytes=_VMEM_LIMIT,
        ),
    )(*operands)


# ---------------------------------------------------------------------------
# BasicConv2d wrappers (NHWC in / NHWC out)
# ---------------------------------------------------------------------------

def _fold_bn(weight, gamma, beta, mean, var, eps, cout_p, matmul_dtype):
    cout, cin, kh, kw = weight.shape
    scale = gamma * jax.lax.rsqrt(var + eps)                       # (Cout,)
    w = jnp.transpose(weight, (2, 3, 1, 0)).reshape(kh * kw, cin, cout) * scale
    w = jnp.pad(w, ((0, 0), (0, 0), (0, cout_p - cout))).astype(matmul_dtype)
    b = jnp.pad(beta - mean * scale, (0, cout_p - cout))
    return w, b.reshape(1, cout_p).astype(jnp.float32)


def basic_conv2d_nhwc(x, weight, gamma, beta, mean, var, *, padding=0,
                      eps=1e-3, out_dtype=jnp.float32,
                      matmul_dtype=jnp.bfloat16, tm_max=512):
    """BasicConv2d (stride-1 conv -> folded BN -> ReLU) on an NHWC activation."""
    n, h, w_dim, cin = x.shape
    cout, _, k, _ = weight.shape
    hp, wp = h + 2 * padding, w_dim + 2 * padding
    ho, wo = hp - k + 1, wp - k + 1
    cout_p = _round_up(cout, _LANE)

    w_mat, b_vec = _fold_bn(weight, gamma, beta, mean, var, eps, cout_p, matmul_dtype)

    xp = x
    if padding:
        xp = jnp.pad(x, ((0, 0), (padding, padding), (padding, padding), (0, 0)))
    m = n * hp * wp
    x_flat = xp.reshape(m, cin).astype(matmul_dtype)

    tm = _pick_tm(m, tm_max)
    grid_m = _cdiv(m, tm)
    halo = k > 1
    if halo:
        offsets = tuple(ih * wp + iw for ih in range(k) for iw in range(k))
        assert offsets[-1] <= tm, "conv halo does not fit in one tile"
        kernel = _make_conv_kernel(offsets, matmul_dtype)
    else:
        kernel = _conv1x1_kernel
    rows = (grid_m + (1 if halo else 0)) * tm
    x_flat = jnp.pad(x_flat, ((0, rows - m), (0, 0)))

    out_flat = _flat_shift_matmul(kernel, x_flat, w_mat, b_vec, tm=tm,
                                  grid_m=grid_m, halo=halo, out_dtype=out_dtype,
                                  cout_p=cout_p, cin=cin)
    # Rows computed at invalid (padded / alignment) positions are sliced off here.
    return out_flat[:m].reshape(n, hp, wp, cout_p)[:, :ho, :wo, :cout]


def maxpool_basic_conv2d_nhwc(x, weight, gamma, beta, mean, var, *,
                              pool_size=3, pool_padding=1, eps=1e-3,
                              out_dtype=jnp.float32, matmul_dtype=jnp.bfloat16,
                              tm_max=512):
    """MaxPool2d(pool_size, stride=1, padding=pool_padding, ceil_mode) fused with
    a 1x1 BasicConv2d (pool_proj branch)."""
    n, h, w_dim, cin = x.shape
    cout = weight.shape[0]
    hp, wp = h + 2 * pool_padding, w_dim + 2 * pool_padding
    ho, wo = hp - pool_size + 1, wp - pool_size + 1
    cout_p = _round_up(cout, _LANE)

    w_mat, b_vec = _fold_bn(weight, gamma, beta, mean, var, eps, cout_p, matmul_dtype)

    # -inf padding reproduces MaxPool2d's implicit padding; rows at invalid
    # positions are garbage and get sliced off below.
    xp = jnp.pad(x.astype(matmul_dtype),
                 ((0, 0), (pool_padding, pool_padding),
                  (pool_padding, pool_padding), (0, 0)),
                 constant_values=-jnp.inf)
    m = n * hp * wp
    x_flat = xp.reshape(m, cin)

    tm = _pick_tm(m, tm_max)
    grid_m = _cdiv(m, tm)
    offsets = tuple(ih * wp + iw for ih in range(pool_size) for iw in range(pool_size))
    assert offsets[-1] <= tm, "pool halo does not fit in one tile"
    rows = (grid_m + 1) * tm
    x_flat = jnp.pad(x_flat, ((0, rows - m), (0, 0)))

    kernel = _make_pool_conv_kernel(offsets, matmul_dtype)
    out_flat = _flat_shift_matmul(kernel, x_flat, w_mat, b_vec, tm=tm,
                                  grid_m=grid_m, halo=True, out_dtype=out_dtype,
                                  cout_p=cout_p, cin=cin)
    return out_flat[:m].reshape(n, hp, wp, cout_p)[:, :ho, :wo, :cout]


# ---------------------------------------------------------------------------
# Inception block forward (PyTorch-facing NCHW API)
# ---------------------------------------------------------------------------

def inception_forward(x_nchw, params):
    """Inception block: x [N, C, H, W] -> [N, ch1x1+ch3x3+ch5x5+pool_proj, H, W]."""
    x = jnp.transpose(x_nchw, (0, 2, 3, 1))          # NHWC once at entry
    x = x.astype(jnp.bfloat16)                       # matmul-operand dtype

    b1 = basic_conv2d_nhwc(x, *params["b1"], padding=0)
    h2 = basic_conv2d_nhwc(x, *params["b2_1"], padding=0, out_dtype=jnp.bfloat16)
    b2 = basic_conv2d_nhwc(h2, *params["b2_2"], padding=1)
    h3 = basic_conv2d_nhwc(x, *params["b3_1"], padding=0, out_dtype=jnp.bfloat16)
    b3 = basic_conv2d_nhwc(h3, *params["b3_2"], padding=1)
    b4 = maxpool_basic_conv2d_nhwc(x, *params["b4"], pool_size=3, pool_padding=1)

    out = jnp.concatenate([b1, b2, b3, b4], axis=-1)  # channel concat in NHWC
    return jnp.transpose(out, (0, 3, 1, 2))           # back to NCHW once at exit


# ---------------------------------------------------------------------------
# Self-contained smoke test
# ---------------------------------------------------------------------------

def _make_bc_params(key, cin, cout, k):
    kw, kg, kb, km, kv = jax.random.split(key, 5)
    weight = jax.random.normal(kw, (cout, cin, k, k), dtype=jnp.float32) * 0.1
    gamma = jax.random.uniform(kg, (cout,), dtype=jnp.float32, minval=0.5, maxval=1.5)
    beta = jax.random.normal(kb, (cout,), dtype=jnp.float32) * 0.1
    mean = jax.random.normal(km, (cout,), dtype=jnp.float32) * 0.1
    var = jax.random.uniform(kv, (cout,), dtype=jnp.float32, minval=0.5, maxval=1.5)
    return (weight, gamma, beta, mean, var)


if __name__ == "__main__":
    # Inception(in_channels=4, ch1x1=8, ch3x3red=4, ch3x3=8, ch5x5red=4, ch5x5=8,
    #           pool_proj=8) on a [2, 4, 16, 16] input.
    N, Cin, H, W = 2, 4, 16, 16
    ch1x1, ch3x3red, ch3x3, ch5x5red, ch5x5, pool_proj = 8, 4, 8, 4, 8, 8

    key = jax.random.PRNGKey(0)
    keys = jax.random.split(key, 7)
    x = jax.random.normal(keys[0], (N, Cin, H, W), dtype=jnp.float32)
    params = {
        "b1":   _make_bc_params(keys[1], Cin, ch1x1, 1),
        "b2_1": _make_bc_params(keys[2], Cin, ch3x3red, 1),
        "b2_2": _make_bc_params(keys[3], ch3x3red, ch3x3, 3),
        "b3_1": _make_bc_params(keys[4], Cin, ch5x5red, 1),
        "b3_2": _make_bc_params(keys[5], ch5x5red, ch5x5, 3),
        "b4":   _make_bc_params(keys[6], Cin, pool_proj, 1),
    }

    y = jax.jit(inception_forward)(x, params)
    jax.block_until_ready(y)

    cout_total = ch1x1 + ch3x3 + ch5x5 + pool_proj
    assert y.shape == (N, cout_total, H, W), y.shape
    assert bool(jnp.all(jnp.isfinite(y))), "non-finite values in output"
    assert bool(jnp.all(y >= 0)), "ReLU output must be non-negative"
    print("KERNEL_OK")
</pallas_src>

<mosaic_0001>
module attributes {stable_mosaic.version = 11 : i64} {
  func.func @kernel(%arg0: i32, %arg1: memref<384x4xbf16, #tpu.memory_space<vmem>>, %arg2: memref<384x4xbf16, #tpu.memory_space<vmem>>, %arg3: memref<1x4x128xbf16, #tpu.memory_space<vmem>>, %arg4: memref<1x128xf32, #tpu.memory_space<vmem>>, %arg5: memref<384x128xf32, #tpu.memory_space<vmem>>, %arg6: memref<768x4xf32, #tpu.memory_space<vmem>>) attributes {dimension_semantics = [#tpu.dimension_semantics<parallel>], iteration_bounds = array<i64: 2>, scalar_prefetch = 0 : i64, scratch_operands = 1 : i64, tpu.core_type = #tpu.core_type<tc>, window_params = [{transform_indices = @transform_0, window_bounds = array<i64: 384, 4>}, {transform_indices = @transform_1, window_bounds = array<i64: 384, 4>}, {pipeline_mode = #tpu.pipeline_mode<synchronous>, transform_indices = @transform_2, window_bounds = array<i64: 1, 4, 128>}, {pipeline_mode = #tpu.pipeline_mode<synchronous>, transform_indices = @transform_3, window_bounds = array<i64: 1, 128>}, {transform_indices = @transform_4, window_bounds = array<i64: 384, 128>}]} {
    %c0 = arith.constant 0 : index
    %c0_0 = arith.constant 0 : index
    %0 = vector.load %arg1[%c0, %c0_0] : memref<384x4xbf16, #tpu.memory_space<vmem>>, vector<384x4xbf16>
    %1 = arith.extf %0 : vector<384x4xbf16> to vector<384x4xf32>
    %c0_1 = arith.constant 0 : index
    %c0_2 = arith.constant 0 : index
    %2 = vector.load %arg6[%c0_1, %c0_2] : memref<768x4xf32, #tpu.memory_space<vmem>>, vector<384x4xf32>
    tpu.vector_store %arg6[%c0_1, %c0_2], %1 {strides = array<i32>} : memref<768x4xf32, #tpu.memory_space<vmem>>, vector<384x4xf32>,
    %c0_3 = arith.constant 0 : index
    %c0_4 = arith.constant 0 : index
    %3 = vector.load %arg2[%c0_3, %c0_4] : memref<384x4xbf16, #tpu.memory_space<vmem>>, vector<384x4xbf16>
    %4 = arith.extf %3 : vector<384x4xbf16> to vector<384x4xf32>
    %c384 = arith.constant 384 : index
    %c0_5 = arith.constant 0 : index
    %5 = vector.load %arg6[%c384, %c0_5] : memref<768x4xf32, #tpu.memory_space<vmem>>, vector<384x4xf32>
    tpu.vector_store %arg6[%c384, %c0_5], %4 {strides = array<i32>} : memref<768x4xf32, #tpu.memory_space<vmem>>, vector<384x4xf32>,
    %c0_6 = arith.constant 0 : index
    %c0_7 = arith.constant 0 : index
    %6 = vector.load %arg6[%c0_6, %c0_7] : memref<768x4xf32, #tpu.memory_space<vmem>>, vector<384x4xf32>
    %c1 = arith.constant 1 : index
    %c0_8 = arith.constant 0 : index
    %7 = vector.load %arg6[%c1, %c0_8] : memref<768x4xf32, #tpu.memory_space<vmem>>, vector<384x4xf32>
    %8 = arith.maximumf %6, %7 : vector<384x4xf32>
    %c2 = arith.constant 2 : index
    %c0_9 = arith.constant 0 : index
    %9 = vector.load %arg6[%c2, %c0_9] : memref<768x4xf32, #tpu.memory_space<vmem>>, vector<384x4xf32>
    %10 = arith.maximumf %8, %9 : vector<384x4xf32>
    %c18 = arith.constant 18 : index
    %c0_10 = arith.constant 0 : index
    %11 = vector.load %arg6[%c18, %c0_10] : memref<768x4xf32, #tpu.memory_space<vmem>>, vector<384x4xf32>
    %12 = arith.maximumf %10, %11 : vector<384x4xf32>
    %c19 = arith.constant 19 : index
    %c0_11 = arith.constant 0 : index
    %13 = vector.load %arg6[%c19, %c0_11] : memref<768x4xf32, #tpu.memory_space<vmem>>, vector<384x4xf32>
    %14 = arith.maximumf %12, %13 : vector<384x4xf32>
    %c20 = arith.constant 20 : index
    %c0_12 = arith.constant 0 : index
    %15 = vector.load %arg6[%c20, %c0_12] : memref<768x4xf32, #tpu.memory_space<vmem>>, vector<384x4xf32>
    %16 = arith.maximumf %14, %15 : vector<384x4xf32>
    %c36 = arith.constant 36 : index
    %c0_13 = arith.constant 0 : index
    %17 = vector.load %arg6[%c36, %c0_13] : memref<768x4xf32, #tpu.memory_space<vmem>>, vector<384x4xf32>
    %18 = arith.maximumf %16, %17 : vector<384x4xf32>
    %c37 = arith.constant 37 : index
    %c0_14 = arith.constant 0 : index
    %19 = vector.load %arg6[%c37, %c0_14] : memref<768x4xf32, #tpu.memory_space<vmem>>, vector<384x4xf32>
    %20 = arith.maximumf %18, %19 : vector<384x4xf32>
    %c38 = arith.constant 38 : index
    %c0_15 = arith.constant 0 : index
    %21 = vector.load %arg6[%c38, %c0_15] : memref<768x4xf32, #tpu.memory_space<vmem>>, vector<384x4xf32>
    %22 = arith.maximumf %20, %21 : vector<384x4xf32>
    %23 = arith.truncf %22 : vector<384x4xf32> to vector<384x4xbf16>
    %c0_16 = arith.constant 0 : index
    %c0_17 = arith.constant 0 : index
    %c0_18 = arith.constant 0 : index
    %24 = vector.load %arg3[%c0_16, %c0_17, %c0_18] : memref<1x4x128xbf16, #tpu.memory_space<vmem>>, vector<1x4x128xbf16>
    %25 = vector.shape_cast %24 : vector<1x4x128xbf16> to vector<4x128xbf16>
    %cst = arith.constant dense<0.000000e+00> : vector<384x128xf32>
    %26 = tpu.matmul %23, %25, %cst {dimension_numbers = #tpu.dot_dimension_numbers<[1], [0], [0], [1], [0, 0, 1, 1], [], []>} : vector<384x4xbf16>, vector<4x128xbf16>, vector<384x128xf32> -> vector<384x128xf32>
    %c0_19 = arith.constant 0 : index
    %c0_20 = arith.constant 0 : index
    %27 = vector.load %arg4[%c0_19, %c0_20] : memref<1x128xf32, #tpu.memory_space<vmem>>, vector<1x128xf32>
    %28 = vector.broadcast %27 : vector<1x128xf32> to vector<384x128xf32>
    %29 = arith.addf %26, %28 : vector<384x128xf32>
    %cst_21 = arith.constant 0.000000e+00 : f32
    %30 = vector.broadcast %cst_21 : f32 to vector<384x128xf32>
    %31 = arith.maximumf %29, %30 : vector<384x128xf32>
    %c0_22 = arith.constant 0 : index
    %c0_23 = arith.constant 0 : index
    %32 = vector.load %arg5[%c0_22, %c0_23] : memref<384x128xf32, #tpu.memory_space<vmem>>, vector<384x128xf32>
    tpu.vector_store %arg5[%c0_22, %c0_23], %31 {strides = array<i32>} : memref<384x128xf32, #tpu.memory_space<vmem>>, vector<384x128xf32>,
    return
  }
  func.func @transform_0(%arg0: i32) -> (i32, i32) {
    %c0_i32 = arith.constant 0 : i32
    %c0_i32_0 = arith.constant 0 : i32
    return %arg0, %c0_i32 : i32, i32
  }
  func.func @transform_1(%arg0: i32) -> (i32, i32) {
    %c1_i32 = arith.constant 1 : i32
    %0 = arith.addi %arg0, %c1_i32 : i32
    %c0_i32 = arith.constant 0 : i32
    %c0_i32_0 = arith.constant 0 : i32
    return %0, %c0_i32 : i32, i32
  }
  func.func @transform_2(%arg0: i32) -> (i32, i32, i32) {
    %c0_i32 = arith.constant 0 : i32
    %c0_i32_0 = arith.constant 0 : i32
    %c0_i32_1 = arith.constant 0 : i32
    %c0_i32_2 = arith.constant 0 : i32
    return %c0_i32, %c0_i32_0, %c0_i32_1 : i32, i32, i32
  }
  func.func @transform_3(%arg0: i32) -> (i32, i32) {
    %c0_i32 = arith.constant 0 : i32
    %c0_i32_0 = arith.constant 0 : i32
    %c0_i32_1 = arith.constant 0 : i32
    return %c0_i32, %c0_i32_0 : i32, i32
  }
  func.func @transform_4(%arg0: i32) -> (i32, i32) {
    %c0_i32 = arith.constant 0 : i32
    %c0_i32_0 = arith.constant 0 : i32
    return %arg0, %c0_i32 : i32, i32
  }
}

module attributes {stable_mosaic.version = 11 : i64} {
  func.func @_conv1x1_kernel(%arg0: i32, %arg1: memref<256x4xbf16, #tpu.memory_space<vmem>>, %arg2: memref<1x4x128xbf16, #tpu.memory_space<vmem>>, %arg3: memref<1x128xf32, #tpu.memory_space<vmem>>, %arg4: memref<256x128xbf16, #tpu.memory_space<vmem>>) attributes {dimension_semantics = [#tpu.dimension_semantics<parallel>], iteration_bounds = array<i64: 2>, scalar_prefetch = 0 : i64, scratch_operands = 0 : i64, tpu.core_type = #tpu.core_type<tc>, window_params = [{transform_indices = @transform_0, window_bounds = array<i64: 256, 4>}, {pipeline_mode = #tpu.pipeline_mode<synchronous>, transform_indices = @transform_1, window_bounds = array<i64: 1, 4, 128>}, {pipeline_mode = #tpu.pipeline_mode<synchronous>, transform_indices = @transform_2, window_bounds = array<i64: 1, 128>}, {transform_indices = @transform_3, window_bounds = array<i64: 256, 128>}]} {
    %c0 = arith.constant 0 : index
    %c0_0 = arith.constant 0 : index
    %0 = vector.load %arg1[%c0, %c0_0] : memref<256x4xbf16, #tpu.memory_space<vmem>>, vector<256x4xbf16>
    %c0_1 = arith.constant 0 : index
    %c0_2 = arith.constant 0 : index
    %c0_3 = arith.constant 0 : index
    %1 = vector.load %arg2[%c0_1, %c0_2, %c0_3] : memref<1x4x128xbf16, #tpu.memory_space<vmem>>, vector<1x4x128xbf16>
    %2 = vector.shape_cast %1 : vector<1x4x128xbf16> to vector<4x128xbf16>
    %cst = arith.constant dense<0.000000e+00> : vector<256x128xf32>
    %3 = tpu.matmul %0, %2, %cst {dimension_numbers = #tpu.dot_dimension_numbers<[1], [0], [0], [1], [0, 0, 1, 1], [], []>} : vector<256x4xbf16>, vector<4x128xbf16>, vector<256x128xf32> -> vector<256x128xf32>
    %c0_4 = arith.constant 0 : index
    %c0_5 = arith.constant 0 : index
    %4 = vector.load %arg3[%c0_4, %c0_5] : memref<1x128xf32, #tpu.memory_space<vmem>>, vector<1x128xf32>
    %5 = vector.broadcast %4 : vector<1x128xf32> to vector<256x128xf32>
    %6 = arith.addf %3, %5 : vector<256x128xf32>
    %cst_6 = arith.constant 0.000000e+00 : f32
    %7 = vector.broadcast %cst_6 : f32 to vector<256x128xf32>
    %8 = arith.maximumf %6, %7 : vector<256x128xf32>
    %9 = arith.truncf %8 : vector<256x128xf32> to vector<256x128xbf16>
    %c0_7 = arith.constant 0 : index
    %c0_8 = arith.constant 0 : index
    %10 = vector.load %arg4[%c0_7, %c0_8] : memref<256x128xbf16, #tpu.memory_space<vmem>>, vector<256x128xbf16>
    tpu.vector_store %arg4[%c0_7, %c0_8], %9 {strides = array<i32>} : memref<256x128xbf16, #tpu.memory_space<vmem>>, vector<256x128xbf16>,
    return
  }
  func.func @transform_0(%arg0: i32) -> (i32, i32) {
    %c0_i32 = arith.constant 0 : i32
    %c0_i32_0 = arith.constant 0 : i32
    return %arg0, %c0_i32 : i32, i32
  }
  func.func @transform_1(%arg0: i32) -> (i32, i32, i32) {
    %c0_i32 = arith.constant 0 : i32
    %c0_i32_0 = arith.constant 0 : i32
    %c0_i32_1 = arith.constant 0 : i32
    %c0_i32_2 = arith.constant 0 : i32
    return %c0_i32, %c0_i32_0, %c0_i32_1 : i32, i32, i32
  }
  func.func @transform_2(%arg0: i32) -> (i32, i32) {
    %c0_i32 = arith.constant 0 : i32
    %c0_i32_0 = arith.constant 0 : i32
    %c0_i32_1 = arith.constant 0 : i32
    return %c0_i32, %c0_i32_0 : i32, i32
  }
  func.func @transform_3(%arg0: i32) -> (i32, i32) {
    %c0_i32 = arith.constant 0 : i32
    %c0_i32_0 = arith.constant 0 : i32
    return %arg0, %c0_i32 : i32, i32
  }
}

module attributes {stable_mosaic.version = 11 : i64} {
  func.func @kernel(%arg0: i32, %arg1: memref<384x4xbf16, #tpu.memory_space<vmem>>, %arg2: memref<384x4xbf16, #tpu.memory_space<vmem>>, %arg3: memref<9x4x128xbf16, #tpu.memory_space<vmem>>, %arg4: memref<1x128xf32, #tpu.memory_space<vmem>>, %arg5: memref<384x128xf32, #tpu.memory_space<vmem>>, %arg6: memref<768x4xf32, #tpu.memory_space<vmem>>) attributes {dimension_semantics = [#tpu.dimension_semantics<parallel>], iteration_bounds = array<i64: 2>, scalar_prefetch = 0 : i64, scratch_operands = 1 : i64, tpu.core_type = #tpu.core_type<tc>, window_params = [{transform_indices = @transform_0, window_bounds = array<i64: 384, 4>}, {transform_indices = @transform_1, window_bounds = array<i64: 384, 4>}, {pipeline_mode = #tpu.pipeline_mode<synchronous>, transform_indices = @transform_2, window_bounds = array<i64: 9, 4, 128>}, {pipeline_mode = #tpu.pipeline_mode<synchronous>, transform_indices = @transform_3, window_bounds = array<i64: 1, 128>}, {transform_indices = @transform_4, window_bounds = array<i64: 384, 128>}]} {
    %c0 = arith.constant 0 : index
    %c0_0 = arith.constant 0 : index
    %0 = vector.load %arg1[%c0, %c0_0] : memref<384x4xbf16, #tpu.memory_space<vmem>>, vector<384x4xbf16>
    %1 = arith.extf %0 : vector<384x4xbf16> to vector<384x4xf32>
    %c0_1 = arith.constant 0 : index
    %c0_2 = arith.constant 0 : index
    %2 = vector.load %arg6[%c0_1, %c0_2] : memref<768x4xf32, #tpu.memory_space<vmem>>, vector<384x4xf32>
    tpu.vector_store %arg6[%c0_1, %c0_2], %1 {strides = array<i32>} : memref<768x4xf32, #tpu.memory_space<vmem>>, vector<384x4xf32>,
    %c0_3 = arith.constant 0 : index
    %c0_4 = arith.constant 0 : index
    %3 = vector.load %arg2[%c0_3, %c0_4] : memref<384x4xbf16, #tpu.memory_space<vmem>>, vector<384x4xbf16>
    %4 = arith.extf %3 : vector<384x4xbf16> to vector<384x4xf32>
    %c384 = arith.constant 384 : index
    %c0_5 = arith.constant 0 : index
    %5 = vector.load %arg6[%c384, %c0_5] : memref<768x4xf32, #tpu.memory_space<vmem>>, vector<384x4xf32>
    tpu.vector_store %arg6[%c384, %c0_5], %4 {strides = array<i32>} : memref<768x4xf32, #tpu.memory_space<vmem>>, vector<384x4xf32>,
    %cst = arith.constant 0.000000e+00 : f32
    %6 = vector.broadcast %cst : f32 to vector<384x128xf32>
    %c0_6 = arith.constant 0 : index
    %c0_7 = arith.constant 0 : index
    %7 = vector.load %arg6[%c0_6, %c0_7] : memref<768x4xf32, #tpu.memory_space<vmem>>, vector<384x4xf32>
    %8 = arith.truncf %7 : vector<384x4xf32> to vector<384x4xbf16>
    %c0_8 = arith.constant 0 : index
    %c0_9 = arith.constant 0 : index
    %c0_10 = arith.constant 0 : index
    %9 = vector.load %arg3[%c0_8, %c0_9, %c0_10] : memref<9x4x128xbf16, #tpu.memory_space<vmem>>, vector<1x4x128xbf16>
    %10 = vector.shape_cast %9 : vector<1x4x128xbf16> to vector<4x128xbf16>
    %cst_11 = arith.constant dense<0.000000e+00> : vector<384x128xf32>
    %11 = tpu.matmul %8, %10, %cst_11 {dimension_numbers = #tpu.dot_dimension_numbers<[1], [0], [0], [1], [0, 0, 1, 1], [], []>} : vector<384x4xbf16>, vector<4x128xbf16>, vector<384x128xf32> -> vector<384x128xf32>
    %12 = arith.addf %6, %11 : vector<384x128xf32>
    %c1 = arith.constant 1 : index
    %c0_12 = arith.constant 0 : index
    %13 = vector.load %arg6[%c1, %c0_12] : memref<768x4xf32, #tpu.memory_space<vmem>>, vector<384x4xf32>
    %14 = arith.truncf %13 : vector<384x4xf32> to vector<384x4xbf16>
    %c1_13 = arith.constant 1 : index
    %c0_14 = arith.constant 0 : index
    %c0_15 = arith.constant 0 : index
    %15 = vector.load %arg3[%c1_13, %c0_14, %c0_15] : memref<9x4x128xbf16, #tpu.memory_space<vmem>>, vector<1x4x128xbf16>
    %16 = vector.shape_cast %15 : vector<1x4x128xbf16> to vector<4x128xbf16>
    %cst_16 = arith.constant dense<0.000000e+00> : vector<384x128xf32>
    %17 = tpu.matmul %14, %16, %cst_16 {dimension_numbers = #tpu.dot_dimension_numbers<[1], [0], [0], [1], [0, 0, 1, 1], [], []>} : vector<384x4xbf16>, vector<4x128xbf16>, vector<384x128xf32> -> vector<384x128xf32>
    %18 = arith.addf %12, %17 : vector<384x128xf32>
    %c2 = arith.constant 2 : index
    %c0_17 = arith.constant 0 : index
    %19 = vector.load %arg6[%c2, %c0_17] : memref<768x4xf32, #tpu.memory_space<vmem>>, vector<384x4xf32>
    %20 = arith.truncf %19 : vector<384x4xf32> to vector<384x4xbf16>
    %c2_18 = arith.constant 2 : index
    %c0_19 = arith.constant 0 : index
    %c0_20 = arith.constant 0 : index
    %21 = vector.load %arg3[%c2_18, %c0_19, %c0_20] : memref<9x4x128xbf16, #tpu.memory_space<vmem>>, vector<1x4x128xbf16>
    %22 = vector.shape_cast %21 : vector<1x4x128xbf16> to vector<4x128xbf16>
    %cst_21 = arith.constant dense<0.000000e+00> : vector<384x128xf32>
    %23 = tpu.matmul %20, %22, %cst_21 {dimension_numbers = #tpu.dot_dimension_numbers<[1], [0], [0], [1], [0, 0, 1, 1], [], []>} : vector<384x4xbf16>, vector<4x128xbf16>, vector<384x128xf32> -> vector<384x128xf32>
    %24 = arith.addf %18, %23 : vector<384x128xf32>
    %c18 = arith.constant 18 : index
    %c0_22 = arith.constant 0 : index
    %25 = vector.load %arg6[%c18, %c0_22] : memref<768x4xf32, #tpu.memory_space<vmem>>, vector<384x4xf32>
    %26 = arith.truncf %25 : vector<384x4xf32> to vector<384x4xbf16>
    %c3 = arith.constant 3 : index
    %c0_23 = arith.constant 0 : index
    %c0_24 = arith.constant 0 : index
    %27 = vector.load %arg3[%c3, %c0_23, %c0_24] : memref<9x4x128xbf16, #tpu.memory_space<vmem>>, vector<1x4x128xbf16>
    %28 = vector.shape_cast %27 : vector<1x4x128xbf16> to vector<4x128xbf16>
    %cst_25 = arith.constant dense<0.000000e+00> : vector<384x128xf32>
    %29 = tpu.matmul %26, %28, %cst_25 {dimension_numbers = #tpu.dot_dimension_numbers<[1], [0], [0], [1], [0, 0, 1, 1], [], []>} : vector<384x4xbf16>, vector<4x128xbf16>, vector<384x128xf32> -> vector<384x128xf32>
    %30 = arith.addf %24, %29 : vector<384x128xf32>
    %c19 = arith.constant 19 : index
    %c0_26 = arith.constant 0 : index
    %31 = vector.load %arg6[%c19, %c0_26] : memref<768x4xf32, #tpu.memory_space<vmem>>, vector<384x4xf32>
    %32 = arith.truncf %31 : vector<384x4xf32> to vector<384x4xbf16>
    %c4 = arith.constant 4 : index
    %c0_27 = arith.constant 0 : index
    %c0_28 = arith.constant 0 : index
    %33 = vector.load %arg3[%c4, %c0_27, %c0_28] : memref<9x4x128xbf16, #tpu.memory_space<vmem>>, vector<1x4x128xbf16>
    %34 = vector.shape_cast %33 : vector<1x4x128xbf16> to vector<4x128xbf16>
    %cst_29 = arith.constant dense<0.000000e+00> : vector<384x128xf32>
    %35 = tpu.matmul %32, %34, %cst_29 {dimension_numbers = #tpu.dot_dimension_numbers<[1], [0], [0], [1], [0, 0, 1, 1], [], []>} : vector<384x4xbf16>, vector<4x128xbf16>, vector<384x128xf32> -> vector<384x128xf32>
    %36 = arith.addf %30, %35 : vector<384x128xf32>
    %c20 = arith.constant 20 : index
    %c0_30 = arith.constant 0 : index
    %37 = vector.load %arg6[%c20, %c0_30] : memref<768x4xf32, #tpu.memory_space<vmem>>, vector<384x4xf32>
    %38 = arith.truncf %37 : vector<384x4xf32> to vector<384x4xbf16>
    %c5 = arith.constant 5 : index
    %c0_31 = arith.constant 0 : index
    %c0_32 = arith.constant 0 : index
    %39 = vector.load %arg3[%c5, %c0_31, %c0_32] : memref<9x4x128xbf16, #tpu.memory_space<vmem>>, vector<1x4x128xbf16>
    %40 = vector.shape_cast %39 : vector<1x4x128xbf16> to vector<4x128xbf16>
    %cst_33 = arith.constant dense<0.000000e+00> : vector<384x128xf32>
    %41 = tpu.matmul %38, %40, %cst_33 {dimension_numbers = #tpu.dot_dimension_numbers<[1], [0], [0], [1], [0, 0, 1, 1], [], []>} : vector<384x4xbf16>, vector<4x128xbf16>, vector<384x128xf32> -> vector<384x128xf32>
    %42 = arith.addf %36, %41 : vector<384x128xf32>
    %c36 = arith.constant 36 : index
    %c0_34 = arith.constant 0 : index
    %43 = vector.load %arg6[%c36, %c0_34] : memref<768x4xf32, #tpu.memory_space<vmem>>, vector<384x4xf32>
    %44 = arith.truncf %43 : vector<384x4xf32> to vector<384x4xbf16>
    %c6 = arith.constant 6 : index
    %c0_35 = arith.constant 0 : index
    %c0_36 = arith.constant 0 : index
    %45 = vector.load %arg3[%c6, %c0_35, %c0_36] : memref<9x4x128xbf16, #tpu.memory_space<vmem>>, vector<1x4x128xbf16>
    %46 = vector.shape_cast %45 : vector<1x4x128xbf16> to vector<4x128xbf16>
    %cst_37 = arith.constant dense<0.000000e+00> : vector<384x128xf32>
    %47 = tpu.matmul %44, %46, %cst_37 {dimension_numbers = #tpu.dot_dimension_numbers<[1], [0], [0], [1], [0, 0, 1, 1], [], []>} : vector<384x4xbf16>, vector<4x128xbf16>, vector<384x128xf32> -> vector<384x128xf32>
    %48 = arith.addf %42, %47 : vector<384x128xf32>
    %c37 = arith.constant 37 : index
    %c0_38 = arith.constant 0 : index
    %49 = vector.load %arg6[%c37, %c0_38] : memref<768x4xf32, #tpu.memory_space<vmem>>, vector<384x4xf32>
    %50 = arith.truncf %49 : vector<384x4xf32> to vector<384x4xbf16>
    %c7 = arith.constant 7 : index
    %c0_39 = arith.constant 0 : index
    %c0_40 = arith.constant 0 : index
    %51 = vector.load %arg3[%c7, %c0_39, %c0_40] : memref<9x4x128xbf16, #tpu.memory_space<vmem>>, vector<1x4x128xbf16>
    %52 = vector.shape_cast %51 : vector<1x4x128xbf16> to vector<4x128xbf16>
    %cst_41 = arith.constant dense<0.000000e+00> : vector<384x128xf32>
    %53 = tpu.matmul %50, %52, %cst_41 {dimension_numbers = #tpu.dot_dimension_numbers<[1], [0], [0], [1], [0, 0, 1, 1], [], []>} : vector<384x4xbf16>, vector<4x128xbf16>, vector<384x128xf32> -> vector<384x128xf32>
    %54 = arith.addf %48, %53 : vector<384x128xf32>
    %c38 = arith.constant 38 : index
    %c0_42 = arith.constant 0 : index
    %55 = vector.load %arg6[%c38, %c0_42] : memref<768x4xf32, #tpu.memory_space<vmem>>, vector<384x4xf32>
    %56 = arith.truncf %55 : vector<384x4xf32> to vector<384x4xbf16>
    %c8 = arith.constant 8 : index
    %c0_43 = arith.constant 0 : index
    %c0_44 = arith.constant 0 : index
    %57 = vector.load %arg3[%c8, %c0_43, %c0_44] : memref<9x4x128xbf16, #tpu.memory_space<vmem>>, vector<1x4x128xbf16>
    %58 = vector.shape_cast %57 : vector<1x4x128xbf16> to vector<4x128xbf16>
    %cst_45 = arith.constant dense<0.000000e+00> : vector<384x128xf32>
    %59 = tpu.matmul %56, %58, %cst_45 {dimension_numbers = #tpu.dot_dimension_numbers<[1], [0], [0], [1], [0, 0, 1, 1], [], []>} : vector<384x4xbf16>, vector<4x128xbf16>, vector<384x128xf32> -> vector<384x128xf32>
    %60 = arith.addf %54, %59 : vector<384x128xf32>
    %c0_46 = arith.constant 0 : index
    %c0_47 = arith.constant 0 : index
    %61 = vector.load %arg4[%c0_46, %c0_47] : memref<1x128xf32, #tpu.memory_space<vmem>>, vector<1x128xf32>
    %62 = vector.broadcast %61 : vector<1x128xf32> to vector<384x128xf32>
    %63 = arith.addf %60, %62 : vector<384x128xf32>
    %cst_48 = arith.constant 0.000000e+00 : f32
    %64 = vector.broadcast %cst_48 : f32 to vector<384x128xf32>
    %65 = arith.maximumf %63, %64 : vector<384x128xf32>
    %c0_49 = arith.constant 0 : index
    %c0_50 = arith.constant 0 : index
    %66 = vector.load %arg5[%c0_49, %c0_50] : memref<384x128xf32, #tpu.memory_space<vmem>>, vector<384x128xf32>
    tpu.vector_store %arg5[%c0_49, %c0_50], %65 {strides = array<i32>} : memref<384x128xf32, #tpu.memory_space<vmem>>, vector<384x128xf32>,
    return
  }
  func.func @transform_0(%arg0: i32) -> (i32, i32) {
    %c0_i32 = arith.constant 0 : i32
    %c0_i32_0 = arith.constant 0 : i32
    return %arg0, %c0_i32 : i32, i32
  }
  func.func @transform_1(%arg0: i32) -> (i32, i32) {
    %c1_i32 = arith.constant 1 : i32
    %0 = arith.addi %arg0, %c1_i32 : i32
    %c0_i32 = arith.constant 0 : i32
    %c0_i32_0 = arith.constant 0 : i32
    return %0, %c0_i32 : i32, i32
  }
  func.func @transform_2(%arg0: i32) -> (i32, i32, i32) {
    %c0_i32 = arith.constant 0 : i32
    %c0_i32_0 = arith.constant 0 : i32
    %c0_i32_1 = arith.constant 0 : i32
    %c0_i32_2 = arith.constant 0 : i32
    return %c0_i32, %c0_i32_0, %c0_i32_1 : i32, i32, i32
  }
  func.func @transform_3(%arg0: i32) -> (i32, i32) {
    %c0_i32 = arith.constant 0 : i32
    %c0_i32_0 = arith.constant 0 : i32
    %c0_i32_1 = arith.constant 0 : i32
    return %c0_i32, %c0_i32_0 : i32, i32
  }
  func.func @transform_4(%arg0: i32) -> (i32, i32) {
    %c0_i32 = arith.constant 0 : i32
    %c0_i32_0 = arith.constant 0 : i32
    return %arg0, %c0_i32 : i32, i32
  }
}

module attributes {stable_mosaic.version = 11 : i64} {
  func.func @_conv1x1_kernel(%arg0: i32, %arg1: memref<256x4xbf16, #tpu.memory_space<vmem>>, %arg2: memref<1x4x128xbf16, #tpu.memory_space<vmem>>, %arg3: memref<1x128xf32, #tpu.memory_space<vmem>>, %arg4: memref<256x128xf32, #tpu.memory_space<vmem>>) attributes {dimension_semantics = [#tpu.dimension_semantics<parallel>], iteration_bounds = array<i64: 2>, scalar_prefetch = 0 : i64, scratch_operands = 0 : i64, tpu.core_type = #tpu.core_type<tc>, window_params = [{transform_indices = @transform_0, window_bounds = array<i64: 256, 4>}, {pipeline_mode = #tpu.pipeline_mode<synchronous>, transform_indices = @transform_1, window_bounds = array<i64: 1, 4, 128>}, {pipeline_mode = #tpu.pipeline_mode<synchronous>, transform_indices = @transform_2, window_bounds = array<i64: 1, 128>}, {transform_indices = @transform_3, window_bounds = array<i64: 256, 128>}]} {
    %c0 = arith.constant 0 : index
    %c0_0 = arith.constant 0 : index
    %0 = vector.load %arg1[%c0, %c0_0] : memref<256x4xbf16, #tpu.memory_space<vmem>>, vector<256x4xbf16>
    %c0_1 = arith.constant 0 : index
    %c0_2 = arith.constant 0 : index
    %c0_3 = arith.constant 0 : index
    %1 = vector.load %arg2[%c0_1, %c0_2, %c0_3] : memref<1x4x128xbf16, #tpu.memory_space<vmem>>, vector<1x4x128xbf16>
    %2 = vector.shape_cast %1 : vector<1x4x128xbf16> to vector<4x128xbf16>
    %cst = arith.constant dense<0.000000e+00> : vector<256x128xf32>
    %3 = tpu.matmul %0, %2, %cst {dimension_numbers = #tpu.dot_dimension_numbers<[1], [0], [0], [1], [0, 0, 1, 1], [], []>} : vector<256x4xbf16>, vector<4x128xbf16>, vector<256x128xf32> -> vector<256x128xf32>
    %c0_4 = arith.constant 0 : index
    %c0_5 = arith.constant 0 : index
    %4 = vector.load %arg3[%c0_4, %c0_5] : memref<1x128xf32, #tpu.memory_space<vmem>>, vector<1x128xf32>
    %5 = vector.broadcast %4 : vector<1x128xf32> to vector<256x128xf32>
    %6 = arith.addf %3, %5 : vector<256x128xf32>
    %cst_6 = arith.constant 0.000000e+00 : f32
    %7 = vector.broadcast %cst_6 : f32 to vector<256x128xf32>
    %8 = arith.maximumf %6, %7 : vector<256x128xf32>
    %c0_7 = arith.constant 0 : index
    %c0_8 = arith.constant 0 : index
    %9 = vector.load %arg4[%c0_7, %c0_8] : memref<256x128xf32, #tpu.memory_space<vmem>>, vector<256x128xf32>
    tpu.vector_store %arg4[%c0_7, %c0_8], %8 {strides = array<i32>} : memref<256x128xf32, #tpu.memory_space<vmem>>, vector<256x128xf32>,
    return
  }
  func.func @transform_0(%arg0: i32) -> (i32, i32) {
    %c0_i32 = arith.constant 0 : i32
    %c0_i32_0 = arith.constant 0 : i32
    return %arg0, %c0_i32 : i32, i32
  }
  func.func @transform_1(%arg0: i32) -> (i32, i32, i32) {
    %c0_i32 = arith.constant 0 : i32
    %c0_i32_0 = arith.constant 0 : i32
    %c0_i32_1 = arith.constant 0 : i32
    %c0_i32_2 = arith.constant 0 : i32
    return %c0_i32, %c0_i32_0, %c0_i32_1 : i32, i32, i32
  }
  func.func @transform_2(%arg0: i32) -> (i32, i32) {
    %c0_i32 = arith.constant 0 : i32
    %c0_i32_0 = arith.constant 0 : i32
    %c0_i32_1 = arith.constant 0 : i32
    return %c0_i32, %c0_i32_0 : i32, i32
  }
  func.func @transform_3(%arg0: i32) -> (i32, i32) {
    %c0_i32 = arith.constant 0 : i32
    %c0_i32_0 = arith.constant 0 : i32
    return %arg0, %c0_i32 : i32, i32
  }
}

</mosaic_0001>

<bundles_post_ra>
// kernel: inception_forward.9
= control target key start
LH: loop header
LB: loop body
LE: loop exit
PB: predicated region body
PF: predicated region fallthrough
CT: control target
= control target key end

     0   :  { %s1067_s12 = smov 0   ;;  %s1183_s0 = inlined_call_operand.vmem [shape: bf16[512,4], index: 0, kind: input, shape index: {}]   ;;  %s1184_s1 = inlined_call_operand.vmem [shape: bf16[1,4,128], index: 1, kind: input, shape index: {}]   ;;  %s1185_s2 = inlined_call_operand.vmem [shape: f32[1,128], index: 2, kind: input, shape index: {}]   ;;  %s1186_s3 = inlined_call_operand.vmem [shape: bf16[512,128], index: 3, kind: output, shape index: {}]  }
   0x1 LB: > { %s757_s13 = sadd.s32 4294967295, %s1045_s12   ;;  %p761_p0 = scmp.ge.s32.totalorder %s1045_s12, 1  ;;  %s1045_s12 = sphi %s1067_s12, %s13_s12  }
   0x2   : > { %p138_p1 = scmp.lt.s32.totalorder %s1045_s12, 3 }
   0x4   : > { %p139_p2 = pnand %p761_p0, %p138_p1 }
   0x5   : > { %v207_v0 = vld [vmem:[%s1184_s1] sm:$0x3] (!%p139_p2)  ;;  %vm344_vm0 = vcmask (!%p139_p2), 1041408   ;;  %s762_s16 = sshll.u32 (!%p139_p2), %s757_s13, 5  ;;  %vm295_vm1 = vcmask (!%p139_p2), 31744  }
   0x6   : > { %142 = sbr.rel (%p139_p2) target bundleno = 265 (0x109), region = 32  ;;  %1013 = vmatprep.subr.msk.bf16.mxu0 (!%p139_p2), %vm344_vm0, %v207_v0  ;;  %1014 = vmatprep.subr.msk.bf16.mxu1 (!%p139_p2), %vm344_vm0, %v207_v0  ;;  %v346_v1 = vsel (!%p139_p2), %vm344_vm0, %v207_v0, 0  ;;  %p163_p3 = scmp.lt.s32.totalorder (!%p139_p2), %s762_s16, 63  ;;  %v1123_v18 = vld [vmem:[%s1185_s2] ss:$0 sm:$0xff] (!%p139_p2) }
   0x7   : > { %978 = vmatpush3.bf16.msra.mxu0 (!%p139_p2), %v346_v1  ;;  %1012 = vmatpush3.bf16.msra.mxu1 (!%p139_p2), %v346_v1 }
   0xd   : > { %s1188_s16 = smov (!%p163_p3, %s762_s16), 63 }
   0xe   : > { %s763_s17 = sshll.u32 %s1188_s16, 2 }
   0xf   : > { %s1086_s20 = scalar_lea.vmem %s1183_s0, %s763_s17  ;;  %s1138_s25 = scalar_lea.vmem %s1186_s3, %s763_s17 }
  0x10   : > { %v1023_v2 = vld [vmem:[%s1086_s20] sm:$0xff]   ;;  %v1025_v4 = vld [vmem:[%s1086_s20 + $0x8] sm:$0xff]   ;;  %v1027_v6 = vld [vmem:[%s1086_s20 + $0x10] sm:$0xff]  }
  0x11   : > { %v1024_v3 = vld [vmem:[%s1086_s20 + $0x40] sm:$0xff]   ;;  %979 = vmatprep.mubr.msk.bf16.mxu0 %vm295_vm1, %v1023_v2  ;;  %v1026_v5 = vld [vmem:[%s1086_s20 + $0x48] sm:$0xff]   ;;  %v1028_v7 = vld [vmem:[%s1086_s20 + $0x50] sm:$0xff]  }
  0x12   : > { %995 = vmatprep.mubr.msk.bf16.mxu1 %vm295_vm1, %v1024_v3  ;;  %980 = vmatmul.mubr.msk.bf16.vlgmr.msra.gmra.mrb[0].mxu0 %vm295_vm1, %v1025_v4  ;;  %v1029_v8 = vld [vmem:[%s1086_s20 + $0x18] sm:$0xff]   ;;  %v1031_v10 = vld [vmem:[%s1086_s20 + $0x20] sm:$0xff]   ;;  %v1033_v12 = vld [vmem:[%s1086_s20 + $0x28] sm:$0xff]  }
  0x13   : > { %996 = vmatmul.mubr.msk.bf16.vlgmr.msra.gmra.mrb[0].mxu1 %vm295_vm1, %v1026_v5  ;;  %983 = vmatprep.mubr.msk.bf16.mxu0 %vm295_vm1, %v1027_v6  ;;  %v1030_v9 = vld [vmem:[%s1086_s20 + $0x58] sm:$0xff]   ;;  %v1032_v11 = vld [vmem:[%s1086_s20 + $0x60] sm:$0xff]   ;;  %v1034_v13 = vld [vmem:[%s1086_s20 + $0x68] sm:$0xff]  }
  0x14   : > { %999 = vmatprep.mubr.msk.bf16.mxu1 %vm295_vm1, %v1028_v7  ;;  %v1035_v14 = vld [vmem:[%s1086_s20 + $0x30] sm:$0xff]   ;;  %v1037_v16 = vld [vmem:[%s1086_s20 + $0x38] sm:$0xff]  }
  0x15   : > { %v1036_v15 = vld [vmem:[%s1086_s20 + $0x70] sm:$0xff]   ;;  %v1038_v17 = vld [vmem:[%s1086_s20 + $0x78] sm:$0xff]  }
  0x1a   : > { %984 = vmatmul.mubr.msk.bf16.gmra.mrb[4].mxu0 %vm295_vm1, %v1029_v8 }
  0x1b   : > { %1000 = vmatmul.mubr.msk.bf16.gmra.mrb[4].mxu1 %vm295_vm1, %v1030_v9  ;;  %987 = vmatprep.mubr.msk.bf16.mxu0 %vm295_vm1, %v1031_v10 }
  0x1c   : > { %1003 = vmatprep.mubr.msk.bf16.mxu1 %vm295_vm1, %v1032_v11 }
  0x22   : > { %988 = vmatmul.mubr.msk.bf16.gmra.mrb[8].mxu0 %vm295_vm1, %v1033_v12 }
  0x23   : > { %1004 = vmatmul.mubr.msk.bf16.gmra.mrb[8].mxu1 %vm295_vm1, %v1034_v13  ;;  %991 = vmatprep.mubr.msk.bf16.mxu0 %vm295_vm1, %v1035_v14 }
  0x24   : > { %1007 = vmatprep.mubr.msk.bf16.mxu1 %vm295_vm1, %v1036_v15 }
  0x2a   : > { %992 = vmatmul.mubr.msk.bf16.gmra.mrb[12].mxu0 %vm295_vm1, %v1037_v16 }
  0x2b   : > { %1008 = vmatmul.mubr.msk.bf16.gmra.mrb[12].mxu1 %vm295_vm1, %v1038_v17 }
  0xe5   : > { %v981_v19 = vpop.f32.mrb[0].mxu0 }
  0xe6   : > { %v391_v20 = vadd.f32 %v981_v19, %v1123_v18  ;;  %v997_v21 = vpop.f32.mrb[0].mxu1  ;;  %v382_v22 = vpop.f32.mrb[1].mxu0 }
  0xe7   : > { %v455_v23 = vadd.f32 %v997_v21, %v1123_v18  ;;  %v383_v24 = vadd.f32 %v1123_v18, %v382_v22  ;;  %v446_v25 = vpop.f32.mrb[1].mxu1  ;;  %v982_v26 = vpop.f32.mrb[2].mxu0 }
  0xe8   : > { %v447_v27 = vadd.f32 %v1123_v18, %v446_v25  ;;  %v394_v28 = vadd.f32 %v982_v26, %v1123_v18  ;;  %v998_v29 = vpop.f32.mrb[2].mxu1  ;;  %v385_v30 = vpop.f32.mrb[3].mxu0  ;;  %v511_v34 = vmax.f32 %v391_v20, 0.0 }
  0xe9   : > { %v458_v31 = vadd.f32 %v998_v29, %v1123_v18  ;;  %v386_v32 = vadd.f32 %v1123_v18, %v385_v30  ;;  %v449_v33 = vpop.f32.mrb[3].mxu1  ;;  %v527_v37 = vmax.f32 %v455_v23, 0.0  ;;  %v509_v38 = vmax.f32 %v383_v24, 0.0 }
  0xea   : > { %v512_v35 = vmax.f32 %v394_v28, 0.0  ;;  %v450_v36 = vadd.f32 %v1123_v18, %v449_v33  ;;  %v525_v41 = vmax.f32 %v447_v27, 0.0 }
  0xeb   : > { %v528_v39 = vmax.f32 %v458_v31, 0.0  ;;  %v510_v40 = vmax.f32 %v386_v32, 0.0 }
  0xec   : > { %v873_v42 = vpack.c.bf16 %v512_v35, %v511_v34  ;;  %v526_v43 = vmax.f32 %v450_v36, 0.0 }
  0xed   : > { %v913_v44 = vpack.c.bf16 %v528_v39, %v527_v37  ;;  %v868_v45 = vpack.c.bf16 %v510_v40, %v509_v38  ;;  %v985_v46 = vpop.f32.mrb[4].mxu0 }
  0xee   : > { %945 = vst [vmem:[%s1138_s25 + $0x8] sm:$0xff] %v873_v42   ;;  %v908_v47 = vpack.c.bf16 %v526_v43, %v525_v41  ;;  %v407_v48 = vadd.f32 %v985_v46, %v1123_v18  ;;  %v1001_v49 = vpop.f32.mrb[4].mxu1  ;;  %v398_v50 = vpop.f32.mrb[5].mxu0 }
  0xef   : > { %953 = vst [vmem:[%s1138_s25 + $0x48] sm:$0xff] %v913_v44   ;;  %869 = vst [vmem:[%s1138_s25] sm:$0xff] %v868_v45   ;;  %v471_v51 = vadd.f32 %v1001_v49, %v1123_v18  ;;  %v399_v52 = vadd.f32 %v1123_v18, %v398_v50  ;;  %v462_v53 = vpop.f32.mrb[5].mxu1  ;;  %v986_v54 = vpop.f32.mrb[6].mxu0 }
  0xf0   : > { %952 = vst [vmem:[%s1138_s25 + $0x40] sm:$0xff] %v908_v47   ;;  %v463_v55 = vadd.f32 %v1123_v18, %v462_v53  ;;  %v410_v56 = vadd.f32 %v986_v54, %v1123_v18  ;;  %v1002_v57 = vpop.f32.mrb[6].mxu1  ;;  %v401_v58 = vpop.f32.mrb[7].mxu0  ;;  %v515_v62 = vmax.f32 %v407_v48, 0.0 }
  0xf1   : > { %v474_v59 = vadd.f32 %v1002_v57, %v1123_v18  ;;  %v402_v60 = vadd.f32 %v1123_v18, %v401_v58  ;;  %v465_v61 = vpop.f32.mrb[7].mxu1  ;;  %v531_v1 = vmax.f32 %v471_v51, 0.0  ;;  %v513_v2 = vmax.f32 %v399_v52, 0.0 }
  0xf2   : > { %v516_v63 = vmax.f32 %v410_v56, 0.0  ;;  %v466_v0 = vadd.f32 %v1123_v18, %v465_v61  ;;  %v529_v5 = vmax.f32 %v463_v55, 0.0 }
  0xf3   : > { %v532_v3 = vmax.f32 %v474_v59, 0.0  ;;  %v514_v4 = vmax.f32 %v402_v60, 0.0 }
  0xf4   : > { %v883_v6 = vpack.c.bf16 %v516_v63, %v515_v62  ;;  %v530_v7 = vmax.f32 %v466_v0, 0.0 }
  0xf5   : > { %v923_v8 = vpack.c.bf16 %v532_v3, %v531_v1  ;;  %v878_v9 = vpack.c.bf16 %v514_v4, %v513_v2  ;;  %v989_v10 = vpop.f32.mrb[8].mxu0 }
  0xf6   : > { %947 = vst [vmem:[%s1138_s25 + $0x18] sm:$0xff] %v883_v6   ;;  %v918_v11 = vpack.c.bf16 %v530_v7, %v529_v5  ;;  %v423_v12 = vadd.f32 %v989_v10, %v1123_v18  ;;  %v1005_v13 = vpop.f32.mrb[8].mxu1  ;;  %v414_v14 = vpop.f32.mrb[9].mxu0 }
  0xf7   : > { %955 = vst [vmem:[%s1138_s25 + $0x58] sm:$0xff] %v923_v8   ;;  %946 = vst [vmem:[%s1138_s25 + $0x10] sm:$0xff] %v878_v9   ;;  %v487_v15 = vadd.f32 %v1005_v13, %v1123_v18  ;;  %v415_v16 = vadd.f32 %v1123_v18, %v414_v14  ;;  %v478_v17 = vpop.f32.mrb[9].mxu1  ;;  %v990_v19 = vpop.f32.mrb[10].mxu0 }
  0xf8   : > { %954 = vst [vmem:[%s1138_s25 + $0x50] sm:$0xff] %v918_v11   ;;  %v479_v20 = vadd.f32 %v1123_v18, %v478_v17  ;;  %v426_v21 = vadd.f32 %v990_v19, %v1123_v18  ;;  %v1006_v22 = vpop.f32.mrb[10].mxu1  ;;  %v417_v23 = vpop.f32.mrb[11].mxu0  ;;  %v519_v27 = vmax.f32 %v423_v12, 0.0 }
  0xf9   : > { %v490_v24 = vadd.f32 %v1006_v22, %v1123_v18  ;;  %v418_v25 = vadd.f32 %v1123_v18, %v417_v23  ;;  %v481_v26 = vpop.f32.mrb[11].mxu1  ;;  %v535_v30 = vmax.f32 %v487_v15, 0.0  ;;  %v517_v31 = vmax.f32 %v415_v16, 0.0 }
  0xfa   : > { %v520_v28 = vmax.f32 %v426_v21, 0.0  ;;  %v482_v29 = vadd.f32 %v1123_v18, %v481_v26  ;;  %v533_v34 = vmax.f32 %v479_v20, 0.0 }
  0xfb   : > { %v536_v32 = vmax.f32 %v490_v24, 0.0  ;;  %v518_v33 = vmax.f32 %v418_v25, 0.0 }
  0xfc   : > { %v893_v35 = vpack.c.bf16 %v520_v28, %v519_v27  ;;  %v534_v36 = vmax.f32 %v482_v29, 0.0 }
  0xfd   : > { %v933_v37 = vpack.c.bf16 %v536_v32, %v535_v30  ;;  %v888_v38 = vpack.c.bf16 %v518_v33, %v517_v31  ;;  %v993_v39 = vpop.f32.mrb[12].mxu0 }
  0xfe   : > { %949 = vst [vmem:[%s1138_s25 + $0x28] sm:$0xff] %v893_v35   ;;  %v928_v40 = vpack.c.bf16 %v534_v36, %v533_v34  ;;  %v439_v41 = vadd.f32 %v993_v39, %v1123_v18  ;;  %v1009_v42 = vpop.f32.mrb[12].mxu1  ;;  %v430_v43 = vpop.f32.mrb[13].mxu0 }
  0xff   : > { %957 = vst [vmem:[%s1138_s25 + $0x68] sm:$0xff] %v933_v37   ;;  %948 = vst [vmem:[%s1138_s25 + $0x20] sm:$0xff] %v888_v38   ;;  %v503_v44 = vadd.f32 %v1009_v42, %v1123_v18  ;;  %v431_v45 = vadd.f32 %v1123_v18, %v430_v43  ;;  %v494_v46 = vpop.f32.mrb[13].mxu1  ;;  %v994_v47 = vpop.f32.mrb[14].mxu0 }
 0x100   : > { %956 = vst [vmem:[%s1138_s25 + $0x60] sm:$0xff] %v928_v40   ;;  %v495_v48 = vadd.f32 %v1123_v18, %v494_v46  ;;  %v442_v49 = vadd.f32 %v994_v47, %v1123_v18  ;;  %v1010_v50 = vpop.f32.mrb[14].mxu1  ;;  %v433_v51 = vpop.f32.mrb[15].mxu0  ;;  %v523_v55 = vmax.f32 %v439_v41, 0.0 }
 0x101   : > { %v506_v52 = vadd.f32 %v1010_v50, %v1123_v18  ;;  %v434_v53 = vadd.f32 %v1123_v18, %v433_v51  ;;  %v497_v54 = vpop.f32.mrb[15].mxu1  ;;  %v539_v58 = vmax.f32 %v503_v44, 0.0  ;;  %v521_v59 = vmax.f32 %v431_v45, 0.0 }
 0x102   : > { %v524_v56 = vmax.f32 %v442_v49, 0.0  ;;  %v498_v57 = vadd.f32 %v1123_v18, %v497_v54  ;;  %v537_v62 = vmax.f32 %v495_v48, 0.0 }
 0x103   : > { %v540_v60 = vmax.f32 %v506_v52, 0.0  ;;  %v522_v61 = vmax.f32 %v434_v53, 0.0 }
 0x104   : > { %v903_v63 = vpack.c.bf16 %v524_v56, %v523_v55  ;;  %v538_v0 = vmax.f32 %v498_v57, 0.0 }
 0x105   : > { %v943_v1 = vpack.c.bf16 %v540_v60, %v539_v58  ;;  %v898_v2 = vpack.c.bf16 %v522_v61, %v521_v59 }
 0x106   : > { %951 = vst [vmem:[%s1138_s25 + $0x38] sm:$0xff] %v903_v63   ;;  %v938_v3 = vpack.c.bf16 %v538_v0, %v537_v62 }
 0x107   : > { %959 = vst [vmem:[%s1138_s25 + $0x78] sm:$0xff] %v943_v1   ;;  %950 = vst [vmem:[%s1138_s25 + $0x30] sm:$0xff] %v898_v2  }
 0x108   : > { %958 = vst [vmem:[%s1138_s25 + $0x70] sm:$0xff] %v938_v3  }
 0x109 PF: > { %s13_s12 = sadd.s32 1, %s1045_s12  }
 0x10a   : > { %p10_p4 = scmp.ge.s32.totalorder %s13_s12, 4  }
 0x10c   :  { %12 = sbr.rel (!%p10_p4) target bundleno = 1 (0x1), region = 62 }

// kernel: inception_forward.6
= control target key start
LH: loop header
LB: loop body
LE: loop exit
PB: predicated region body
PF: predicated region fallthrough
CT: control target
= control target key end

     0   :  { %s780_s12 = smov 0   ;;  %s909_s0 = inlined_call_operand.vmem [shape: bf16[512,4], index: 0, kind: input, shape index: {}]   ;;  %s910_s1 = inlined_call_operand.vmem [shape: bf16[1,4,128], index: 1, kind: input, shape index: {}]   ;;  %s911_s2 = inlined_call_operand.vmem [shape: f32[1,128], index: 2, kind: input, shape index: {}]   ;;  %s912_s3 = inlined_call_operand.vmem [shape: f32[512,128], index: 3, kind: output, shape index: {}]  }
   0x1 LB: > { %s629_s13 = sadd.s32 4294967295, %s758_s12   ;;  %p633_p0 = scmp.ge.s32.totalorder %s758_s12, 1  ;;  %s758_s12 = sphi %s780_s12, %s13_s12  }
   0x2   : > { %p138_p1 = scmp.lt.s32.totalorder %s758_s12, 3 }
   0x4   : > { %p139_p2 = pnand %p633_p0, %p138_p1 }
   0x5   : > { %v207_v0 = vld [vmem:[%s910_s1] sm:$0x3] (!%p139_p2)  ;;  %vm344_vm0 = vcmask (!%p139_p2), 1041408   ;;  %s634_s16 = sshll.u32 (!%p139_p2), %s629_s13, 5  ;;  %vm295_vm1 = vcmask (!%p139_p2), 31744  }
   0x6   : > { %142 = sbr.rel (%p139_p2) target bundleno = 263 (0x107), region = 32  ;;  %726 = vmatprep.subr.msk.bf16.mxu0 (!%p139_p2), %vm344_vm0, %v207_v0  ;;  %727 = vmatprep.subr.msk.bf16.mxu1 (!%p139_p2), %vm344_vm0, %v207_v0  ;;  %v346_v1 = vsel (!%p139_p2), %vm344_vm0, %v207_v0, 0  ;;  %p163_p3 = scmp.lt.s32.totalorder (!%p139_p2), %s634_s16, 63  ;;  %v834_v18 = vld [vmem:[%s911_s2] ss:$0 sm:$0xff] (!%p139_p2) }
   0x7   : > { %691 = vmatpush3.bf16.msra.mxu0 (!%p139_p2), %v346_v1  ;;  %725 = vmatpush3.bf16.msra.mxu1 (!%p139_p2), %v346_v1 }
   0xd   : > { %s914_s16 = smov (!%p163_p3, %s634_s16), 63 }
   0xe   : > { %s635_s17 = sshll.u32 %s914_s16, 2  ;;  %s637_s23 = sshll.u32 %s914_s16, 3 }
   0xf   : > { %s797_s20 = scalar_lea.vmem %s909_s0, %s635_s17  ;;  %s841_s26 = scalar_lea.vmem %s912_s3, %s637_s23 }
  0x10   : > { %v736_v2 = vld [vmem:[%s797_s20] sm:$0xff]   ;;  %v738_v4 = vld [vmem:[%s797_s20 + $0x8] sm:$0xff]   ;;  %v740_v6 = vld [vmem:[%s797_s20 + $0x10] sm:$0xff]  }
  0x11   : > { %v737_v3 = vld [vmem:[%s797_s20 + $0x40] sm:$0xff]   ;;  %692 = vmatprep.mubr.msk.bf16.mxu0 %vm295_vm1, %v736_v2  ;;  %v739_v5 = vld [vmem:[%s797_s20 + $0x48] sm:$0xff]   ;;  %v741_v7 = vld [vmem:[%s797_s20 + $0x50] sm:$0xff]  }
  0x12   : > { %708 = vmatprep.mubr.msk.bf16.mxu1 %vm295_vm1, %v737_v3  ;;  %693 = vmatmul.mubr.msk.bf16.vlgmr.msra.gmra.mrb[0].mxu0 %vm295_vm1, %v738_v4  ;;  %v742_v8 = vld [vmem:[%s797_s20 + $0x18] sm:$0xff]   ;;  %v744_v10 = vld [vmem:[%s797_s20 + $0x20] sm:$0xff]   ;;  %v746_v12 = vld [vmem:[%s797_s20 + $0x28] sm:$0xff]  }
  0x13   : > { %709 = vmatmul.mubr.msk.bf16.vlgmr.msra.gmra.mrb[0].mxu1 %vm295_vm1, %v739_v5  ;;  %696 = vmatprep.mubr.msk.bf16.mxu0 %vm295_vm1, %v740_v6  ;;  %v743_v9 = vld [vmem:[%s797_s20 + $0x58] sm:$0xff]   ;;  %v745_v11 = vld [vmem:[%s797_s20 + $0x60] sm:$0xff]   ;;  %v747_v13 = vld [vmem:[%s797_s20 + $0x68] sm:$0xff]  }
  0x14   : > { %712 = vmatprep.mubr.msk.bf16.mxu1 %vm295_vm1, %v741_v7  ;;  %v748_v14 = vld [vmem:[%s797_s20 + $0x30] sm:$0xff]   ;;  %v750_v16 = vld [vmem:[%s797_s20 + $0x38] sm:$0xff]  }
  0x15   : > { %v749_v15 = vld [vmem:[%s797_s20 + $0x70] sm:$0xff]   ;;  %v751_v17 = vld [vmem:[%s797_s20 + $0x78] sm:$0xff]  }
  0x1a   : > { %697 = vmatmul.mubr.msk.bf16.gmra.mrb[4].mxu0 %vm295_vm1, %v742_v8 }
  0x1b   : > { %713 = vmatmul.mubr.msk.bf16.gmra.mrb[4].mxu1 %vm295_vm1, %v743_v9  ;;  %700 = vmatprep.mubr.msk.bf16.mxu0 %vm295_vm1, %v744_v10 }
  0x1c   : > { %716 = vmatprep.mubr.msk.bf16.mxu1 %vm295_vm1, %v745_v11 }
  0x22   : > { %701 = vmatmul.mubr.msk.bf16.gmra.mrb[8].mxu0 %vm295_vm1, %v746_v12 }
  0x23   : > { %717 = vmatmul.mubr.msk.bf16.gmra.mrb[8].mxu1 %vm295_vm1, %v747_v13  ;;  %704 = vmatprep.mubr.msk.bf16.mxu0 %vm295_vm1, %v748_v14 }
  0x24   : > { %720 = vmatprep.mubr.msk.bf16.mxu1 %vm295_vm1, %v749_v15 }
  0x2a   : > { %705 = vmatmul.mubr.msk.bf16.gmra.mrb[12].mxu0 %vm295_vm1, %v750_v16 }
  0x2b   : > { %721 = vmatmul.mubr.msk.bf16.gmra.mrb[12].mxu1 %vm295_vm1, %v751_v17 }
  0xe5   : > { %v694_v19 = vpop.f32.mrb[0].mxu0 }
  0xe6   : > { %v391_v20 = vadd.f32 %v694_v19, %v834_v18  ;;  %v710_v21 = vpop.f32.mrb[0].mxu1  ;;  %v382_v22 = vpop.f32.mrb[1].mxu0 }
  0xe7   : > { %v455_v23 = vadd.f32 %v710_v21, %v834_v18  ;;  %v383_v24 = vadd.f32 %v834_v18, %v382_v22  ;;  %v446_v25 = vpop.f32.mrb[1].mxu1  ;;  %v695_v26 = vpop.f32.mrb[2].mxu0 }
  0xe8   : > { %v511_v27 = vmax.f32 %v391_v20, 0.0  ;;  %v447_v28 = vadd.f32 %v834_v18, %v446_v25  ;;  %v394_v29 = vadd.f32 %v695_v26, %v834_v18  ;;  %v711_v30 = vpop.f32.mrb[2].mxu1  ;;  %v385_v31 = vpop.f32.mrb[3].mxu0 }
  0xe9   : > { %v527_v32 = vmax.f32 %v455_v23, 0.0  ;;  %v509_v33 = vmax.f32 %v383_v24, 0.0  ;;  %v458_v34 = vadd.f32 %v711_v30, %v834_v18  ;;  %v386_v35 = vadd.f32 %v834_v18, %v385_v31  ;;  %v449_v36 = vpop.f32.mrb[3].mxu1 }
  0xea   : > { %543 = vst [vmem:[%s841_s26 + $0x10] sm:$0xff] %v511_v27  ;;  %v525_v37 = vmax.f32 %v447_v28, 0.0  ;;  %v512_v38 = vmax.f32 %v394_v29, 0.0  ;;  %v450_v39 = vadd.f32 %v834_v18, %v449_v36 }
  0xeb   : > { %559 = vst [vmem:[%s841_s26 + $0x90] sm:$0xff] %v527_v32  ;;  %541 = vst [vmem:[%s841_s26] sm:$0xff] %v509_v33  ;;  %v528_v40 = vmax.f32 %v458_v34, 0.0  ;;  %v510_v41 = vmax.f32 %v386_v35, 0.0 }
  0xec   : > { %557 = vst [vmem:[%s841_s26 + $0x80] sm:$0xff] %v525_v37  ;;  %544 = vst [vmem:[%s841_s26 + $0x18] sm:$0xff] %v512_v38  ;;  %v526_v42 = vmax.f32 %v450_v39, 0.0 }
  0xed   : > { %560 = vst [vmem:[%s841_s26 + $0x98] sm:$0xff] %v528_v40  ;;  %542 = vst [vmem:[%s841_s26 + $0x8] sm:$0xff] %v510_v41  ;;  %v698_v43 = vpop.f32.mrb[4].mxu0 }
  0xee   : > { %558 = vst [vmem:[%s841_s26 + $0x88] sm:$0xff] %v526_v42  ;;  %v407_v44 = vadd.f32 %v698_v43, %v834_v18  ;;  %v714_v45 = vpop.f32.mrb[4].mxu1  ;;  %v398_v46 = vpop.f32.mrb[5].mxu0 }
  0xef   : > { %v471_v47 = vadd.f32 %v714_v45, %v834_v18  ;;  %v399_v48 = vadd.f32 %v834_v18, %v398_v46  ;;  %v462_v49 = vpop.f32.mrb[5].mxu1  ;;  %v699_v50 = vpop.f32.mrb[6].mxu0 }
  0xf0   : > { %v515_v51 = vmax.f32 %v407_v44, 0.0  ;;  %v463_v52 = vadd.f32 %v834_v18, %v462_v49  ;;  %v410_v53 = vadd.f32 %v699_v50, %v834_v18  ;;  %v715_v54 = vpop.f32.mrb[6].mxu1  ;;  %v401_v55 = vpop.f32.mrb[7].mxu0 }
  0xf1   : > { %v531_v56 = vmax.f32 %v471_v47, 0.0  ;;  %v513_v57 = vmax.f32 %v399_v48, 0.0  ;;  %v474_v58 = vadd.f32 %v715_v54, %v834_v18  ;;  %v402_v59 = vadd.f32 %v834_v18, %v401_v55  ;;  %v465_v60 = vpop.f32.mrb[7].mxu1 }
  0xf2   : > { %547 = vst [vmem:[%s841_s26 + $0x30] sm:$0xff] %v515_v51  ;;  %v529_v61 = vmax.f32 %v463_v52, 0.0  ;;  %v516_v62 = vmax.f32 %v410_v53, 0.0  ;;  %v466_v63 = vadd.f32 %v834_v18, %v465_v60 }
  0xf3   : > { %563 = vst [vmem:[%s841_s26 + $0xb0] sm:$0xff] %v531_v56  ;;  %545 = vst [vmem:[%s841_s26 + $0x20] sm:$0xff] %v513_v57  ;;  %v532_v0 = vmax.f32 %v474_v58, 0.0  ;;  %v514_v1 = vmax.f32 %v402_v59, 0.0 }
  0xf4   : > { %561 = vst [vmem:[%s841_s26 + $0xa0] sm:$0xff] %v529_v61  ;;  %548 = vst [vmem:[%s841_s26 + $0x38] sm:$0xff] %v516_v62  ;;  %v530_v2 = vmax.f32 %v466_v63, 0.0 }
  0xf5   : > { %564 = vst [vmem:[%s841_s26 + $0xb8] sm:$0xff] %v532_v0  ;;  %546 = vst [vmem:[%s841_s26 + $0x28] sm:$0xff] %v514_v1  ;;  %v702_v3 = vpop.f32.mrb[8].mxu0 }
  0xf6   : > { %562 = vst [vmem:[%s841_s26 + $0xa8] sm:$0xff] %v530_v2  ;;  %v423_v4 = vadd.f32 %v702_v3, %v834_v18  ;;  %v718_v5 = vpop.f32.mrb[8].mxu1  ;;  %v414_v6 = vpop.f32.mrb[9].mxu0 }
  0xf7   : > { %v487_v7 = vadd.f32 %v718_v5, %v834_v18  ;;  %v415_v8 = vadd.f32 %v834_v18, %v414_v6  ;;  %v478_v9 = vpop.f32.mrb[9].mxu1  ;;  %v703_v10 = vpop.f32.mrb[10].mxu0 }
  0xf8   : > { %v519_v11 = vmax.f32 %v423_v4, 0.0  ;;  %v479_v12 = vadd.f32 %v834_v18, %v478_v9  ;;  %v426_v13 = vadd.f32 %v703_v10, %v834_v18  ;;  %v719_v14 = vpop.f32.mrb[10].mxu1  ;;  %v417_v15 = vpop.f32.mrb[11].mxu0 }
  0xf9   : > { %v535_v16 = vmax.f32 %v487_v7, 0.0  ;;  %v517_v17 = vmax.f32 %v415_v8, 0.0  ;;  %v490_v19 = vadd.f32 %v719_v14, %v834_v18  ;;  %v418_v20 = vadd.f32 %v834_v18, %v417_v15  ;;  %v481_v21 = vpop.f32.mrb[11].mxu1 }
  0xfa   : > { %551 = vst [vmem:[%s841_s26 + $0x50] sm:$0xff] %v519_v11  ;;  %v533_v22 = vmax.f32 %v479_v12, 0.0  ;;  %v520_v23 = vmax.f32 %v426_v13, 0.0  ;;  %v482_v24 = vadd.f32 %v834_v18, %v481_v21 }
  0xfb   : > { %567 = vst [vmem:[%s841_s26 + $0xd0] sm:$0xff] %v535_v16  ;;  %549 = vst [vmem:[%s841_s26 + $0x40] sm:$0xff] %v517_v17  ;;  %v536_v25 = vmax.f32 %v490_v19, 0.0  ;;  %v518_v26 = vmax.f32 %v418_v20, 0.0 }
  0xfc   : > { %565 = vst [vmem:[%s841_s26 + $0xc0] sm:$0xff] %v533_v22  ;;  %552 = vst [vmem:[%s841_s26 + $0x58] sm:$0xff] %v520_v23  ;;  %v534_v27 = vmax.f32 %v482_v24, 0.0 }
  0xfd   : > { %568 = vst [vmem:[%s841_s26 + $0xd8] sm:$0xff] %v536_v25  ;;  %550 = vst [vmem:[%s841_s26 + $0x48] sm:$0xff] %v518_v26  ;;  %v706_v28 = vpop.f32.mrb[12].mxu0 }
  0xfe   : > { %566 = vst [vmem:[%s841_s26 + $0xc8] sm:$0xff] %v534_v27  ;;  %v439_v29 = vadd.f32 %v706_v28, %v834_v18  ;;  %v722_v30 = vpop.f32.mrb[12].mxu1  ;;  %v430_v31 = vpop.f32.mrb[13].mxu0 }
  0xff   : > { %v503_v32 = vadd.f32 %v722_v30, %v834_v18  ;;  %v431_v33 = vadd.f32 %v834_v18, %v430_v31  ;;  %v494_v34 = vpop.f32.mrb[13].mxu1  ;;  %v707_v35 = vpop.f32.mrb[14].mxu0 }
 0x100   : > { %v523_v36 = vmax.f32 %v439_v29, 0.0  ;;  %v495_v37 = vadd.f32 %v834_v18, %v494_v34  ;;  %v442_v38 = vadd.f32 %v707_v35, %v834_v18  ;;  %v723_v39 = vpop.f32.mrb[14].mxu1  ;;  %v433_v40 = vpop.f32.mrb[15].mxu0 }
 0x101   : > { %v539_v41 = vmax.f32 %v503_v32, 0.0  ;;  %v521_v42 = vmax.f32 %v431_v33, 0.0  ;;  %v506_v43 = vadd.f32 %v723_v39, %v834_v18  ;;  %v434_v44 = vadd.f32 %v834_v18, %v433_v40  ;;  %v497_v45 = vpop.f32.mrb[15].mxu1 }
 0x102   : > { %555 = vst [vmem:[%s841_s26 + $0x70] sm:$0xff] %v523_v36  ;;  %v537_v46 = vmax.f32 %v495_v37, 0.0  ;;  %v524_v47 = vmax.f32 %v442_v38, 0.0  ;;  %v498_v48 = vadd.f32 %v834_v18, %v497_v45 }
 0x103   : > { %571 = vst [vmem:[%s841_s26 + $0xf0] sm:$0xff] %v539_v41  ;;  %553 = vst [vmem:[%s841_s26 + $0x60] sm:$0xff] %v521_v42  ;;  %v540_v49 = vmax.f32 %v506_v43, 0.0  ;;  %v522_v50 = vmax.f32 %v434_v44, 0.0 }
 0x104   : > { %569 = vst [vmem:[%s841_s26 + $0xe0] sm:$0xff] %v537_v46  ;;  %556 = vst [vmem:[%s841_s26 + $0x78] sm:$0xff] %v524_v47  ;;  %v538_v51 = vmax.f32 %v498_v48, 0.0 }
 0x105   : > { %572 = vst [vmem:[%s841_s26 + $0xf8] sm:$0xff] %v540_v49  ;;  %554 = vst [vmem:[%s841_s26 + $0x68] sm:$0xff] %v522_v50 }
 0x106   : > { %570 = vst [vmem:[%s841_s26 + $0xe8] sm:$0xff] %v538_v51 }
 0x107 PF: > { %s13_s12 = sadd.s32 1, %s758_s12  }
 0x108   : > { %p10_p4 = scmp.ge.s32.totalorder %s13_s12, 4  }
 0x10a   :  { %12 = sbr.rel (!%p10_p4) target bundleno = 1 (0x1), region = 62 }

// kernel: inception_forward.11
= control target key start
LH: loop header
LB: loop body
LE: loop exit
PB: predicated region body
PF: predicated region fallthrough
CT: control target
= control target key end

     0   :  { %s2138_s15 = smov 0   ;;  %s2701_s0 = inlined_call_operand.vmem [shape: bf16[1152,4], index: 0, kind: input, shape index: {}, may-alias: {0,1}]   ;;  %s2702_s1 = inlined_call_operand.vmem [shape: bf16[1152,4], index: 1, kind: input, shape index: {}, may-alias: {0,1}]   ;;  %s2703_s2 = inlined_call_operand.vmem [shape: bf16[1,4,128], index: 2, kind: input, shape index: {}]   ;;  %s2704_s3 = inlined_call_operand.vmem [shape: f32[1,128], index: 3, kind: input, shape index: {}]   ;;  %s2705_s4 = inlined_call_operand.vmem [shape: f32[768,128], index: 4, kind: output, shape index: {}]  }
   0x1 LB: > { %s1741_s16 = sadd.s32 4294967295, %s2111_s15   ;;  %p1745_p0 = scmp.ge.s32.totalorder %s2111_s15, 1  ;;  %s2111_s15 = sphi %s2138_s15, %s14_s15  }
   0x2   : > { %p178_p1 = scmp.lt.s32.totalorder %s2111_s15, 3 }
   0x4   : > { %p179_p2 = pnand %p1745_p0, %p178_p1 }
   0x5   : > { %v1268_v0 = vld [vmem:[%s2703_s2] sm:$0x3] (!%p179_p2)  ;;  %vm1348_vm0 = vcmask (!%p179_p2), 1041408   ;;  %s2149_s19 = smul.u32 (!%p179_p2), 48, %s1741_s16  ;;  %s216_s20 = sadd.s32 (!%p179_p2), 1, %s1741_s16  ;;  %vm327_vm1 = vcmask (!%p179_p2), 31744  }
   0x6   : > { %182 = sbr.rel (%p179_p2) target bundleno = 386 (0x182), region = 36  ;;  %2091 = vmatprep.subr.msk.bf16.mxu0 (!%p179_p2), %vm1348_vm0, %v1268_v0  ;;  %2092 = vmatprep.subr.msk.bf16.mxu1 (!%p179_p2), %vm1348_vm0, %v1268_v0  ;;  %v1350_v1 = vsel (!%p179_p2), %vm1348_vm0, %v1268_v0, 0 }
   0x7   : > { %s217_s21 = smul.u32 (!%p179_p2), 48, %s216_s20  ;;  %2040 = vmatpush3.bf16.msra.mxu0 (!%p179_p2), %v1350_v1  ;;  %2090 = vmatpush3.bf16.msra.mxu1 (!%p179_p2), %v1350_v1  ;;  %p211_p3 = scmp.lt.s32.totalorder (!%p179_p2), %s2149_s19, 143 }
   0x8   : > { %p225_p5 = scmp.lt.s32.totalorder (!%p179_p2), %s2149_s19, 95 }
   0x9   : > { %p2153_p4 = scmp.lt.s32.totalorder (!%p179_p2), %s217_s21, 143 }
   0xd   : > { %s212_s22 = scalar_select %p211_p3, %s2149_s19, 143 }
   0xe   : > { %s2708_s21 = smov (!%p2153_p4, %s217_s21), 143  ;;  %s2710_s19 = smov (!%p225_p5, %s2149_s19), 95 }
   0xf   : > { %s1746_s24 = sshll.u32 %s212_s22, 2  ;;  %s1747_s28 = sshll.u32 %s2708_s21, 2 }
  0x10   : > { %s2160_s27 = scalar_lea.vmem %s2701_s0, %s1746_s24  ;;  %s2211_s5 = scalar_lea.vmem %s2702_s1, %s1747_s28 }
  0x11   : > { %v1777_v2 = vld [vmem:[%s2160_s27] sm:$0xff]   ;;  %v1968_v3 = vld [vmem:[%s2160_s27 + $0x8] sm:$0xff]   ;;  %v1969_v4 = vld [vmem:[%s2160_s27 + $0x10] sm:$0xff]   ;;  %s1748_s8 = sshll.u32 %s2710_s19, 3 }
  0x12   : > { %v1778_v5 = vunpack.c.l.bf16 %v1777_v2  ;;  %v1779_v6 = vunpack.c.h.bf16 %v1777_v2  ;;  %v1782_v7 = vunpack.c.l.bf16 %v1968_v3  ;;  %v1783_v8 = vunpack.c.h.bf16 %v1968_v3  ;;  %v1970_v9 = vld [vmem:[%s2160_s27 + $0x18] sm:$0xff]   ;;  %v2167_v10 = vld [vmem:[%s2160_s27 + $0x20] sm:$0xff]   ;;  %v1980_v17 = vld [vmem:[%s2160_s27 + $0x68] sm:$0xff]   ;;  %s2601_s11 = scalar_lea.vmem %s2705_s4, %s1748_s8 }
  0x13   : > { %v1978_v11 = vld [vmem:[%s2160_s27 + $0x58] sm:$0xff]   ;;  %v1786_v12 = vunpack.c.l.bf16 %v1969_v4  ;;  %v1787_v13 = vunpack.c.h.bf16 %v1969_v4  ;;  %v1790_v14 = vunpack.c.l.bf16 %v1970_v9  ;;  %v1791_v15 = vunpack.c.h.bf16 %v1970_v9  ;;  %v1979_v16 = vld [vmem:[%s2160_s27 + $0x60] sm:$0xff]   ;;  %v1981_v18 = vld [vmem:[%s2160_s27 + $0x70] sm:$0xff]  }
  0x14   : > { %v1794_v19 = vunpack.c.l.bf16 %v2167_v10  ;;  %328 = vst.msk [vmem:[#allocation2] sm:$0xff] %vm327_vm1, %v1778_v5  ;;  %329 = vst.msk [vmem:[#allocation2 + $0x8] sm:$0xff] %vm327_vm1, %v1779_v6  ;;  %v1822_v20 = vunpack.c.l.bf16 %v1978_v11  ;;  %v1823_v21 = vunpack.c.h.bf16 %v1978_v11  ;;  %v1826_v22 = vunpack.c.l.bf16 %v1979_v16  ;;  %v1982_v23 = vld [vmem:[%s2160_s27 + $0x78] sm:$0xff]   ;;  %v1983_v24 = vld [vmem:[%s2160_s27 + $0x80] sm:$0xff]  }
  0x15   : > { %330 = vst.msk [vmem:[#allocation2 + $0x10] sm:$0xff] %vm327_vm1, %v1782_v7  ;;  %331 = vst.msk [vmem:[#allocation2 + $0x18] sm:$0xff] %vm327_vm1, %v1783_v8  ;;  %v1972_v25 = vld [vmem:[%s2160_s27 + $0x28] sm:$0xff]   ;;  %v1827_v26 = vunpack.c.h.bf16 %v1979_v16  ;;  %v1830_v27 = vunpack.c.l.bf16 %v1980_v17  ;;  %v1831_v28 = vunpack.c.h.bf16 %v1980_v17  ;;  %v1834_v29 = vunpack.c.l.bf16 %v1981_v18  ;;  %v1973_v31 = vld [vmem:[%s2160_s27 + $0x30] sm:$0xff]  }
  0x16   : > { %332 = vst.msk [vmem:[#allocation2 + $0x20] sm:$0xff] %vm327_vm1, %v1786_v12  ;;  %333 = vst.msk [vmem:[#allocation2 + $0x28] sm:$0xff] %vm327_vm1, %v1787_v13  ;;  %v1984_v30 = vld [vmem:[%s2160_s27 + $0x88] sm:$0xff]   ;;  %v1985_v32 = vld [vmem:[%s2160_s27 + $0x90] sm:$0xff]   ;;  %v1835_v33 = vunpack.c.h.bf16 %v1981_v18  ;;  %v1838_v34 = vunpack.c.l.bf16 %v1982_v23  ;;  %v1839_v35 = vunpack.c.h.bf16 %v1982_v23  ;;  %v1842_v36 = vunpack.c.l.bf16 %v1983_v24 }
  0x17   : > { %334 = vst.msk [vmem:[#allocation2 + $0x30] sm:$0xff] %vm327_vm1, %v1790_v14  ;;  %335 = vst.msk [vmem:[#allocation2 + $0x38] sm:$0xff] %vm327_vm1, %v1791_v15  ;;  %v1974_v37 = vld [vmem:[%s2160_s27 + $0x38] sm:$0xff]   ;;  %v1795_v39 = vunpack.c.h.bf16 %v2167_v10  ;;  %v1798_v40 = vunpack.c.l.bf16 %v1972_v25  ;;  %v1843_v41 = vunpack.c.h.bf16 %v1983_v24  ;;  %v1846_v42 = vunpack.c.l.bf16 %v1984_v30  ;;  %v1975_v43 = vld [vmem:[%s2160_s27 + $0x40] sm:$0xff]  }
  0x18   : > { %336 = vst.msk [vmem:[#allocation2 + $0x40] sm:$0xff] %vm327_vm1, %v1794_v19  ;;  %350 = vst.msk [vmem:[#allocation2 + $0xb0] sm:$0xff] %vm327_vm1, %v1822_v20  ;;  %v1986_v38 = vld [vmem:[%s2160_s27 + $0x98] sm:$0xff]   ;;  %v1987_v44 = vld [vmem:[%s2160_s27 + $0xa0] sm:$0xff]   ;;  %v1799_v45 = vunpack.c.h.bf16 %v1972_v25  ;;  %v1802_v46 = vunpack.c.l.bf16 %v1973_v31  ;;  %v1847_v47 = vunpack.c.h.bf16 %v1984_v30  ;;  %v1850_v48 = vunpack.c.l.bf16 %v1985_v32 }
  0x19   : > { %351 = vst.msk [vmem:[#allocation2 + $0xb8] sm:$0xff] %vm327_vm1, %v1823_v21  ;;  %352 = vst.msk [vmem:[#allocation2 + $0xc0] sm:$0xff] %vm327_vm1, %v1826_v22  ;;  %v1976_v49 = vld [vmem:[%s2160_s27 + $0x48] sm:$0xff]   ;;  %v1803_v51 = vunpack.c.h.bf16 %v1973_v31  ;;  %v1806_v52 = vunpack.c.l.bf16 %v1974_v37  ;;  %v1851_v53 = vunpack.c.h.bf16 %v1985_v32  ;;  %v1854_v54 = vunpack.c.l.bf16 %v1986_v38  ;;  %v1977_v55 = vld [vmem:[%s2160_s27 + $0x50] sm:$0xff]  }
  0x1a   : > { %353 = vst.msk [vmem:[#allocation2 + $0xc8] sm:$0xff] %vm327_vm1, %v1827_v26  ;;  %354 = vst.msk [vmem:[#allocation2 + $0xd0] sm:$0xff] %vm327_vm1, %v1830_v27  ;;  %v1988_v50 = vld [vmem:[%s2160_s27 + $0xa8] sm:$0xff]   ;;  %v1989_v56 = vld [vmem:[%s2160_s27 + $0xb0] sm:$0xff]   ;;  %v1807_v57 = vunpack.c.h.bf16 %v1974_v37  ;;  %v1810_v58 = vunpack.c.l.bf16 %v1975_v43  ;;  %v1855_v59 = vunpack.c.h.bf16 %v1986_v38  ;;  %v1858_v60 = vunpack.c.l.bf16 %v1987_v44 }
  0x1b   : > { %355 = vst.msk [vmem:[#allocation2 + $0xd8] sm:$0xff] %vm327_vm1, %v1831_v28  ;;  %356 = vst.msk [vmem:[#allocation2 + $0xe0] sm:$0xff] %vm327_vm1, %v1834_v29  ;;  %v1990_v61 = vld [vmem:[%s2160_s27 + $0xb8] sm:$0xff]   ;;  %v2231_v62 = vld [vmem:[%s2211_s5] sm:$0xff]   ;;  %v1811_v0 = vunpack.c.h.bf16 %v1975_v43  ;;  %v1814_v1 = vunpack.c.l.bf16 %v1976_v49  ;;  %v1859_v2 = vunpack.c.h.bf16 %v1987_v44  ;;  %v1862_v3 = vunpack.c.l.bf16 %v1988_v50 }
  0x1c   : > { %357 = vst.msk [vmem:[#allocation2 + $0xe8] sm:$0xff] %vm327_vm1, %v1835_v33  ;;  %358 = vst.msk [vmem:[#allocation2 + $0xf0] sm:$0xff] %vm327_vm1, %v1838_v34  ;;  %v520_v63 = vld [vmem:[#allocation2] sm:$0xff]  ;;  %v521_v4 = vld [vmem:[#allocation2 + $0x8] sm:$0xff]  ;;  %v1815_v7 = vunpack.c.h.bf16 %v1976_v49  ;;  %v1818_v8 = vunpack.c.l.bf16 %v1977_v55  ;;  %v1863_v9 = vunpack.c.h.bf16 %v1988_v50  ;;  %v1866_v10 = vunpack.c.l.bf16 %v1989_v56 }
  0x1d   : > { %359 = vst.msk [vmem:[#allocation2 + $0xf8] sm:$0xff] %vm327_vm1, %v1839_v35  ;;  %360 = vst.msk [vmem:[#allocation2 + $0x100] sm:$0xff] %vm327_vm1, %v1842_v36  ;;  %v522_v5 = vld [vmem:[#allocation2 + $0x10] sm:$0xff]  ;;  %v523_v6 = vld [vmem:[#allocation2 + $0x18] sm:$0xff]  ;;  %v1819_v14 = vunpack.c.h.bf16 %v1977_v55  ;;  %v1867_v15 = vunpack.c.h.bf16 %v1989_v56  ;;  %v1870_v16 = vunpack.c.l.bf16 %v1990_v61  ;;  %v1871_v17 = vunpack.c.h.bf16 %v1990_v61 }
  0x1e   : > { %337 = vst.msk [vmem:[#allocation2 + $0x48] sm:$0xff] %vm327_vm1, %v1795_v39  ;;  %338 = vst.msk [vmem:[#allocation2 + $0x50] sm:$0xff] %vm327_vm1, %v1798_v40  ;;  %v524_v11 = vld [vmem:[#allocation2 + $0x20] sm:$0xff]  ;;  %v525_v12 = vld [vmem:[#allocation2 + $0x28] sm:$0xff]  ;;  %v1874_v22 = vunpack.c.l.bf16 %v2231_v62 }
  0x1f   : > { %361 = vst.msk [vmem:[#allocation2 + $0x108] sm:$0xff] %vm327_vm1, %v1843_v41  ;;  %362 = vst.msk [vmem:[#allocation2 + $0x110] sm:$0xff] %vm327_vm1, %v1846_v42  ;;  %v568_v13 = vld [vmem:[#allocation2 + $0x1] sm:$0xff]  ;;  %v569_v18 = vld [vmem:[#allocation2 + $0x9] sm:$0xff] }
  0x20   : > { %339 = vst.msk [vmem:[#allocation2 + $0x58] sm:$0xff] %vm327_vm1, %v1799_v45  ;;  %340 = vst.msk [vmem:[#allocation2 + $0x60] sm:$0xff] %vm327_vm1, %v1802_v46  ;;  %v570_v19 = vld [vmem:[#allocation2 + $0x11] sm:$0xff]  ;;  %v571_v20 = vld [vmem:[#allocation2 + $0x19] sm:$0xff]  ;;  %v616_v21 = vmax.f32 %v520_v63, %v568_v13  ;;  %v617_v25 = vmax.f32 %v521_v4, %v569_v18 }
  0x21   : > { %363 = vst.msk [vmem:[#allocation2 + $0x118] sm:$0xff] %vm327_vm1, %v1847_v47  ;;  %364 = vst.msk [vmem:[#allocation2 + $0x120] sm:$0xff] %vm327_vm1, %v1850_v48  ;;  %v572_v23 = vld [vmem:[#allocation2 + $0x21] sm:$0xff]  ;;  %v573_v24 = vld [vmem:[#allocation2 + $0x29] sm:$0xff]  ;;  %v618_v26 = vmax.f32 %v522_v5, %v570_v19  ;;  %v619_v27 = vmax.f32 %v523_v6, %v571_v20 }
  0x22   : > { %341 = vst.msk [vmem:[#allocation2 + $0x68] sm:$0xff] %vm327_vm1, %v1803_v51  ;;  %342 = vst.msk [vmem:[#allocation2 + $0x70] sm:$0xff] %vm327_vm1, %v1806_v52  ;;  %v620_v28 = vmax.f32 %v524_v11, %v572_v23  ;;  %v621_v29 = vmax.f32 %v525_v12, %v573_v24  ;;  %v664_v30 = vld [vmem:[#allocation2 + $0x2] sm:$0xff]  ;;  %v665_v31 = vld [vmem:[#allocation2 + $0xa] sm:$0xff] }
  0x23   : > { %365 = vst.msk [vmem:[#allocation2 + $0x128] sm:$0xff] %vm327_vm1, %v1851_v53  ;;  %366 = vst.msk [vmem:[#allocation2 + $0x130] sm:$0xff] %vm327_vm1, %v1854_v54  ;;  %v666_v32 = vld [vmem:[#allocation2 + $0x12] sm:$0xff]  ;;  %v667_v33 = vld [vmem:[#allocation2 + $0x1a] sm:$0xff]  ;;  %v712_v35 = vmax.f32 %v616_v21, %v664_v30  ;;  %v713_v36 = vmax.f32 %v617_v25, %v665_v31 }
  0x24   : > { %343 = vst.msk [vmem:[#allocation2 + $0x78] sm:$0xff] %vm327_vm1, %v1807_v57  ;;  %344 = vst.msk [vmem:[#allocation2 + $0x80] sm:$0xff] %vm327_vm1, %v1810_v58  ;;  %v668_v34 = vld [vmem:[#allocation2 + $0x22] sm:$0xff]  ;;  %v526_v37 = vld [vmem:[#allocation2 + $0x30] sm:$0xff]  ;;  %v714_v40 = vmax.f32 %v618_v26, %v666_v32  ;;  %v715_v41 = vmax.f32 %v619_v27, %v667_v33 }
  0x25   : > { %367 = vst.msk [vmem:[#allocation2 + $0x138] sm:$0xff] %vm327_vm1, %v1855_v59  ;;  %368 = vst.msk [vmem:[#allocation2 + $0x140] sm:$0xff] %vm327_vm1, %v1858_v60  ;;  %v574_v38 = vld [vmem:[#allocation2 + $0x31] sm:$0xff]  ;;  %v716_v42 = vmax.f32 %v620_v28, %v668_v34  ;;  %v762_v45 = vmax.f32 %v712_v35, %v666_v32  ;;  %v811_v47 = vld [vmem:[#allocation2 + $0x1b] sm:$0xff]  ;;  %v763_v49 = vmax.f32 %v713_v36, %v667_v33 }
  0x26   : > { %345 = vst.msk [vmem:[#allocation2 + $0x88] sm:$0xff] %vm327_vm1, %v1811_v0  ;;  %346 = vst.msk [vmem:[#allocation2 + $0x90] sm:$0xff] %vm327_vm1, %v1814_v1  ;;  %v669_v39 = vld [vmem:[#allocation2 + $0x2a] sm:$0xff]  ;;  %v670_v43 = vld [vmem:[#allocation2 + $0x32] sm:$0xff]  ;;  %v764_v50 = vmax.f32 %v714_v40, %v668_v34  ;;  %v622_v59 = vmax.f32 %v526_v37, %v574_v38 }
  0x27   : > { %369 = vst.msk [vmem:[#allocation2 + $0x148] sm:$0xff] %vm327_vm1, %v1859_v2  ;;  %370 = vst.msk [vmem:[#allocation2 + $0x150] sm:$0xff] %vm327_vm1, %v1862_v3  ;;  %v717_v44 = vmax.f32 %v621_v29, %v669_v39  ;;  %v810_v46 = vld [vmem:[#allocation2 + $0x13] sm:$0xff]  ;;  %v765_v51 = vmax.f32 %v715_v41, %v669_v39  ;;  %v812_v52 = vld [vmem:[#allocation2 + $0x23] sm:$0xff]  ;;  %v766_v60 = vmax.f32 %v716_v42, %v670_v43 }
  0x28   : > { %347 = vst.msk [vmem:[#allocation2 + $0x98] sm:$0xff] %vm327_vm1, %v1815_v7  ;;  %348 = vst.msk [vmem:[#allocation2 + $0xa0] sm:$0xff] %vm327_vm1, %v1818_v8  ;;  %v2255_v48 = vld [vmem:[#allocation2 + $0x3a] sm:$0xff]  ;;  %v813_v53 = vld [vmem:[#allocation2 + $0x2b] sm:$0xff]  ;;  %v858_v54 = vmax.f32 %v762_v45, %v810_v46  ;;  %v859_v61 = vmax.f32 %v763_v49, %v811_v47  ;;  %v2262_v5 = vmax.f32 %v764_v50, %v812_v52 }
  0x29   : > { %371 = vst.msk [vmem:[#allocation2 + $0x158] sm:$0xff] %vm327_vm1, %v1863_v9  ;;  %372 = vst.msk [vmem:[#allocation2 + $0x160] sm:$0xff] %vm327_vm1, %v1866_v10  ;;  %v906_v55 = vld [vmem:[#allocation2 + $0x14] sm:$0xff]  ;;  %v907_v56 = vld [vmem:[#allocation2 + $0x1c] sm:$0xff]  ;;  %v767_v0 = vmax.f32 %v717_v44, %v2255_v48  ;;  %v2264_v6 = vmax.f32 %v765_v51, %v813_v53 }
  0x2a   : > { %349 = vst.msk [vmem:[#allocation2 + $0xa8] sm:$0xff] %vm327_vm1, %v1819_v14  ;;  %373 = vst.msk [vmem:[#allocation2 + $0x168] sm:$0xff] %vm327_vm1, %v1867_v15  ;;  %v527_v57 = vld [vmem:[#allocation2 + $0x38] sm:$0xff]  ;;  %v2257_v63 = vld [vmem:[#allocation2 + $0x24] sm:$0xff]  ;;  %v954_v4 = vmax.f32 %v858_v54, %v906_v55  ;;  %v955_v7 = vmax.f32 %v859_v61, %v907_v56 }
  0x2b   : > { %374 = vst.msk [vmem:[#allocation2 + $0x170] sm:$0xff] %vm327_vm1, %v1870_v16  ;;  %375 = vst.msk [vmem:[#allocation2 + $0x178] sm:$0xff] %vm327_vm1, %v1871_v17  ;;  %v575_v58 = vld [vmem:[#allocation2 + $0x39] sm:$0xff]  ;;  %v2260_v3 = vld [vmem:[#allocation2 + $0x2c] sm:$0xff]  ;;  %v1875_v16 = vunpack.c.h.bf16 %v2231_v62  ;;  %v956_v30 = vmax.f32 %v2262_v5, %v2257_v63 }
  0x2c   : > { %472 = vst.msk [vmem:[#allocation2 + $0x180] sm:$0xff] %vm327_vm1, %v1874_v22  ;;  %v814_v1 = vld [vmem:[#allocation2 + $0x33] sm:$0xff]  ;;  %v815_v2 = vld [vmem:[#allocation2 + $0x3b] sm:$0xff]  ;;  %v1052_v8 = vld [vmem:[#allocation2 + $0x25] sm:$0xff]  ;;  %v1004_v11 = vmax.f32 %v954_v4, %v2257_v63  ;;  %v623_v17 = vmax.f32 %v527_v57, %v575_v58  ;;  %v1005_v18 = vmax.f32 %v955_v7, %v2260_v3  ;;  %v2269_v22 = vmax.f32 %v622_v59, %v670_v43 }
  0x2d   : > { %v1053_v9 = vld [vmem:[#allocation2 + $0x2d] sm:$0xff]  ;;  %v543_v14 = vld [vmem:[#allocation2 + $0xb8] sm:$0xff]  ;;  %v544_v15 = vld [vmem:[#allocation2 + $0xc0] sm:$0xff]  ;;  %v2271_v23 = vmax.f32 %v766_v60, %v814_v1  ;;  %v2273_v24 = vmax.f32 %v767_v0, %v815_v2  ;;  %473 = vst.msk [vmem:[#allocation2 + $0x188] sm:$0xff] %vm327_vm1, %v1875_v16  ;;  %v957_v31 = vmax.f32 %v2264_v6, %v2260_v3 }
  0x2e   : > { %v1148_v10 = vld [vmem:[#allocation2 + $0x26] sm:$0xff]  ;;  %v1149_v12 = vld [vmem:[#allocation2 + $0x2e] sm:$0xff]  ;;  %v547_v21 = vld [vmem:[#allocation2 + $0xd8] sm:$0xff]  ;;  %v1100_v25 = vmax.f32 %v1004_v11, %v1052_v8  ;;  %v1101_v32 = vmax.f32 %v1005_v18, %v1053_v9  ;;  %v2289_v52 = vmax.f32 %v623_v17, %v2255_v48 }
  0x2f   : > { %v542_v13 = vld [vmem:[#allocation2 + $0xb0] sm:$0xff]  ;;  %v545_v19 = vld [vmem:[#allocation2 + $0xc8] sm:$0xff]  ;;  %v548_v26 = vld [vmem:[#allocation2 + $0xe0] sm:$0xff] }
  0x30   : > { %v546_v20 = vld [vmem:[#allocation2 + $0xd0] sm:$0xff]  ;;  %v549_v27 = vld [vmem:[#allocation2 + $0xe8] sm:$0xff]  ;;  %v2278_v62 = vld [vmem:[#allocation2 + $0x3c] sm:$0xff]  ;;  %v1196_v37 = vmax.f32 %v1100_v25, %v1148_v10  ;;  %v1197_v44 = vmax.f32 %v1101_v32, %v1149_v12 }
  0x31   : > { %v590_v28 = vld [vmem:[#allocation2 + $0xb1] sm:$0xff]  ;;  %v591_v33 = vld [vmem:[#allocation2 + $0xb9] sm:$0xff]  ;;  %v592_v34 = vld [vmem:[#allocation2 + $0xc1] sm:$0xff]  ;;  %v959_v54 = vmax.f32 %v2273_v24, %v2278_v62  ;;  %v2301_v9 = vmax.f32 %v957_v31, %v2278_v62 }
  0x32   : > { %v2276_v29 = vld [vmem:[#allocation2 + $0x34] sm:$0xff]  ;;  %v593_v35 = vld [vmem:[#allocation2 + $0xc9] sm:$0xff]  ;;  %v638_v36 = vmax.f32 %v542_v13, %v590_v28  ;;  %v596_v40 = vld [vmem:[#allocation2 + $0xe1] sm:$0xff]  ;;  %v639_v41 = vmax.f32 %v543_v14, %v591_v33  ;;  %v640_v42 = vmax.f32 %v544_v15, %v592_v34  ;;  %v1244_v59 = vpack.c.bf16 %v1197_v44, %v1196_v37 }
  0x33   : > { %v594_v38 = vld [vmem:[#allocation2 + $0xd1] sm:$0xff]  ;;  %v595_v39 = vld [vmem:[#allocation2 + $0xd9] sm:$0xff]  ;;  %v641_v43 = vmax.f32 %v545_v19, %v593_v35  ;;  %v597_v46 = vld [vmem:[#allocation2 + $0xe9] sm:$0xff]  ;;  %v644_v51 = vmax.f32 %v548_v26, %v596_v40  ;;  %v958_v53 = vmax.f32 %v2271_v23, %v2276_v29  ;;  %v2296_v48 = vmax.f32 %v956_v30, %v2276_v29 }
  0x34   : > { %v2284_v45 = vld [vmem:[#allocation2 + $0xf0] sm:$0xff]  ;;  %v642_v49 = vmax.f32 %v546_v20, %v594_v38  ;;  %v643_v50 = vmax.f32 %v547_v21, %v595_v39  ;;  %v645_v55 = vmax.f32 %v549_v27, %v597_v46  ;;  %v687_v57 = vld [vmem:[#allocation2 + $0xba] sm:$0xff]  ;;  %v688_v58 = vld [vmem:[#allocation2 + $0xc2] sm:$0xff]  ;;  %2041 = vmatprep.mubr.msk.bf16.mxu0 %vm327_vm1, %v1244_v59 }
  0x35   : > { %v2286_v47 = vld [vmem:[#allocation2 + $0xf1] sm:$0xff]  ;;  %v691_v63 = vld [vmem:[#allocation2 + $0xda] sm:$0xff]  ;;  %v735_v1 = vmax.f32 %v639_v41, %v687_v57  ;;  %v736_v2 = vmax.f32 %v640_v42, %v688_v58  ;;  %v692_v3 = vld [vmem:[#allocation2 + $0xe2] sm:$0xff] }
  0x36   : > { %v686_v56 = vld [vmem:[#allocation2 + $0xb2] sm:$0xff]  ;;  %v689_v60 = vld [vmem:[#allocation2 + $0xca] sm:$0xff]  ;;  %v739_v8 = vmax.f32 %v643_v50, %v691_v63  ;;  %v2304_v10 = vld [vmem:[#allocation2 + $0xfa] sm:$0xff]  ;;  %v740_v11 = vmax.f32 %v644_v51, %v692_v3  ;;  %v646_v18 = vmax.f32 %v2284_v45, %v2286_v47 }
  0x37   : > { %v690_v61 = vld [vmem:[#allocation2 + $0xd2] sm:$0xff]  ;;  %v734_v0 = vmax.f32 %v638_v36, %v686_v56  ;;  %v693_v4 = vld [vmem:[#allocation2 + $0xea] sm:$0xff]  ;;  %v737_v6 = vmax.f32 %v641_v43, %v689_v60  ;;  %v785_v19 = vmax.f32 %v735_v1, %v689_v60  ;;  %v835_v26 = vld [vmem:[#allocation2 + $0xdb] sm:$0xff] }
  0x38   : > { %v2298_v5 = vld [vmem:[#allocation2 + $0xf2] sm:$0xff]  ;;  %v738_v7 = vmax.f32 %v642_v49, %v690_v61  ;;  %v741_v12 = vmax.f32 %v645_v55, %v693_v4  ;;  %v832_v14 = vld [vmem:[#allocation2 + $0xc3] sm:$0xff]  ;;  %v786_v20 = vmax.f32 %v736_v2, %v690_v61  ;;  %v789_v30 = vmax.f32 %v739_v8, %v693_v4  ;;  %v839_v35 = vld [vmem:[#allocation2 + $0xfb] sm:$0xff] }
  0x39   : > { %v784_v13 = vmax.f32 %v734_v0, %v688_v58  ;;  %v833_v15 = vld [vmem:[#allocation2 + $0xcb] sm:$0xff]  ;;  %v2306_v16 = vld [vmem:[#allocation2 + $0xf8] sm:$0xff]  ;;  %v787_v21 = vmax.f32 %v737_v6, %v691_v63  ;;  %v836_v27 = vld [vmem:[#allocation2 + $0xe3] sm:$0xff]  ;;  %v790_v31 = vmax.f32 %v740_v11, %v2298_v5 }
  0x3a   : > { %v2308_v17 = vld [vmem:[#allocation2 + $0xf9] sm:$0xff]  ;;  %v788_v28 = vmax.f32 %v738_v7, %v692_v3  ;;  %v791_v32 = vmax.f32 %v741_v12, %v2304_v10  ;;  %v837_v33 = vld [vmem:[#allocation2 + $0xeb] sm:$0xff]  ;;  %v881_v37 = vmax.f32 %v785_v19, %v833_v15 }
  0x3b   : > { %v834_v25 = vld [vmem:[#allocation2 + $0xd3] sm:$0xff]  ;;  %v880_v36 = vmax.f32 %v784_v13, %v832_v14  ;;  %v883_v39 = vmax.f32 %v787_v21, %v835_v26  ;;  %v928_v40 = vld [vmem:[#allocation2 + $0xc4] sm:$0xff]  ;;  %v885_v44 = vmax.f32 %v789_v30, %v837_v33  ;;  %v931_v47 = vld [vmem:[#allocation2 + $0xdc] sm:$0xff]  ;;  %v647_v61 = vmax.f32 %v2306_v16, %v2308_v17 }
  0x3c   : > { %v838_v34 = vld [vmem:[#allocation2 + $0xf3] sm:$0xff]  ;;  %v882_v38 = vmax.f32 %v786_v20, %v834_v25  ;;  %v884_v43 = vmax.f32 %v788_v28, %v836_v27  ;;  %v2314_v46 = vmax.f32 %v791_v32, %v839_v35  ;;  %v932_v49 = vld [vmem:[#allocation2 + $0xe4] sm:$0xff]  ;;  %v935_v55 = vld [vmem:[#allocation2 + $0xfc] sm:$0xff]  ;;  %v2325_v26 = vmax.f32 %v646_v18, %v2298_v5 }
  0x3d   : > { %v929_v41 = vld [vmem:[#allocation2 + $0xcc] sm:$0xff]  ;;  %v930_v42 = vld [vmem:[#allocation2 + $0xd4] sm:$0xff]  ;;  %v886_v45 = vmax.f32 %v790_v31, %v838_v34  ;;  %v976_v56 = vmax.f32 %v880_v36, %v928_v40  ;;  %v979_v59 = vmax.f32 %v883_v39, %v931_v47  ;;  %v1055_v13 = vld [vmem:[#allocation2 + $0x3d] sm:$0xff] }
  0x3e   : > { %v933_v50 = vld [vmem:[#allocation2 + $0xec] sm:$0xff]  ;;  %v934_v51 = vld [vmem:[#allocation2 + $0xf4] sm:$0xff]  ;;  %v977_v57 = vmax.f32 %v881_v37, %v929_v41  ;;  %v978_v58 = vmax.f32 %v882_v38, %v930_v42  ;;  %v980_v63 = vmax.f32 %v884_v43, %v932_v49  ;;  %v1103_v16 = vmax.f32 %v2301_v9, %v1055_v13  ;;  %v1151_v17 = vld [vmem:[#allocation2 + $0x3e] sm:$0xff] }
  0x3f   : > { %v1076_v60 = vld [vmem:[#allocation2 + $0xe5] sm:$0xff]  ;;  %v981_v0 = vmax.f32 %v885_v44, %v933_v50  ;;  %v982_v1 = vmax.f32 %v886_v45, %v934_v51  ;;  %v1077_v2 = vld [vmem:[#allocation2 + $0xed] sm:$0xff]  ;;  %v2318_v6 = vmax.f32 %v976_v56, %v930_v42  ;;  %v1029_v11 = vmax.f32 %v979_v59, %v933_v50  ;;  %v1054_v12 = vld [vmem:[#allocation2 + $0x35] sm:$0xff] }
  0x40   : > { %v1172_v3 = vld [vmem:[#allocation2 + $0xe6] sm:$0xff]  ;;  %v1173_v4 = vld [vmem:[#allocation2 + $0xee] sm:$0xff]  ;;  %v2320_v7 = vmax.f32 %v977_v57, %v931_v47  ;;  %v1028_v8 = vmax.f32 %v978_v58, %v932_v49  ;;  %v1150_v14 = vld [vmem:[#allocation2 + $0x36] sm:$0xff]  ;;  %v1030_v15 = vmax.f32 %v980_v63, %v934_v51  ;;  %v1102_v20 = vmax.f32 %v2296_v48, %v1054_v12 }
  0x41   : > { %v1031_v19 = vmax.f32 %v981_v0, %v935_v55  ;;  %v1078_v21 = vld [vmem:[#allocation2 + $0xf5] sm:$0xff]  ;;  %v1079_v25 = vld [vmem:[#allocation2 + $0xfd] sm:$0xff]  ;;  %v983_v27 = vmax.f32 %v2314_v46, %v935_v55  ;;  %v1125_v30 = vmax.f32 %v1029_v11, %v1077_v2  ;;  %v1199_v35 = vmax.f32 %v1103_v16, %v1151_v17  ;;  %v2330_v37 = vld [vmem:[#allocation2 + $0x4c] sm:$0xff] }
  0x42   : > { %v1124_v28 = vmax.f32 %v1028_v8, %v1076_v60  ;;  %v1174_v31 = vld [vmem:[#allocation2 + $0xf6] sm:$0xff]  ;;  %v1175_v32 = vld [vmem:[#allocation2 + $0xfe] sm:$0xff]  ;;  %v1198_v34 = vmax.f32 %v1102_v20, %v1150_v14  ;;  %v1126_v36 = vmax.f32 %v1030_v15, %v1078_v21  ;;  %v1057_v38 = vld [vmem:[#allocation2 + $0x4d] sm:$0xff]  ;;  %v1009_v18 = vmax.f32 %v959_v54, %v2330_v37 }
  0x43   : > { %v2328_v33 = vld [vmem:[#allocation2 + $0x44] sm:$0xff]  ;;  %v1127_v48 = vmax.f32 %v1031_v19, %v1079_v25  ;;  %v1221_v40 = vmax.f32 %v1125_v30, %v1173_v4  ;;  %v1153_v42 = vld [vmem:[#allocation2 + $0x4e] sm:$0xff]  ;;  %v743_v56 = vmax.f32 %v647_v61, %v2304_v10  ;;  %v2358_v19 = vld [vmem:[#allocation2 + $0x5c] sm:$0xff] }
  0x44   : > { %v1056_v9 = vld [vmem:[#allocation2 + $0x45] sm:$0xff]  ;;  %v1220_v39 = vmax.f32 %v1124_v28, %v1172_v3  ;;  %v1008_v5 = vmax.f32 %v958_v53, %v2328_v33  ;;  %v1245_v44 = vpack.c.bf16 %v1199_v35, %v1198_v34  ;;  %v1222_v45 = vmax.f32 %v1126_v36, %v1174_v31  ;;  %v1081_v51 = vld [vmem:[#allocation2 + $0x10d] sm:$0xff]  ;;  %v1059_v28 = vld [vmem:[#allocation2 + $0x5d] sm:$0xff] }
  0x45   : > { %v1152_v41 = vld [vmem:[#allocation2 + $0x46] sm:$0xff]  ;;  %v1223_v46 = vmax.f32 %v1127_v48, %v1175_v32  ;;  %v1105_v53 = vmax.f32 %v1009_v18, %v1057_v38  ;;  %v1177_v62 = vld [vmem:[#allocation2 + $0x10e] sm:$0xff]  ;;  %v1154_v30 = vld [vmem:[#allocation2 + $0x56] sm:$0xff] }
  0x46   : > { %v2340_v43 = vld [vmem:[#allocation2 + $0x104] sm:$0xff]  ;;  %v2342_v47 = vld [vmem:[#allocation2 + $0x10c] sm:$0xff]  ;;  %v1256_v23 = vpack.c.bf16 %v1221_v40, %v1220_v39  ;;  %v1104_v29 = vmax.f32 %v1008_v5, %v1056_v9  ;;  %2042 = vmatmul.mubr.msk.bf16.vlgmr.msra.gmra.mrb[0].mxu0 %vm327_vm1, %v1245_v44  ;;  %v2352_v61 = vld [vmem:[#allocation2 + $0x54] sm:$0xff] }
  0x47   : > { %v1032_v49 = vmax.f32 %v982_v1, %v2340_v43  ;;  %v1080_v50 = vld [vmem:[#allocation2 + $0x105] sm:$0xff]  ;;  %v1033_v55 = vmax.f32 %v983_v27, %v2342_v47  ;;  %v1257_v57 = vpack.c.bf16 %v1223_v46, %v1222_v45  ;;  %v1201_v2 = vmax.f32 %v1105_v53, %v1153_v42  ;;  %v1058_v27 = vld [vmem:[#allocation2 + $0x55] sm:$0xff]  ;;  %v1083_v44 = vld [vmem:[#allocation2 + $0x11d] sm:$0xff] }
  0x48   : > { %v1176_v24 = vld [vmem:[#allocation2 + $0x106] sm:$0xff]  ;;  %2065 = vmatprep.mubr.msk.bf16.mxu1 %vm327_vm1, %v1256_v23  ;;  %v1200_v1 = vmax.f32 %v1104_v29, %v1152_v41  ;;  %v2367_v35 = vld [vmem:[#allocation2 + $0x114] sm:$0xff]  ;;  %v2371_v48 = vld [vmem:[#allocation2 + $0x11c] sm:$0xff] }
  0x49   : > { %v672_v54 = vld [vmem:[#allocation2 + $0x42] sm:$0xff]  ;;  %v1128_v58 = vmax.f32 %v1032_v49, %v1080_v50  ;;  %v673_v59 = vld [vmem:[#allocation2 + $0x4a] sm:$0xff]  ;;  %v1129_v3 = vmax.f32 %v1033_v55, %v1081_v51  ;;  %2066 = vmatmul.mubr.msk.bf16.vlgmr.msra.gmra.mrb[0].mxu1 %vm327_vm1, %v1257_v57  ;;  %v1082_v18 = vld [vmem:[#allocation2 + $0x115] sm:$0xff] }
  0x4a   : > { %v768_v60 = vmax.f32 %v2269_v22, %v672_v54  ;;  %v816_v63 = vld [vmem:[#allocation2 + $0x43] sm:$0xff]  ;;  %v817_v0 = vld [vmem:[#allocation2 + $0x4b] sm:$0xff]  ;;  %v769_v4 = vmax.f32 %v2289_v52, %v673_v59  ;;  %v1246_v11 = vpack.c.bf16 %v1201_v2, %v1200_v1  ;;  %v1178_v45 = vld [vmem:[#allocation2 + $0x116] sm:$0xff] }
  0x4b   : > { %v1224_v8 = vmax.f32 %v1128_v58, %v1176_v24  ;;  %v1225_v12 = vmax.f32 %v1129_v3, %v1177_v62  ;;  %v2354_v14 = vld [vmem:[#allocation2 + $0x102] sm:$0xff]  ;;  %v2356_v22 = vld [vmem:[#allocation2 + $0x10a] sm:$0xff]  ;;  %v674_v49 = vld [vmem:[#allocation2 + $0x52] sm:$0xff] }
  0x4c   : > { %v864_v10 = vmax.f32 %v768_v60, %v816_v63  ;;  %v865_v13 = vmax.f32 %v769_v4, %v817_v0  ;;  %v840_v15 = vld [vmem:[#allocation2 + $0x103] sm:$0xff]  ;;  %v792_v52 = vmax.f32 %v2325_v26, %v2354_v14  ;;  %v793_v16 = vmax.f32 %v743_v56, %v2356_v22  ;;  %v841_v17 = vld [vmem:[#allocation2 + $0x10b] sm:$0xff]  ;;  %2045 = vmatprep.mubr.msk.bf16.mxu0 %vm327_vm1, %v1246_v11  ;;  %v675_v53 = vld [vmem:[#allocation2 + $0x5a] sm:$0xff] }
  0x4d   : > { %v1258_v21 = vpack.c.bf16 %v1225_v12, %v1224_v8  ;;  %v529_v36 = vld [vmem:[#allocation2 + $0x48] sm:$0xff]  ;;  %v1155_v39 = vld [vmem:[#allocation2 + $0x5e] sm:$0xff]  ;;  %v818_v24 = vld [vmem:[#allocation2 + $0x53] sm:$0xff] }
  0x4e   : > { %v960_v20 = vmax.f32 %v864_v10, %v2328_v33  ;;  %v961_v25 = vmax.f32 %v865_v13, %v2330_v37  ;;  %v888_v32 = vmax.f32 %v792_v52, %v840_v15  ;;  %v889_v34 = vmax.f32 %v793_v16, %v841_v17  ;;  %v528_v33 = vld [vmem:[#allocation2 + $0x40] sm:$0xff]  ;;  %v577_v38 = vld [vmem:[#allocation2 + $0x49] sm:$0xff]  ;;  %v2377_v10 = vld [vmem:[#allocation2 + $0x112] sm:$0xff] }
  0x4f   : > { %2069 = vmatprep.mubr.msk.bf16.mxu1 %vm327_vm1, %v1258_v21  ;;  %v576_v9 = vld [vmem:[#allocation2 + $0x41] sm:$0xff]  ;;  %v625_v46 = vmax.f32 %v529_v36, %v577_v38  ;;  %v601_v1 = vld [vmem:[#allocation2 + $0x109] sm:$0xff]  ;;  %v842_v17 = vld [vmem:[#allocation2 + $0x113] sm:$0xff] }
  0x50   : > { %v1010_v31 = vmax.f32 %v960_v20, %v2352_v61  ;;  %v1011_v26 = vmax.f32 %v961_v25, %v2358_v19  ;;  %v984_v40 = vmax.f32 %v888_v32, %v2340_v43  ;;  %v985_v5 = vmax.f32 %v889_v34, %v2342_v47  ;;  %v1179_v29 = vld [vmem:[#allocation2 + $0x11e] sm:$0xff]  ;;  %v553_v47 = vld [vmem:[#allocation2 + $0x108] sm:$0xff]  ;;  %v530_v25 = vld [vmem:[#allocation2 + $0x50] sm:$0xff] }
  0x51   : > { %v624_v41 = vmax.f32 %v528_v33, %v576_v9  ;;  %v721_v43 = vmax.f32 %v625_v46, %v673_v59  ;;  %v552_v56 = vld [vmem:[#allocation2 + $0x100] sm:$0xff]  ;;  %v649_v8 = vmax.f32 %v553_v47, %v601_v1  ;;  %v2381_v59 = vld [vmem:[#allocation2 + $0x6c] sm:$0xff] }
  0x52   : > { %v1106_v37 = vmax.f32 %v1010_v31, %v1058_v27  ;;  %v1107_v42 = vmax.f32 %v1011_v26, %v1059_v28  ;;  %v1034_v51 = vmax.f32 %v984_v40, %v2367_v35  ;;  %v1035_v23 = vmax.f32 %v985_v5, %v2371_v48  ;;  %v600_v57 = vld [vmem:[#allocation2 + $0x101] sm:$0xff]  ;;  %v531_v31 = vld [vmem:[#allocation2 + $0x58] sm:$0xff]  ;;  %v2396_v5 = vld [vmem:[#allocation2 + $0x6a] sm:$0xff] }
  0x53   : > { %v720_v55 = vmax.f32 %v624_v41, %v672_v54  ;;  %v819_v0 = vld [vmem:[#allocation2 + $0x5b] sm:$0xff]  ;;  %v648_v2 = vmax.f32 %v552_v56, %v600_v57  ;;  %v771_v4 = vmax.f32 %v721_v43, %v675_v53  ;;  %v2379_v13 = vld [vmem:[#allocation2 + $0x64] sm:$0xff]  ;;  %v745_v16 = vmax.f32 %v649_v8, %v2356_v22  ;;  %v578_v32 = vld [vmem:[#allocation2 + $0x51] sm:$0xff] }
  0x54   : > { %v1202_v50 = vmax.f32 %v1106_v37, %v1154_v30  ;;  %v1203_v62 = vmax.f32 %v1107_v42, %v1155_v39  ;;  %v1130_v58 = vmax.f32 %v1034_v51, %v1082_v18  ;;  %v1131_v60 = vmax.f32 %v1035_v23, %v1083_v44  ;;  %v2383_v15 = vld [vmem:[#allocation2 + $0x11a] sm:$0xff]  ;;  %v1060_v36 = vld [vmem:[#allocation2 + $0x65] sm:$0xff]  ;;  %v1157_v39 = vld [vmem:[#allocation2 + $0x6e] sm:$0xff] }
  0x55   : > { %v770_v63 = vmax.f32 %v720_v55, %v674_v49  ;;  %v744_v20 = vmax.f32 %v648_v2, %v2354_v14  ;;  %v867_v52 = vmax.f32 %v771_v4, %v819_v0  ;;  %v843_v21 = vld [vmem:[#allocation2 + $0x11b] sm:$0xff]  ;;  %v1061_v14 = vld [vmem:[#allocation2 + $0x6d] sm:$0xff]  ;;  %v795_v9 = vmax.f32 %v745_v16, %v2383_v15  ;;  %v2399_v41 = vld [vmem:[#allocation2 + $0x124] sm:$0xff] }
  0x56   : > { %v1247_v3 = vpack.c.bf16 %v1203_v62, %v1202_v50  ;;  %v1226_v11 = vmax.f32 %v1130_v58, %v1178_v45  ;;  %v1227_v12 = vmax.f32 %v1131_v60, %v1179_v29  ;;  %v579_v34 = vld [vmem:[#allocation2 + $0x59] sm:$0xff]  ;;  %v1156_v26 = vld [vmem:[#allocation2 + $0x66] sm:$0xff]  ;;  %v626_v38 = vmax.f32 %v530_v25, %v578_v32  ;;  %v554_v29 = vld [vmem:[#allocation2 + $0x110] sm:$0xff] }
  0x57   : > { %v866_v54 = vmax.f32 %v770_v63, %v818_v24  ;;  %v794_v30 = vmax.f32 %v744_v20, %v2377_v10  ;;  %v963_v33 = vmax.f32 %v867_v52, %v2358_v19  ;;  %v627_v22 = vmax.f32 %v531_v31, %v579_v34  ;;  %v2394_v40 = vld [vmem:[#allocation2 + $0x62] sm:$0xff]  ;;  %v2401_v42 = vld [vmem:[#allocation2 + $0x12c] sm:$0xff]  ;;  %v555_v55 = vld [vmem:[#allocation2 + $0x118] sm:$0xff] }
  0x58   : > { %2046 = vmatmul.mubr.msk.bf16.gmra.mrb[4].mxu0 %vm327_vm1, %v1247_v3  ;;  %v1259_v27 = vpack.c.bf16 %v1227_v12, %v1226_v11  ;;  %v891_v19 = vmax.f32 %v795_v9, %v843_v21  ;;  %v722_v44 = vmax.f32 %v626_v38, %v674_v49  ;;  %v820_v46 = vld [vmem:[#allocation2 + $0x63] sm:$0xff]  ;;  %v821_v23 = vld [vmem:[#allocation2 + $0x6b] sm:$0xff]  ;;  %v603_v58 = vld [vmem:[#allocation2 + $0x119] sm:$0xff] }
  0x59   : > { %v962_v28 = vmax.f32 %v866_v54, %v2352_v61  ;;  %v890_v61 = vmax.f32 %v794_v30, %v842_v17  ;;  %v1013_v18 = vmax.f32 %v963_v33, %v2381_v59  ;;  %v723_v45 = vmax.f32 %v627_v22, %v675_v53  ;;  %v1084_v43 = vld [vmem:[#allocation2 + $0x125] sm:$0xff]  ;;  %v602_v57 = vld [vmem:[#allocation2 + $0x111] sm:$0xff]  ;;  %v2415_v20 = vld [vmem:[#allocation2 + $0x7c] sm:$0xff] }
  0x5a   : > { %2070 = vmatmul.mubr.msk.bf16.gmra.mrb[4].mxu1 %vm327_vm1, %v1259_v27  ;;  %v987_v62 = vmax.f32 %v891_v19, %v2371_v48  ;;  %v772_v56 = vmax.f32 %v722_v44, %v2394_v40  ;;  %v1085_v53 = vld [vmem:[#allocation2 + $0x12d] sm:$0xff]  ;;  %v651_v1 = vmax.f32 %v555_v55, %v603_v58  ;;  %v2411_v11 = vld [vmem:[#allocation2 + $0x122] sm:$0xff] }
  0x5b   : > { %v1012_v37 = vmax.f32 %v962_v28, %v2379_v13  ;;  %v986_v51 = vmax.f32 %v890_v61, %v2367_v35  ;;  %v1109_v24 = vmax.f32 %v1013_v18, %v1061_v14  ;;  %v773_v47 = vmax.f32 %v723_v45, %v2396_v5  ;;  %v1180_v63 = vld [vmem:[#allocation2 + $0x126] sm:$0xff]  ;;  %v1181_v0 = vld [vmem:[#allocation2 + $0x12e] sm:$0xff]  ;;  %v1063_v14 = vld [vmem:[#allocation2 + $0x7d] sm:$0xff] }
  0x5c   : > { %v650_v35 = vmax.f32 %v554_v29, %v602_v57  ;;  %v1037_v3 = vmax.f32 %v987_v62, %v2401_v42  ;;  %v868_v4 = vmax.f32 %v772_v56, %v820_v46  ;;  %v2409_v8 = vld [vmem:[#allocation2 + $0x74] sm:$0xff]  ;;  %v2413_v12 = vld [vmem:[#allocation2 + $0x12a] sm:$0xff]  ;;  %v747_v16 = vmax.f32 %v651_v1, %v2383_v15  ;;  %v532_v31 = vld [vmem:[#allocation2 + $0x60] sm:$0xff] }
  0x5d   : > { %v1108_v50 = vmax.f32 %v1012_v37, %v1060_v36  ;;  %v1036_v49 = vmax.f32 %v986_v51, %v2399_v41  ;;  %v1205_v2 = vmax.f32 %v1109_v24, %v1157_v39  ;;  %v869_v48 = vmax.f32 %v773_v47, %v821_v23  ;;  %v844_v17 = vld [vmem:[#allocation2 + $0x123] sm:$0xff]  ;;  %v845_v21 = vld [vmem:[#allocation2 + $0x12b] sm:$0xff]  ;;  %v1062_v36 = vld [vmem:[#allocation2 + $0x75] sm:$0xff] }
  0x5e   : > { %v746_v52 = vmax.f32 %v650_v35, %v2377_v10  ;;  %v1133_v27 = vmax.f32 %v1037_v3, %v1085_v53  ;;  %v964_v28 = vmax.f32 %v868_v4, %v2379_v13  ;;  %v533_v32 = vld [vmem:[#allocation2 + $0x68] sm:$0xff]  ;;  %v797_v10 = vmax.f32 %v747_v16, %v2413_v12  ;;  %v1159_v37 = vld [vmem:[#allocation2 + $0x7e] sm:$0xff]  ;;  %v2426_v61 = vld [vmem:[#allocation2 + $0x72] sm:$0xff] }
  0x5f   : > { %v1204_v60 = vmax.f32 %v1108_v50, %v1156_v26  ;;  %v1132_v54 = vmax.f32 %v1036_v49, %v1084_v43  ;;  %v965_v30 = vmax.f32 %v869_v48, %v2381_v59  ;;  %v580_v34 = vld [vmem:[#allocation2 + $0x61] sm:$0xff]  ;;  %v581_v9 = vld [vmem:[#allocation2 + $0x69] sm:$0xff]  ;;  %v1158_v59 = vld [vmem:[#allocation2 + $0x76] sm:$0xff] }
  0x60   : > { %v796_v26 = vmax.f32 %v746_v52, %v2411_v11  ;;  %v628_v15 = vmax.f32 %v532_v31, %v580_v34  ;;  %v1229_v38 = vmax.f32 %v1133_v27, %v1181_v0  ;;  %v1014_v22 = vmax.f32 %v964_v28, %v2409_v8  ;;  %v2428_v44 = vld [vmem:[#allocation2 + $0x134] sm:$0xff]  ;;  %v2430_v45 = vld [vmem:[#allocation2 + $0x13c] sm:$0xff]  ;;  %v557_v58 = vld [vmem:[#allocation2 + $0x128] sm:$0xff] }
  0x61   : > { %v1248_v25 = vpack.c.bf16 %v1205_v2, %v1204_v60  ;;  %v1228_v33 = vmax.f32 %v1132_v54, %v1180_v63  ;;  %v1015_v13 = vmax.f32 %v965_v30, %v2415_v20  ;;  %v629_v39 = vmax.f32 %v533_v32, %v581_v9  ;;  %v2432_v46 = vld [vmem:[#allocation2 + $0x7a] sm:$0xff]  ;;  %v605_v49 = vld [vmem:[#allocation2 + $0x129] sm:$0xff]  ;;  %v2445_v54 = vld [vmem:[#allocation2 + $0x132] sm:$0xff] }
  0x62   : > { %v892_v18 = vmax.f32 %v796_v26, %v844_v17  ;;  %v893_v19 = vmax.f32 %v797_v10, %v845_v21  ;;  %v724_v50 = vmax.f32 %v628_v15, %v2394_v40  ;;  %v1110_v23 = vmax.f32 %v1014_v22, %v1062_v36  ;;  %v822_v24 = vld [vmem:[#allocation2 + $0x73] sm:$0xff]  ;;  %v823_v62 = vld [vmem:[#allocation2 + $0x7b] sm:$0xff]  ;;  %v2443_v4 = vld [vmem:[#allocation2 + $0x84] sm:$0xff] }
  0x63   : > { %2049 = vmatprep.mubr.msk.bf16.mxu0 %vm327_vm1, %v1248_v25  ;;  %v1260_v51 = vpack.c.bf16 %v1229_v38, %v1228_v33  ;;  %v1111_v29 = vmax.f32 %v1015_v13, %v1063_v14  ;;  %v725_v55 = vmax.f32 %v629_v39, %v2396_v5  ;;  %v556_v43 = vld [vmem:[#allocation2 + $0x120] sm:$0xff]  ;;  %v1086_v63 = vld [vmem:[#allocation2 + $0x135] sm:$0xff]  ;;  %v653_v48 = vmax.f32 %v557_v58, %v605_v49  ;;  %v2447_v17 = vld [vmem:[#allocation2 + $0x8c] sm:$0xff] }
  0x64   : > { %v988_v56 = vmax.f32 %v892_v18, %v2399_v41  ;;  %v989_v47 = vmax.f32 %v893_v19, %v2401_v42  ;;  %v774_v57 = vmax.f32 %v724_v50, %v2426_v61  ;;  %v604_v60 = vld [vmem:[#allocation2 + $0x121] sm:$0xff]  ;;  %v1206_v40 = vmax.f32 %v1110_v23, %v1158_v59  ;;  %v1182_v35 = vld [vmem:[#allocation2 + $0x136] sm:$0xff]  ;;  %v1065_v13 = vld [vmem:[#allocation2 + $0x8d] sm:$0xff] }
  0x65   : > { %2073 = vmatprep.mubr.msk.bf16.mxu1 %vm327_vm1, %v1260_v51  ;;  %v1207_v53 = vmax.f32 %v1111_v29, %v1159_v37  ;;  %v1087_v0 = vld [vmem:[#allocation2 + $0x13d] sm:$0xff]  ;;  %v775_v5 = vmax.f32 %v725_v55, %v2432_v46  ;;  %v652_v1 = vmax.f32 %v556_v43, %v604_v60  ;;  %v1064_v21 = vld [vmem:[#allocation2 + $0x85] sm:$0xff]  ;;  %v749_v32 = vmax.f32 %v653_v48, %v2413_v12  ;;  %v846_v34 = vld [vmem:[#allocation2 + $0x133] sm:$0xff] }
  0x66   : > { %v1038_v2 = vmax.f32 %v988_v56, %v2428_v44  ;;  %v1039_v41 = vmax.f32 %v989_v47, %v2430_v45  ;;  %v1183_v42 = vld [vmem:[#allocation2 + $0x13e] sm:$0xff]  ;;  %v870_v3 = vmax.f32 %v774_v57, %v822_v24  ;;  %v534_v33 = vld [vmem:[#allocation2 + $0x70] sm:$0xff] }
  0x67   : > { %v1249_v52 = vpack.c.bf16 %v1207_v53, %v1206_v40  ;;  %v871_v16 = vmax.f32 %v775_v5, %v823_v62  ;;  %v2449_v25 = vld [vmem:[#allocation2 + $0x13a] sm:$0xff]  ;;  %v748_v27 = vmax.f32 %v652_v1, %v2411_v11  ;;  %v582_v9 = vld [vmem:[#allocation2 + $0x71] sm:$0xff]  ;;  %v2460_v18 = vld [vmem:[#allocation2 + $0x144] sm:$0xff] }
  0x68   : > { %v1134_v28 = vmax.f32 %v1038_v2, %v1086_v63  ;;  %v1135_v30 = vmax.f32 %v1039_v41, %v1087_v0  ;;  %v966_v31 = vmax.f32 %v870_v3, %v2409_v8  ;;  %v535_v36 = vld [vmem:[#allocation2 + $0x78] sm:$0xff]  ;;  %v1160_v8 = vld [vmem:[#allocation2 + $0x86] sm:$0xff]  ;;  %v799_v12 = vmax.f32 %v749_v32, %v2449_v25  ;;  %v1161_v37 = vld [vmem:[#allocation2 + $0x8e] sm:$0xff] }
  0x69   : > { %2050 = vmatmul.mubr.msk.bf16.gmra.mrb[8].mxu0 %vm327_vm1, %v1249_v52  ;;  %v967_v14 = vmax.f32 %v871_v16, %v2415_v20  ;;  %v798_v26 = vmax.f32 %v748_v27, %v2445_v54  ;;  %v847_v10 = vld [vmem:[#allocation2 + $0x13b] sm:$0xff]  ;;  %v2462_v20 = vld [vmem:[#allocation2 + $0x14c] sm:$0xff]  ;;  %v630_v19 = vmax.f32 %v534_v33, %v582_v9  ;;  %v824_v63 = vld [vmem:[#allocation2 + $0x83] sm:$0xff] }
  0x6a   : > { %v583_v15 = vld [vmem:[#allocation2 + $0x79] sm:$0xff]  ;;  %v1230_v38 = vmax.f32 %v1134_v28, %v1182_v35  ;;  %v1231_v11 = vmax.f32 %v1135_v30, %v1183_v42  ;;  %v1016_v22 = vmax.f32 %v966_v31, %v2443_v4  ;;  %v895_v29 = vmax.f32 %v799_v12, %v847_v10  ;;  %v1088_v55 = vld [vmem:[#allocation2 + $0x145] sm:$0xff]  ;;  %v558_v58 = vld [vmem:[#allocation2 + $0x130] sm:$0xff] }
  0x6b   : > { %v1017_v59 = vmax.f32 %v967_v14, %v2447_v17  ;;  %v894_v39 = vmax.f32 %v798_v26, %v846_v34  ;;  %v631_v50 = vmax.f32 %v535_v36, %v583_v15  ;;  %v2464_v24 = vld [vmem:[#allocation2 + $0x82] sm:$0xff]  ;;  %v2466_v62 = vld [vmem:[#allocation2 + $0x8a] sm:$0xff]  ;;  %v726_v47 = vmax.f32 %v630_v19, %v2426_v61  ;;  %v559_v60 = vld [vmem:[#allocation2 + $0x138] sm:$0xff] }
  0x6c   : > { %v1261_v51 = vpack.c.bf16 %v1231_v11, %v1230_v38  ;;  %v1112_v23 = vmax.f32 %v1016_v22, %v1064_v21  ;;  %v606_v49 = vld [vmem:[#allocation2 + $0x131] sm:$0xff]  ;;  %v991_v53 = vmax.f32 %v895_v29, %v2430_v45  ;;  %v607_v35 = vld [vmem:[#allocation2 + $0x139] sm:$0xff]  ;;  %v1184_v41 = vld [vmem:[#allocation2 + $0x146] sm:$0xff] }
  0x6d   : > { %v1113_v43 = vmax.f32 %v1017_v59, %v1065_v13  ;;  %v990_v56 = vmax.f32 %v894_v39, %v2428_v44  ;;  %v727_v57 = vmax.f32 %v631_v50, %v2432_v46  ;;  %v825_v0 = vld [vmem:[#allocation2 + $0x8b] sm:$0xff]  ;;  %v654_v5 = vmax.f32 %v558_v58, %v606_v49  ;;  %v2476_v42 = vld [vmem:[#allocation2 + $0x142] sm:$0xff]  ;;  %v2479_v52 = vld [vmem:[#allocation2 + $0x94] sm:$0xff] }
  0x6e   : > { %2074 = vmatmul.mubr.msk.bf16.gmra.mrb[8].mxu1 %vm327_vm1, %v1261_v51  ;;  %v1208_v40 = vmax.f32 %v1112_v23, %v1160_v8  ;;  %v1089_v44 = vld [vmem:[#allocation2 + $0x14d] sm:$0xff]  ;;  %v776_v61 = vmax.f32 %v726_v47, %v2464_v24  ;;  %v1041_v3 = vmax.f32 %v991_v53, %v2462_v20  ;;  %v2481_v45 = vld [vmem:[#allocation2 + $0x9c] sm:$0xff]  ;;  %v655_v16 = vmax.f32 %v559_v60, %v607_v35 }
  0x6f   : > { %v1209_v1 = vmax.f32 %v1113_v43, %v1161_v37  ;;  %v1040_v2 = vmax.f32 %v990_v56, %v2460_v18  ;;  %v777_v46 = vmax.f32 %v727_v57, %v2466_v62  ;;  %v1185_v48 = vld [vmem:[#allocation2 + $0x14e] sm:$0xff]  ;;  %v750_v21 = vmax.f32 %v654_v5, %v2445_v54  ;;  %v848_v34 = vld [vmem:[#allocation2 + $0x143] sm:$0xff]  ;;  %v1162_v37 = vld [vmem:[#allocation2 + $0x96] sm:$0xff] }
  0x70   : > { %v872_v30 = vmax.f32 %v776_v61, %v824_v63  ;;  %v2484_v32 = vld [vmem:[#allocation2 + $0x14a] sm:$0xff]  ;;  %v536_v33 = vld [vmem:[#allocation2 + $0x80] sm:$0xff]  ;;  %v1137_v36 = vmax.f32 %v1041_v3, %v1089_v44  ;;  %v751_v14 = vmax.f32 %v655_v16, %v2449_v25  ;;  %v1066_v22 = vld [vmem:[#allocation2 + $0x95] sm:$0xff] }
  0x71   : > { %v1250_v27 = vpack.c.bf16 %v1209_v1, %v1208_v40  ;;  %v1136_v28 = vmax.f32 %v1040_v2, %v1088_v55  ;;  %v873_v31 = vmax.f32 %v777_v46, %v825_v0  ;;  %v800_v26 = vmax.f32 %v750_v21, %v2476_v42  ;;  %v537_v10 = vld [vmem:[#allocation2 + $0x88] sm:$0xff]  ;;  %v1067_v13 = vld [vmem:[#allocation2 + $0x9d] sm:$0xff]  ;;  %v2492_v50 = vld [vmem:[#allocation2 + $0x154] sm:$0xff] }
  0x72   : > { %v584_v9 = vld [vmem:[#allocation2 + $0x81] sm:$0xff]  ;;  %v585_v15 = vld [vmem:[#allocation2 + $0x89] sm:$0xff]  ;;  %v968_v54 = vmax.f32 %v872_v30, %v2443_v4  ;;  %v1233_v59 = vmax.f32 %v1137_v36, %v1185_v48  ;;  %v801_v25 = vmax.f32 %v751_v14, %v2484_v32  ;;  %v2494_v23 = vld [vmem:[#allocation2 + $0x92] sm:$0xff] }
  0x73   : > { %2053 = vmatprep.mubr.msk.bf16.mxu0 %vm327_vm1, %v1250_v27  ;;  %v1232_v38 = vmax.f32 %v1136_v28, %v1184_v41  ;;  %v969_v11 = vmax.f32 %v873_v31, %v2447_v17  ;;  %v849_v8 = vld [vmem:[#allocation2 + $0x14b] sm:$0xff]  ;;  %v632_v12 = vmax.f32 %v536_v33, %v584_v9  ;;  %v1163_v39 = vld [vmem:[#allocation2 + $0x9e] sm:$0xff]  ;;  %v896_v19 = vmax.f32 %v800_v26, %v848_v34  ;;  %v1090_v55 = vld [vmem:[#allocation2 + $0x155] sm:$0xff] }
  0x74   : > { %v633_v51 = vmax.f32 %v537_v10, %v585_v15  ;;  %v1018_v29 = vmax.f32 %v968_v54, %v2479_v52  ;;  %v2498_v17 = vld [vmem:[#allocation2 + $0x15c] sm:$0xff]  ;;  %v897_v57 = vmax.f32 %v801_v25, %v849_v8  ;;  %v826_v49 = vld [vmem:[#allocation2 + $0x93] sm:$0xff]  ;;  %v561_v53 = vld [vmem:[#allocation2 + $0x148] sm:$0xff] }
  0x75   : > { %v1019_v4 = vmax.f32 %v969_v11, %v2481_v45  ;;  %v2500_v43 = vld [vmem:[#allocation2 + $0x9a] sm:$0xff]  ;;  %v728_v56 = vmax.f32 %v632_v12, %v2464_v24  ;;  %v1262_v47 = vpack.c.bf16 %v1233_v59, %v1232_v38  ;;  %v992_v58 = vmax.f32 %v896_v19, %v2460_v18  ;;  %v609_v2 = vld [vmem:[#allocation2 + $0x149] sm:$0xff]  ;;  %v2512_v28 = vld [vmem:[#allocation2 + $0x152] sm:$0xff] }
  0x76   : > { %v729_v60 = vmax.f32 %v633_v51, %v2466_v62  ;;  %v560_v40 = vld [vmem:[#allocation2 + $0x140] sm:$0xff]  ;;  %v1114_v63 = vmax.f32 %v1018_v29, %v1066_v22  ;;  %v993_v24 = vmax.f32 %v897_v57, %v2462_v20  ;;  %v1186_v18 = vld [vmem:[#allocation2 + $0x156] sm:$0xff]  ;;  %v657_v27 = vmax.f32 %v561_v53, %v609_v2  ;;  %v2515_v34 = vld [vmem:[#allocation2 + $0xac] sm:$0xff] }
  0x77   : > { %v1115_v0 = vmax.f32 %v1019_v4, %v1067_v13  ;;  %v778_v35 = vmax.f32 %v728_v56, %v2494_v23  ;;  %v827_v5 = vld [vmem:[#allocation2 + $0x9b] sm:$0xff]  ;;  %2077 = vmatprep.mubr.msk.bf16.mxu1 %vm327_vm1, %v1262_v47  ;;  %v1042_v44 = vmax.f32 %v992_v58, %v2492_v50  ;;  %v2510_v21 = vld [vmem:[#allocation2 + $0xa4] sm:$0xff]  ;;  %v850_v14 = vld [vmem:[#allocation2 + $0x153] sm:$0xff] }
  0x78   : > { %v608_v1 = vld [vmem:[#allocation2 + $0x141] sm:$0xff]  ;;  %v779_v62 = vmax.f32 %v729_v60, %v2500_v43  ;;  %v1210_v46 = vmax.f32 %v1114_v63, %v1162_v37  ;;  %v1043_v30 = vmax.f32 %v993_v24, %v2498_v17  ;;  %v753_v9 = vmax.f32 %v657_v27, %v2484_v32  ;;  %v538_v15 = vld [vmem:[#allocation2 + $0x90] sm:$0xff]  ;;  %v539_v38 = vld [vmem:[#allocation2 + $0x98] sm:$0xff] }
  0x79   : > { %v1091_v41 = vld [vmem:[#allocation2 + $0x15d] sm:$0xff]  ;;  %v656_v61 = vmax.f32 %v560_v40, %v608_v1  ;;  %v1211_v3 = vmax.f32 %v1115_v0, %v1163_v39  ;;  %v874_v16 = vmax.f32 %v778_v35, %v826_v49  ;;  %v1138_v31 = vmax.f32 %v1042_v44, %v1090_v55  ;;  %v586_v54 = vld [vmem:[#allocation2 + $0x91] sm:$0xff]  ;;  %v1068_v8 = vld [vmem:[#allocation2 + $0xa5] sm:$0xff] }
  0x7a   : > { %v1187_v48 = vld [vmem:[#allocation2 + $0x15e] sm:$0xff]  ;;  %v875_v20 = vmax.f32 %v779_v62, %v827_v5  ;;  %v1139_v11 = vmax.f32 %v1043_v30, %v1091_v41  ;;  %v1069_v39 = vld [vmem:[#allocation2 + $0xad] sm:$0xff]  ;;  %v634_v25 = vmax.f32 %v538_v15, %v586_v54 }
  0x7b   : > { %v2517_v33 = vld [vmem:[#allocation2 + $0x15a] sm:$0xff]  ;;  %v752_v36 = vmax.f32 %v656_v61, %v2476_v42  ;;  %v1251_v26 = vpack.c.bf16 %v1211_v3, %v1210_v46  ;;  %v970_v10 = vmax.f32 %v874_v16, %v2479_v52  ;;  %v1234_v22 = vmax.f32 %v1138_v31, %v1186_v18  ;;  %v1164_v52 = vld [vmem:[#allocation2 + $0xa6] sm:$0xff]  ;;  %v1165_v4 = vld [vmem:[#allocation2 + $0xae] sm:$0xff] }
  0x7c   : > { %v971_v13 = vmax.f32 %v875_v20, %v2481_v45  ;;  %v851_v59 = vld [vmem:[#allocation2 + $0x15b] sm:$0xff]  ;;  %v803_v32 = vmax.f32 %v753_v9, %v2517_v33  ;;  %v1235_v51 = vmax.f32 %v1139_v11, %v1187_v48  ;;  %v2530_v56 = vld [vmem:[#allocation2 + $0xaa] sm:$0xff]  ;;  %v730_v49 = vmax.f32 %v634_v25, %v2494_v23 }
  0x7d   : > { %v802_v12 = vmax.f32 %v752_v36, %v2512_v28  ;;  %v587_v37 = vld [vmem:[#allocation2 + $0x99] sm:$0xff]  ;;  %2054 = vmatmul.mubr.msk.bf16.gmra.mrb[12].mxu0 %vm327_vm1, %v1251_v26  ;;  %v1020_v42 = vmax.f32 %v970_v10, %v2510_v21  ;;  %v2528_v55 = vld [vmem:[#allocation2 + $0xa2] sm:$0xff]  ;;  %v2534_v60 = vld [vmem:[#allocation2 + $0x16c] sm:$0xff] }
  0x7e   : > { %v635_v19 = vmax.f32 %v539_v38, %v587_v37  ;;  %v1021_v29 = vmax.f32 %v971_v13, %v2515_v34  ;;  %v899_v57 = vmax.f32 %v803_v32, %v851_v59  ;;  %v2532_v58 = vld [vmem:[#allocation2 + $0x164] sm:$0xff]  ;;  %v1263_v53 = vpack.c.bf16 %v1235_v51, %v1234_v22  ;;  %v2547_v27 = vld [vmem:[#allocation2 + $0xbc] sm:$0xff]  ;;  %v610_v59 = vld [vmem:[#allocation2 + $0x151] sm:$0xff] }
  0x7f   : > { %v898_v45 = vmax.f32 %v802_v12, %v850_v14  ;;  %v1116_v47 = vmax.f32 %v1020_v42, %v1068_v8  ;;  %v828_v35 = vld [vmem:[#allocation2 + $0xa3] sm:$0xff]  ;;  %v829_v5 = vld [vmem:[#allocation2 + $0xab] sm:$0xff]  ;;  %v780_v44 = vmax.f32 %v730_v49, %v2528_v55  ;;  %v1070_v14 = vld [vmem:[#allocation2 + $0xb5] sm:$0xff] }
  0x80   : > { %v731_v40 = vmax.f32 %v635_v19, %v2500_v43  ;;  %v1117_v63 = vmax.f32 %v1021_v29, %v1069_v39  ;;  %v995_v2 = vmax.f32 %v899_v57, %v2498_v17  ;;  %v1092_v24 = vld [vmem:[#allocation2 + $0x165] sm:$0xff]  ;;  %2078 = vmatmul.mubr.msk.bf16.gmra.mrb[12].mxu1 %vm327_vm1, %v1263_v53  ;;  %v1093_v43 = vld [vmem:[#allocation2 + $0x16d] sm:$0xff]  ;;  %v1071_v26 = vld [vmem:[#allocation2 + $0xbd] sm:$0xff] }
  0x81   : > { %v994_v0 = vmax.f32 %v898_v45, %v2492_v50  ;;  %v1212_v1 = vmax.f32 %v1116_v47, %v1164_v52  ;;  %v1188_v61 = vld [vmem:[#allocation2 + $0x166] sm:$0xff]  ;;  %v1189_v50 = vld [vmem:[#allocation2 + $0x16e] sm:$0xff]  ;;  %v876_v46 = vmax.f32 %v780_v44, %v828_v35  ;;  %v1166_v38 = vld [vmem:[#allocation2 + $0xb6] sm:$0xff] }
  0x82   : > { %v781_v41 = vmax.f32 %v731_v40, %v2530_v56  ;;  %v1213_v18 = vmax.f32 %v1117_v63, %v1165_v4  ;;  %v1045_v62 = vmax.f32 %v995_v2, %v2534_v60  ;;  %v2545_v17 = vld [vmem:[#allocation2 + $0xb4] sm:$0xff]  ;;  %v1167_v54 = vld [vmem:[#allocation2 + $0xbe] sm:$0xff]  ;;  %v541_v39 = vld [vmem:[#allocation2 + $0xa8] sm:$0xff] }
  0x83   : > { %v1044_v23 = vmax.f32 %v994_v0, %v2532_v58  ;;  %v972_v31 = vmax.f32 %v876_v46, %v2510_v21  ;;  %v562_v8 = vld [vmem:[#allocation2 + $0x150] sm:$0xff]  ;;  %v563_v21 = vld [vmem:[#allocation2 + $0x158] sm:$0xff]  ;;  %v540_v42 = vld [vmem:[#allocation2 + $0xa0] sm:$0xff] }
  0x84   : > { %v877_v3 = vmax.f32 %v781_v41, %v829_v5  ;;  %v1252_v48 = vpack.c.bf16 %v1213_v18, %v1212_v1  ;;  %v1141_v30 = vmax.f32 %v1045_v62, %v1093_v43  ;;  %v611_v37 = vld [vmem:[#allocation2 + $0x159] sm:$0xff]  ;;  %v588_v52 = vld [vmem:[#allocation2 + $0xa1] sm:$0xff]  ;;  %v589_v32 = vld [vmem:[#allocation2 + $0xa9] sm:$0xff]  ;;  %v658_v4 = vmax.f32 %v562_v8, %v610_v59 }
  0x85   : > { %v1140_v16 = vmax.f32 %v1044_v23, %v1092_v24  ;;  %v1022_v9 = vmax.f32 %v972_v31, %v2545_v17  ;;  %v1991_v19 = vld [vmem:[%s2211_s5 + $0x8] sm:$0xff]   ;;  %v564_v51 = vld [vmem:[#allocation2 + $0x160] sm:$0xff]  ;;  %v659_v57 = vmax.f32 %v563_v21, %v611_v37  ;;  %v636_v63 = vmax.f32 %v540_v42, %v588_v52  ;;  %v2558_v44 = vld [vmem:[#allocation2 + $0x172] sm:$0xff] }
  0x86   : > { %v973_v20 = vmax.f32 %v877_v3, %v2515_v34  ;;  %2057 = vmatprep.mubr.msk.bf16.mxu0 %vm327_vm1, %v1252_v48  ;;  %v1237_v10 = vmax.f32 %v1141_v30, %v1189_v50  ;;  %v565_v29 = vld [vmem:[#allocation2 + $0x168] sm:$0xff]  ;;  %v637_v0 = vmax.f32 %v541_v39, %v589_v32  ;;  %v1878_v35 = vunpack.c.l.bf16 %v1991_v19  ;;  %v2560_v41 = vld [vmem:[#allocation2 + $0x17a] sm:$0xff]  ;;  %v566_v32 = vld [vmem:[#allocation2 + $0x170] sm:$0xff] }
  0x87   : > { %v1236_v36 = vmax.f32 %v1140_v16, %v1188_v61  ;;  %v1118_v22 = vmax.f32 %v1022_v9, %v1070_v14  ;;  %v612_v45 = vld [vmem:[#allocation2 + $0x161] sm:$0xff]  ;;  %v613_v47 = vld [vmem:[#allocation2 + $0x169] sm:$0xff]  ;;  %v754_v5 = vmax.f32 %v658_v4, %v2512_v28  ;;  %v1879_v18 = vunpack.c.h.bf16 %v1991_v19  ;;  %v1074_v61 = vld [vmem:[#allocation2 + $0xd5] sm:$0xff] }
  0x88   : > { %v1023_v15 = vmax.f32 %v973_v20, %v2547_v27  ;;  %v708_v49 = vld [vmem:[#allocation2 + $0x162] sm:$0xff]  ;;  %v709_v40 = vld [vmem:[#allocation2 + $0x16a] sm:$0xff]  ;;  %v660_v2 = vmax.f32 %v564_v51, %v612_v45  ;;  %v661_v24 = vmax.f32 %v565_v29, %v613_v47  ;;  %v755_v23 = vmax.f32 %v659_v57, %v2517_v33  ;;  %474 = vst.msk [vmem:[#allocation2 + $0x190] sm:$0xff] %vm327_vm1, %v1878_v35  ;;  %v1170_v46 = vld [vmem:[#allocation2 + $0xd6] sm:$0xff] }
  0x89   : > { %v1264_v11 = vpack.c.bf16 %v1237_v10, %v1236_v36  ;;  %v1214_v34 = vmax.f32 %v1118_v22, %v1166_v38  ;;  %v852_v53 = vld [vmem:[#allocation2 + $0x163] sm:$0xff]  ;;  %v853_v1 = vld [vmem:[#allocation2 + $0x16b] sm:$0xff]  ;;  %v732_v43 = vmax.f32 %v636_v63, %v2528_v55  ;;  %v733_v62 = vmax.f32 %v637_v0, %v2530_v56  ;;  %v830_v3 = vld [vmem:[#allocation2 + $0xb3] sm:$0xff]  ;;  %475 = vst.msk [vmem:[#allocation2 + $0x198] sm:$0xff] %vm327_vm1, %v1879_v18 }
  0x8a   : > { %v1119_v13 = vmax.f32 %v1023_v15, %v1071_v26  ;;  %v1075_v50 = vld [vmem:[#allocation2 + $0xdd] sm:$0xff]  ;;  %v804_v28 = vmax.f32 %v754_v5, %v708_v49  ;;  %v756_v16 = vmax.f32 %v660_v2, %v708_v49  ;;  %v757_v30 = vmax.f32 %v661_v24, %v709_v40  ;;  %v2101_v55 = vld [vmem:[#allocation2 + $0xb2] sm:$0xff]  ;;  %v1096_v24 = vld [vmem:[#allocation2 + $0x185] sm:$0xff] }
  0x8b   : > { %2081 = vmatprep.mubr.msk.bf16.mxu1 %vm327_vm1, %v1264_v11  ;;  %v831_v48 = vld [vmem:[#allocation2 + $0xbb] sm:$0xff]  ;;  %v1122_v31 = vmax.f32 %v2318_v6, %v1074_v61  ;;  %v805_v33 = vmax.f32 %v755_v23, %v709_v40  ;;  %v782_v36 = vmax.f32 %v732_v43, %v2101_v55  ;;  %v854_v26 = vld [vmem:[#allocation2 + $0x173] sm:$0xff]  ;;  %v1123_v9 = vmax.f32 %v2320_v7, %v1075_v50  ;;  %v952_v45 = vld [vmem:[#allocation2 + $0x184] sm:$0xff] }
  0x8c   : > { %v1215_v12 = vmax.f32 %v1119_v13, %v1167_v54  ;;  %v1171_v20 = vld [vmem:[#allocation2 + $0xde] sm:$0xff]  ;;  %v1992_v15 = vld [vmem:[%s2211_s5 + $0x10] sm:$0xff]   ;;  %v900_v38 = vmax.f32 %v804_v28, %v852_v53  ;;  %v806_v54 = vmax.f32 %v756_v16, %v2558_v44  ;;  %v807_v11 = vmax.f32 %v757_v30, %v2560_v41 }
  0x8d   : > { %v2102_v56 = vld [vmem:[#allocation2 + $0xba] sm:$0xff]  ;;  %v2572_v22 = vmax.f32 %v1122_v31, %v1170_v46  ;;  %v901_v6 = vmax.f32 %v805_v33, %v853_v1  ;;  %v2574_v59 = vmax.f32 %v1123_v9, %v1171_v20  ;;  %v1882_v52 = vunpack.c.l.bf16 %v1992_v15  ;;  %v1072_v40 = vld [vmem:[#allocation2 + $0xc5] sm:$0xff]  ;;  %v1073_v53 = vld [vmem:[#allocation2 + $0xcd] sm:$0xff] }
  0x8e   : > { %v1253_v25 = vpack.c.bf16 %v1215_v12, %v1214_v34  ;;  %v783_v14 = vmax.f32 %v733_v62, %v2102_v56  ;;  %v855_v10 = vld [vmem:[#allocation2 + $0x17b] sm:$0xff]  ;;  %v878_v34 = vmax.f32 %v782_v36, %v830_v3  ;;  %v996_v37 = vmax.f32 %v900_v38, %v2532_v58  ;;  %v2103_v1 = vld [vmem:[#allocation2 + $0xc4] sm:$0xff]  ;;  %v2104_v2 = vld [vmem:[#allocation2 + $0xcc] sm:$0xff] }
  0x8f   : > { %v950_v13 = vld [vmem:[#allocation2 + $0x174] sm:$0xff]  ;;  %v951_v8 = vld [vmem:[#allocation2 + $0x17c] sm:$0xff]  ;;  %v902_v7 = vmax.f32 %v806_v54, %v854_v26  ;;  %v903_v39 = vmax.f32 %v807_v11, %v855_v10  ;;  %v997_v19 = vmax.f32 %v901_v6, %v2534_v60  ;;  %v1255_v47 = vpack.c.bf16 %v2574_v59, %v2572_v22  ;;  %v953_v63 = vld [vmem:[#allocation2 + $0x18c] sm:$0xff]  ;;  %476 = vst.msk [vmem:[#allocation2 + $0x1a0] sm:$0xff] %vm327_vm1, %v1882_v52 }
  0x90   : > { %2058 = vmatmul.mubr.msk.bf16.gmra.mrb[16].mxu0 %vm327_vm1, %v1253_v25  ;;  %v1094_v21 = vld [vmem:[#allocation2 + $0x175] sm:$0xff]  ;;  %v879_v12 = vmax.f32 %v783_v14, %v831_v48  ;;  %v1095_v42 = vld [vmem:[#allocation2 + $0x17d] sm:$0xff]  ;;  %v974_v29 = vmax.f32 %v878_v34, %v2545_v17  ;;  %v1046_v58 = vmax.f32 %v996_v37, %v950_v13  ;;  %v1097_v18 = vld [vmem:[#allocation2 + $0x18d] sm:$0xff] }
  0x91   : > { %v614_v25 = vld [vmem:[#allocation2 + $0x171] sm:$0xff]  ;;  %v615_v49 = vld [vmem:[#allocation2 + $0x179] sm:$0xff]  ;;  %v998_v0 = vmax.f32 %v902_v7, %v950_v13  ;;  %v999_v35 = vmax.f32 %v903_v39, %v951_v8  ;;  %v1047_v60 = vmax.f32 %v997_v19, %v951_v8  ;;  %v1168_v62 = vld [vmem:[#allocation2 + $0xc6] sm:$0xff] }
  0x92   : > { %v1190_v51 = vld [vmem:[#allocation2 + $0x176] sm:$0xff]  ;;  %v975_v4 = vmax.f32 %v879_v12, %v2547_v27  ;;  %v1191_v5 = vld [vmem:[#allocation2 + $0x17e] sm:$0xff]  ;;  %v1024_v17 = vmax.f32 %v974_v29, %v2103_v1  ;;  %v662_v23 = vmax.f32 %v566_v32, %v614_v25  ;;  %v1142_v43 = vmax.f32 %v1046_v58, %v1094_v21  ;;  %v1169_v61 = vld [vmem:[#allocation2 + $0xce] sm:$0xff] }
  0x93   : > { %v567_v57 = vld [vmem:[#allocation2 + $0x178] sm:$0xff]  ;;  %v1048_v50 = vmax.f32 %v998_v0, %v952_v45  ;;  %v1049_v46 = vmax.f32 %v999_v35, %v953_v63  ;;  %v760_v3 = vld [vmem:[#allocation2 + $0x182] sm:$0xff]  ;;  %v1143_v48 = vmax.f32 %v1047_v60, %v1095_v42  ;;  %v1193_v20 = vld [vmem:[#allocation2 + $0x18e] sm:$0xff] }
  0x94   : > { %v1025_v27 = vmax.f32 %v975_v4, %v2104_v2  ;;  %v663_v28 = vmax.f32 %v567_v57, %v615_v49  ;;  %v1120_v16 = vmax.f32 %v1024_v17, %v1072_v40  ;;  %v1192_v31 = vld [vmem:[#allocation2 + $0x186] sm:$0xff]  ;;  %v758_v33 = vmax.f32 %v662_v23, %v2558_v44  ;;  %v1002_v59 = vld [vmem:[#allocation2 + $0x194] sm:$0xff] }
  0x95   : > { %v761_v55 = vld [vmem:[#allocation2 + $0x18a] sm:$0xff]  ;;  %v1238_v36 = vmax.f32 %v1142_v43, %v1190_v51  ;;  %v1144_v56 = vmax.f32 %v1048_v50, %v1096_v24  ;;  %v1145_v14 = vmax.f32 %v1049_v46, %v1097_v18  ;;  %v1239_v9 = vmax.f32 %v1143_v48, %v1191_v5  ;;  %v1098_v7 = vld [vmem:[#allocation2 + $0x195] sm:$0xff] }
  0x96   : > { %v1121_v30 = vmax.f32 %v1025_v27, %v1073_v53  ;;  %v759_v26 = vmax.f32 %v663_v28, %v2560_v41  ;;  %v856_v10 = vld [vmem:[#allocation2 + $0x183] sm:$0xff]  ;;  %v1216_v15 = vmax.f32 %v1120_v16, %v1168_v62  ;;  %v808_v54 = vmax.f32 %v758_v33, %v760_v3  ;;  %v857_v11 = vld [vmem:[#allocation2 + $0x18b] sm:$0xff]  ;;  %v1194_v25 = vld [vmem:[#allocation2 + $0x196] sm:$0xff] }
  0x97   : > { %v1240_v22 = vmax.f32 %v1144_v56, %v1192_v31  ;;  %v1241_v6 = vmax.f32 %v1145_v14, %v1193_v20  ;;  %v1265_v8 = vpack.c.bf16 %v1239_v9, %v1238_v36  ;;  %v1003_v37 = vld [vmem:[#allocation2 + $0x19c] sm:$0xff] }
  0x98   : > { %v1217_v38 = vmax.f32 %v1121_v30, %v1169_v61  ;;  %v809_v13 = vmax.f32 %v759_v26, %v761_v55  ;;  %v904_v34 = vmax.f32 %v808_v54, %v856_v10  ;;  %v1099_v52 = vld [vmem:[#allocation2 + $0x19d] sm:$0xff] }
  0x99   : > { %v1266_v12 = vpack.c.bf16 %v1241_v6, %v1240_v22  ;;  %2082 = vmatmul.mubr.msk.bf16.gmra.mrb[16].mxu1 %vm327_vm1, %v1265_v8  ;;  %v1195_v51 = vld [vmem:[#allocation2 + $0x19e] sm:$0xff] }
  0x9a   : > { %v1254_v21 = vpack.c.bf16 %v1217_v38, %v1216_v15  ;;  %v905_v44 = vmax.f32 %v809_v13, %v857_v11  ;;  %v1000_v41 = vmax.f32 %v904_v34, %v952_v45  ;;  %v2595_v45 = vld [vmem:[%s2704_s3] ss:$0 sm:$0xff] }
  0x9b   : > { %2085 = vmatprep.mubr.msk.bf16.mxu1 %vm327_vm1, %v1266_v12 }
  0x9c   : > { %2061 = vmatprep.mubr.msk.bf16.mxu0 %vm327_vm1, %v1254_v21  ;;  %v1001_v42 = vmax.f32 %v905_v44, %v953_v63  ;;  %v1050_v39 = vmax.f32 %v1000_v41, %v1002_v59 }
  0x9d   : > { %2062 = vmatmul.mubr.msk.bf16.gmra.mrb[20].mxu0 %vm327_vm1, %v1255_v47 }
  0x9e   : > { %v1051_v32 = vmax.f32 %v1001_v42, %v1003_v37  ;;  %v1146_v19 = vmax.f32 %v1050_v39, %v1098_v7 }
  0xa0   : > { %v1147_v29 = vmax.f32 %v1051_v32, %v1099_v52  ;;  %v1242_v4 = vmax.f32 %v1146_v19, %v1194_v25 }
  0xa2   : > { %v1243_v57 = vmax.f32 %v1147_v29, %v1195_v51 }
  0xa4   : > { %v1267_v49 = vpack.c.bf16 %v1243_v57, %v1242_v4 }
  0xa6   : > { %2086 = vmatmul.mubr.msk.bf16.gmra.mrb[20].mxu1 %vm327_vm1, %v1267_v49 }
 0x119   : > { %v2043_v47 = vpop.f32.mrb[0].mxu0 }
 0x11a   : > { %v1395_v58 = vadd.f32 %v2043_v47, %v2595_v45  ;;  %v1386_v40 = vpop.f32.mrb[1].mxu0 }
 0x11b   : > { %v1387_v63 = vadd.f32 %v2595_v45, %v1386_v40  ;;  %v2044_v0 = vpop.f32.mrb[2].mxu0 }
 0x11c   : > { %v2067_v53 = vpop.f32.mrb[0].mxu1  ;;  %v1579_v35 = vmax.f32 %v1395_v58, 0.0  ;;  %v1398_v1 = vadd.f32 %v2044_v0, %v2595_v45  ;;  %v1389_v17 = vpop.f32.mrb[3].mxu0 }
 0x11d   : > { %v1491_v60 = vadd.f32 %v2067_v53, %v2595_v45  ;;  %v1482_v5 = vpop.f32.mrb[1].mxu1  ;;  %v1577_v2 = vmax.f32 %v1387_v63, 0.0  ;;  %v1390_v18 = vadd.f32 %v2595_v45, %v1389_v17 }
 0x11e   : > { %v1483_v27 = vadd.f32 %v2595_v45, %v1482_v5  ;;  %v2068_v24 = vpop.f32.mrb[2].mxu1  ;;  %1627 = vst [vmem:[%s2601_s11 + $0x10] sm:$0xff] %v1579_v35  ;;  %v1580_v43 = vmax.f32 %v1398_v1, 0.0 }
 0x11f   : > { %v1603_v23 = vmax.f32 %v1491_v60, 0.0  ;;  %v1494_v62 = vadd.f32 %v2068_v24, %v2595_v45  ;;  %v1485_v61 = vpop.f32.mrb[3].mxu1  ;;  %1625 = vst [vmem:[%s2601_s11] sm:$0xff] %v1577_v2  ;;  %v1578_v46 = vmax.f32 %v1390_v18, 0.0 }
 0x120   : > { %v1601_v50 = vmax.f32 %v1483_v27, 0.0  ;;  %v1486_v28 = vadd.f32 %v2595_v45, %v1485_v61  ;;  %1628 = vst [vmem:[%s2601_s11 + $0x18] sm:$0xff] %v1580_v43 }
 0x121   : > { %1651 = vst [vmem:[%s2601_s11 + $0xd0] sm:$0xff] %v1603_v23  ;;  %v1604_v3 = vmax.f32 %v1494_v62, 0.0  ;;  %1626 = vst [vmem:[%s2601_s11 + $0x8] sm:$0xff] %v1578_v46 }
 0x122   : > { %1649 = vst [vmem:[%s2601_s11 + $0xc0] sm:$0xff] %v1601_v50  ;;  %v1602_v48 = vmax.f32 %v1486_v28, 0.0 }
 0x123   : > { %1652 = vst [vmem:[%s2601_s11 + $0xd8] sm:$0xff] %v1604_v3 }
 0x124   : > { %1650 = vst [vmem:[%s2601_s11 + $0xc8] sm:$0xff] %v1602_v48 }
 0x12b   : > { %v2047_v16 = vpop.f32.mrb[4].mxu0 }
 0x12c   : > { %v1411_v30 = vadd.f32 %v2047_v16, %v2595_v45  ;;  %v1402_v31 = vpop.f32.mrb[5].mxu0 }
 0x12d   : > { %v1403_v20 = vadd.f32 %v2595_v45, %v1402_v31  ;;  %v2048_v33 = vpop.f32.mrb[6].mxu0  ;;  %v2071_v36 = vpop.f32.mrb[4].mxu1 }
 0x12e   : > { %v1583_v55 = vmax.f32 %v1411_v30, 0.0  ;;  %v1414_v56 = vadd.f32 %v2048_v33, %v2595_v45  ;;  %v1405_v14 = vpop.f32.mrb[7].mxu0  ;;  %v1507_v26 = vadd.f32 %v2071_v36, %v2595_v45  ;;  %v1498_v9 = vpop.f32.mrb[5].mxu1 }
 0x12f   : > { %v1581_v10 = vmax.f32 %v1403_v20, 0.0  ;;  %v1406_v15 = vadd.f32 %v2595_v45, %v1405_v14  ;;  %v1499_v38 = vadd.f32 %v2595_v45, %v1498_v9  ;;  %v2072_v11 = vpop.f32.mrb[6].mxu1 }
 0x130   : > { %1631 = vst [vmem:[%s2601_s11 + $0x30] sm:$0xff] %v1583_v55  ;;  %v1584_v54 = vmax.f32 %v1414_v56, 0.0  ;;  %v1607_v22 = vmax.f32 %v1507_v26, 0.0  ;;  %v1510_v6 = vadd.f32 %v2072_v11, %v2595_v45  ;;  %v1501_v8 = vpop.f32.mrb[7].mxu1 }
 0x131   : > { %1629 = vst [vmem:[%s2601_s11 + $0x20] sm:$0xff] %v1581_v10  ;;  %v1582_v13 = vmax.f32 %v1406_v15, 0.0  ;;  %v1605_v21 = vmax.f32 %v1499_v38, 0.0  ;;  %v1502_v34 = vadd.f32 %v2595_v45, %v1501_v8 }
 0x132   : > { %1632 = vst [vmem:[%s2601_s11 + $0x38] sm:$0xff] %v1584_v54  ;;  %1655 = vst [vmem:[%s2601_s11 + $0xf0] sm:$0xff] %v1607_v22  ;;  %v1608_v12 = vmax.f32 %v1510_v6, 0.0 }
 0x133   : > { %1630 = vst [vmem:[%s2601_s11 + $0x28] sm:$0xff] %v1582_v13  ;;  %1653 = vst [vmem:[%s2601_s11 + $0xe0] sm:$0xff] %v1605_v21  ;;  %v1606_v44 = vmax.f32 %v1502_v34, 0.0 }
 0x134   : > { %1656 = vst [vmem:[%s2601_s11 + $0xf8] sm:$0xff] %v1608_v12 }
 0x135   : > { %1654 = vst [vmem:[%s2601_s11 + $0xe8] sm:$0xff] %v1606_v44 }
 0x13c   : > { %v2051_v59 = vpop.f32.mrb[8].mxu0 }
 0x13d   : > { %v1427_v41 = vadd.f32 %v2051_v59, %v2595_v45  ;;  %v1418_v37 = vpop.f32.mrb[9].mxu0 }
 0x13e   : > { %v1419_v42 = vadd.f32 %v2595_v45, %v1418_v37  ;;  %v2052_v7 = vpop.f32.mrb[10].mxu0 }
 0x13f   : > { %v1587_v39 = vmax.f32 %v1427_v41, 0.0  ;;  %v1430_v52 = vadd.f32 %v2052_v7, %v2595_v45  ;;  %v1421_v32 = vpop.f32.mrb[11].mxu0 }
 0x140   : > { %v1585_v25 = vmax.f32 %v1419_v42, 0.0  ;;  %v1422_v19 = vadd.f32 %v2595_v45, %v1421_v32 }
 0x141   : > { %1635 = vst [vmem:[%s2601_s11 + $0x50] sm:$0xff] %v1587_v39  ;;  %v2075_v51 = vpop.f32.mrb[8].mxu1  ;;  %v1588_v29 = vmax.f32 %v1430_v52, 0.0 }
 0x142   : > { %v1523_v4 = vadd.f32 %v2075_v51, %v2595_v45  ;;  %1633 = vst [vmem:[%s2601_s11 + $0x40] sm:$0xff] %v1585_v25  ;;  %v1514_v57 = vpop.f32.mrb[9].mxu1  ;;  %v1586_v49 = vmax.f32 %v1422_v19, 0.0 }
 0x143   : > { %v1515_v47 = vadd.f32 %v2595_v45, %v1514_v57  ;;  %1636 = vst [vmem:[%s2601_s11 + $0x58] sm:$0xff] %v1588_v29  ;;  %v2076_v58 = vpop.f32.mrb[10].mxu1 }
 0x144   : > { %v1611_v40 = vmax.f32 %v1523_v4, 0.0  ;;  %v1526_v53 = vadd.f32 %v2076_v58, %v2595_v45  ;;  %1634 = vst [vmem:[%s2601_s11 + $0x48] sm:$0xff] %v1586_v49  ;;  %v1517_v63 = vpop.f32.mrb[11].mxu1 }
 0x145   : > { %v1609_v0 = vmax.f32 %v1515_v47, 0.0  ;;  %v1518_v35 = vadd.f32 %v2595_v45, %v1517_v63 }
 0x146   : > { %1659 = vst [vmem:[%s2601_s11 + $0x110] sm:$0xff] %v1611_v40  ;;  %v1612_v60 = vmax.f32 %v1526_v53, 0.0 }
 0x147   : > { %1657 = vst [vmem:[%s2601_s11 + $0x100] sm:$0xff] %v1609_v0  ;;  %v1610_v5 = vmax.f32 %v1518_v35, 0.0 }
 0x148   : > { %1660 = vst [vmem:[%s2601_s11 + $0x118] sm:$0xff] %v1612_v60 }
 0x149   : > { %1658 = vst [vmem:[%s2601_s11 + $0x108] sm:$0xff] %v1610_v5 }
 0x150   : > { %v2055_v1 = vpop.f32.mrb[12].mxu0 }
 0x151   : > { %v1443_v17 = vadd.f32 %v2055_v1, %v2595_v45  ;;  %v1434_v2 = vpop.f32.mrb[13].mxu0 }
 0x152   : > { %v1435_v27 = vadd.f32 %v2595_v45, %v1434_v2  ;;  %v2056_v24 = vpop.f32.mrb[14].mxu0 }
 0x153   : > { %v1591_v18 = vmax.f32 %v1443_v17, 0.0  ;;  %v1446_v23 = vadd.f32 %v2056_v24, %v2595_v45  ;;  %v1437_v43 = vpop.f32.mrb[15].mxu0  ;;  %v2079_v50 = vpop.f32.mrb[12].mxu1 }
 0x154   : > { %v1589_v62 = vmax.f32 %v1435_v27, 0.0  ;;  %v1438_v61 = vadd.f32 %v2595_v45, %v1437_v43  ;;  %v1539_v28 = vadd.f32 %v2079_v50, %v2595_v45  ;;  %v1530_v3 = vpop.f32.mrb[13].mxu1 }
 0x155   : > { %1639 = vst [vmem:[%s2601_s11 + $0x70] sm:$0xff] %v1591_v18  ;;  %v1592_v46 = vmax.f32 %v1446_v23, 0.0  ;;  %v1531_v16 = vadd.f32 %v2595_v45, %v1530_v3  ;;  %v2080_v30 = vpop.f32.mrb[14].mxu1 }
 0x156   : > { %1637 = vst [vmem:[%s2601_s11 + $0x60] sm:$0xff] %v1589_v62  ;;  %v1590_v48 = vmax.f32 %v1438_v61, 0.0  ;;  %v1615_v31 = vmax.f32 %v1539_v28, 0.0  ;;  %v1542_v20 = vadd.f32 %v2080_v30, %v2595_v45  ;;  %v1533_v33 = vpop.f32.mrb[15].mxu1 }
 0x157   : > { %1640 = vst [vmem:[%s2601_s11 + $0x78] sm:$0xff] %v1592_v46  ;;  %v1613_v55 = vmax.f32 %v1531_v16, 0.0  ;;  %v1534_v36 = vadd.f32 %v2595_v45, %v1533_v33 }
 0x158   : > { %1638 = vst [vmem:[%s2601_s11 + $0x68] sm:$0xff] %v1590_v48  ;;  %1663 = vst [vmem:[%s2601_s11 + $0x130] sm:$0xff] %v1615_v31  ;;  %v1616_v56 = vmax.f32 %v1542_v20, 0.0 }
 0x159   : > { %1661 = vst [vmem:[%s2601_s11 + $0x120] sm:$0xff] %v1613_v55  ;;  %v1614_v14 = vmax.f32 %v1534_v36, 0.0 }
 0x15a   : > { %1664 = vst [vmem:[%s2601_s11 + $0x138] sm:$0xff] %v1616_v56 }
 0x15b   : > { %1662 = vst [vmem:[%s2601_s11 + $0x128] sm:$0xff] %v1614_v14 }
 0x163   : > { %v2059_v26 = vpop.f32.mrb[16].mxu0 }
 0x164   : > { %v1459_v10 = vadd.f32 %v2059_v26, %v2595_v45  ;;  %v1450_v9 = vpop.f32.mrb[17].mxu0 }
 0x165   : > { %v1451_v15 = vadd.f32 %v2595_v45, %v1450_v9  ;;  %v2060_v38 = vpop.f32.mrb[18].mxu0 }
 0x166   : > { %v1595_v54 = vmax.f32 %v1459_v10, 0.0  ;;  %v1462_v11 = vadd.f32 %v2060_v38, %v2595_v45  ;;  %v1453_v22 = vpop.f32.mrb[19].mxu0 }
 0x167   : > { %v1593_v6 = vmax.f32 %v1451_v15, 0.0  ;;  %v1454_v13 = vadd.f32 %v2595_v45, %v1453_v22 }
 0x168   : > { %1643 = vst [vmem:[%s2601_s11 + $0x90] sm:$0xff] %v1595_v54  ;;  %v1596_v8 = vmax.f32 %v1462_v11, 0.0 }
 0x169   : > { %1641 = vst [vmem:[%s2601_s11 + $0x80] sm:$0xff] %v1593_v6  ;;  %v1594_v21 = vmax.f32 %v1454_v13, 0.0 }
 0x16a   : > { %1644 = vst [vmem:[%s2601_s11 + $0x98] sm:$0xff] %v1596_v8 }
 0x16b   : > { %1642 = vst [vmem:[%s2601_s11 + $0x88] sm:$0xff] %v1594_v21 }
 0x16c   : > { %v2083_v34 = vpop.f32.mrb[16].mxu1 }
 0x16d   : > { %v1555_v12 = vadd.f32 %v2083_v34, %v2595_v45  ;;  %v1546_v44 = vpop.f32.mrb[17].mxu1 }
 0x16e   : > { %v1547_v41 = vadd.f32 %v2595_v45, %v1546_v44  ;;  %v2084_v37 = vpop.f32.mrb[18].mxu1 }
 0x16f   : > { %v1619_v39 = vmax.f32 %v1555_v12, 0.0  ;;  %v1558_v52 = vadd.f32 %v2084_v37, %v2595_v45  ;;  %v1549_v32 = vpop.f32.mrb[19].mxu1 }
 0x170   : > { %v2063_v59 = vpop.f32.mrb[20].mxu0  ;;  %v1617_v51 = vmax.f32 %v1547_v41, 0.0  ;;  %v1550_v29 = vadd.f32 %v2595_v45, %v1549_v32 }
 0x171   : > { %v1475_v42 = vadd.f32 %v2063_v59, %v2595_v45  ;;  %v1466_v7 = vpop.f32.mrb[21].mxu0  ;;  %1667 = vst [vmem:[%s2601_s11 + $0x150] sm:$0xff] %v1619_v39  ;;  %v1620_v47 = vmax.f32 %v1558_v52, 0.0 }
 0x172   : > { %v1467_v25 = vadd.f32 %v2595_v45, %v1466_v7  ;;  %v2064_v19 = vpop.f32.mrb[22].mxu0  ;;  %1665 = vst [vmem:[%s2601_s11 + $0x140] sm:$0xff] %v1617_v51  ;;  %v1618_v53 = vmax.f32 %v1550_v29, 0.0 }
 0x173   : > { %v1599_v4 = vmax.f32 %v1475_v42, 0.0  ;;  %v1478_v57 = vadd.f32 %v2064_v19, %v2595_v45  ;;  %v1469_v49 = vpop.f32.mrb[23].mxu0  ;;  %1668 = vst [vmem:[%s2601_s11 + $0x158] sm:$0xff] %v1620_v47 }
 0x174   : > { %v1597_v58 = vmax.f32 %v1467_v25, 0.0  ;;  %v1470_v40 = vadd.f32 %v2595_v45, %v1469_v49  ;;  %1666 = vst [vmem:[%s2601_s11 + $0x148] sm:$0xff] %v1618_v53 }
 0x175   : > { %1647 = vst [vmem:[%s2601_s11 + $0xb0] sm:$0xff] %v1599_v4  ;;  %v1600_v63 = vmax.f32 %v1478_v57, 0.0 }
 0x176   : > { %1645 = vst [vmem:[%s2601_s11 + $0xa0] sm:$0xff] %v1597_v58  ;;  %v1598_v0 = vmax.f32 %v1470_v40, 0.0 }
 0x177   : > { %1648 = vst [vmem:[%s2601_s11 + $0xb8] sm:$0xff] %v1600_v63 }
 0x178   : > { %1646 = vst [vmem:[%s2601_s11 + $0xa8] sm:$0xff] %v1598_v0 }
 0x179   : > { %v2087_v35 = vpop.f32.mrb[20].mxu1 }
 0x17a   : > { %v1571_v60 = vadd.f32 %v2087_v35, %v2595_v45  ;;  %v1562_v5 = vpop.f32.mrb[21].mxu1 }
 0x17b   : > { %v1563_v1 = vadd.f32 %v2595_v45, %v1562_v5  ;;  %v2088_v17 = vpop.f32.mrb[22].mxu1 }
 0x17c   : > { %v1623_v2 = vmax.f32 %v1571_v60, 0.0  ;;  %v1574_v27 = vadd.f32 %v2088_v17, %v2595_v45  ;;  %v1565_v24 = vpop.f32.mrb[23].mxu1 }
 0x17d   : > { %v1621_v18 = vmax.f32 %v1563_v1, 0.0  ;;  %v1566_v23 = vadd.f32 %v2595_v45, %v1565_v24 }
 0x17e   : > { %1671 = vst [vmem:[%s2601_s11 + $0x170] sm:$0xff] %v1623_v2  ;;  %v1624_v43 = vmax.f32 %v1574_v27, 0.0 }
 0x17f   : > { %1669 = vst [vmem:[%s2601_s11 + $0x160] sm:$0xff] %v1621_v18  ;;  %v1622_v62 = vmax.f32 %v1566_v23, 0.0 }
 0x180   : > { %1672 = vst [vmem:[%s2601_s11 + $0x178] sm:$0xff] %v1624_v43 }
 0x181   : > { %1670 = vst [vmem:[%s2601_s11 + $0x168] sm:$0xff] %v1622_v62 }
 0x182 PF: > { %s14_s15 = sadd.s32 1, %s2111_s15  }
 0x183   : > { %p11_p6 = scmp.ge.s32.totalorder %s14_s15, 4  }
 0x185   :  { %13 = sbr.rel (!%p11_p6) target bundleno = 1 (0x1), region = 69 }

// kernel: inception_forward.10
= control target key start
LH: loop header
LB: loop body
LE: loop exit
PB: predicated region body
PF: predicated region fallthrough
CT: control target
= control target key end

     0   :  { %s6027_s15 = smov 0   ;;  %s6785_s0 = inlined_call_operand.vmem [shape: bf16[1152,4], index: 0, kind: input, shape index: {}, may-alias: {0,1}]   ;;  %s6786_s1 = inlined_call_operand.vmem [shape: bf16[1152,4], index: 1, kind: input, shape index: {}, may-alias: {0,1}]   ;;  %s6787_s2 = inlined_call_operand.vmem [shape: bf16[9,4,128], index: 2, kind: input, shape index: {}]   ;;  %s6788_s3 = inlined_call_operand.vmem [shape: f32[1,128], index: 3, kind: input, shape index: {}]   ;;  %s6789_s4 = inlined_call_operand.vmem [shape: f32[768,128], index: 4, kind: output, shape index: {}]  }
   0x1 LB: > { %s4441_s16 = sadd.s32 4294967295, %s6000_s15   ;;  %p4445_p0 = scmp.ge.s32.totalorder %s6000_s15, 1  ;;  %s6000_s15 = sphi %s6027_s15, %s14_s15  }
   0x2   : > { %p178_p1 = scmp.lt.s32.totalorder %s6000_s15, 3 }
   0x4   : > { %p179_p2 = pnand %p4445_p0, %p178_p1 }
   0x5   : > { %v4449_v0 = vld [vmem:[%s6787_s2 + $0x2] sm:$0x3] (!%p179_p2)  ;;  %vm739_vm0 = vcmask (!%p179_p2), 1041408   ;;  %v4548_v1 = vld [vmem:[%s6787_s2 + $0x8] sm:$0x3] (!%p179_p2)  ;;  %s6041_s21 = smul.u32 (!%p179_p2), 48, %s4441_s16 }
   0x6   : > { %182 = sbr.rel (%p179_p2) target bundleno = 680 (0x2a8), region = 36  ;;  %5975 = vmatprep.subr.msk.bf16.mxu1 (!%p179_p2), %vm739_vm0, %v4449_v0  ;;  %5979 = vmatprep.subr.msk.bf16.mxu0 (!%p179_p2), %vm739_vm0, %v4548_v1  ;;  %v741_v2 = vsel (!%p179_p2), %vm739_vm0, %v4449_v0, 0  ;;  %v6047_v3 = vsel (!%p179_p2), %vm739_vm0, %v4548_v1, 0  ;;  %v592_v4 = vld [vmem:[%s6787_s2] sm:$0x3] (!%p179_p2)  ;;  %s216_s24 = sadd.s32 (!%p179_p2), 1, %s4441_s16 }
   0x7   : > { %5140 = vmatpush3.bf16.msra.mxu1 (!%p179_p2), %v741_v2  ;;  %5340 = vmatpush3.bf16.msra.mxu0 (!%p179_p2), %v6047_v3  ;;  %p211_p3 = scmp.lt.s32.totalorder (!%p179_p2), %s6041_s21, 143  ;;  %v4573_v5 = vld [vmem:[%s6787_s2 + $0xa] sm:$0x3] (!%p179_p2)  ;;  %s217_s27 = smul.u32 (!%p179_p2), 48, %s216_s24  ;;  %vm327_vm1 = vcmask (!%p179_p2), 31744   ;;  %v6069_v9 = vsel (!%p179_p2), %vm739_vm0, %v592_v4, 0 }
   0x8   : > { %5976 = vmatprep.subr.msk.bf16.mxu1 (!%p179_p2), %vm739_vm0, %v592_v4  ;;  %5981 = vmatprep.subr.msk.bf16.mxu0 (!%p179_p2), %vm739_vm0, %v4573_v5  ;;  %v6072_v10 = vsel (!%p179_p2), %vm739_vm0, %v4573_v5, 0  ;;  %p225_p5 = scmp.lt.s32.totalorder (!%p179_p2), %s6041_s21, 95 }
   0x9   : > { %p218_p4 = scmp.lt.s32.totalorder (!%p179_p2), %s217_s27, 143 }
   0xd   : > { %s212_s28 = scalar_select %p211_p3, %s6041_s21, 143 }
   0xe   : > { %s6791_s27 = smov (!%p218_p4, %s217_s27), 143  ;;  %s6793_s21 = smov (!%p225_p5, %s6041_s21), 95 }
   0xf   : > { %s4446_s29 = sshll.u32 %s212_s28, 2  ;;  %s4447_s7 = sshll.u32 %s6791_s27, 2 }
  0x10   : > { %s6063_s6 = scalar_lea.vmem %s6785_s0, %s4446_s29  ;;  %s6113_s10 = scalar_lea.vmem %s6786_s1, %s4447_s7 }
  0x11   : > { %v4677_v6 = vld [vmem:[%s6063_s6] sm:$0xff]   ;;  %v4868_v7 = vld [vmem:[%s6063_s6 + $0x8] sm:$0xff]   ;;  %v4869_v8 = vld [vmem:[%s6063_s6 + $0x10] sm:$0xff]   ;;  %s4448_s27 = sshll.u32 %s6793_s21, 3 }
  0x12   : > { %v4678_v11 = vunpack.c.l.bf16 %v4677_v6  ;;  %v4679_v12 = vunpack.c.h.bf16 %v4677_v6  ;;  %v4682_v13 = vunpack.c.l.bf16 %v4868_v7  ;;  %v4683_v14 = vunpack.c.h.bf16 %v4868_v7  ;;  %v4870_v15 = vld [vmem:[%s6063_s6 + $0x18] sm:$0xff]   ;;  %v4871_v16 = vld [vmem:[%s6063_s6 + $0x20] sm:$0xff]   ;;  %v4872_v17 = vld [vmem:[%s6063_s6 + $0x28] sm:$0xff]   ;;  %s6670_s30 = scalar_lea.vmem %s6789_s4, %s4448_s27 }
  0x13   : > { %v4686_v18 = vunpack.c.l.bf16 %v4869_v8  ;;  %v4687_v19 = vunpack.c.h.bf16 %v4869_v8  ;;  %v4690_v20 = vunpack.c.l.bf16 %v4870_v15  ;;  %v4691_v21 = vunpack.c.h.bf16 %v4870_v15  ;;  %v4873_v22 = vld [vmem:[%s6063_s6 + $0x30] sm:$0xff]   ;;  %v4874_v23 = vld [vmem:[%s6063_s6 + $0x38] sm:$0xff]   ;;  %v4875_v24 = vld [vmem:[%s6063_s6 + $0x40] sm:$0xff]  }
  0x14   : > { %328 = vst.msk [vmem:[#allocation2] sm:$0xff] %vm327_vm1, %v4678_v11  ;;  %329 = vst.msk [vmem:[#allocation2 + $0x8] sm:$0xff] %vm327_vm1, %v4679_v12  ;;  %v4694_v25 = vunpack.c.l.bf16 %v4871_v16  ;;  %v4695_v26 = vunpack.c.h.bf16 %v4871_v16  ;;  %v4698_v27 = vunpack.c.l.bf16 %v4872_v17  ;;  %v4699_v28 = vunpack.c.h.bf16 %v4872_v17  ;;  %v4876_v29 = vld [vmem:[%s6063_s6 + $0x48] sm:$0xff]   ;;  %v4877_v30 = vld [vmem:[%s6063_s6 + $0x50] sm:$0xff]  }
  0x15   : > { %330 = vst.msk [vmem:[#allocation2 + $0x10] sm:$0xff] %vm327_vm1, %v4682_v13  ;;  %331 = vst.msk [vmem:[#allocation2 + $0x18] sm:$0xff] %vm327_vm1, %v4683_v14  ;;  %v4878_v31 = vld [vmem:[%s6063_s6 + $0x58] sm:$0xff]   ;;  %v4702_v32 = vunpack.c.l.bf16 %v4873_v22  ;;  %v4703_v33 = vunpack.c.h.bf16 %v4873_v22  ;;  %v4706_v34 = vunpack.c.l.bf16 %v4874_v23  ;;  %v4707_v35 = vunpack.c.h.bf16 %v4874_v23  ;;  %v4879_v36 = vld [vmem:[%s6063_s6 + $0x60] sm:$0xff]  }
  0x16   : > { %332 = vst.msk [vmem:[#allocation2 + $0x20] sm:$0xff] %vm327_vm1, %v4686_v18  ;;  %333 = vst.msk [vmem:[#allocation2 + $0x28] sm:$0xff] %vm327_vm1, %v4687_v19  ;;  %v4880_v37 = vld [vmem:[%s6063_s6 + $0x68] sm:$0xff]   ;;  %v4710_v38 = vunpack.c.l.bf16 %v4875_v24  ;;  %v4711_v39 = vunpack.c.h.bf16 %v4875_v24  ;;  %v4714_v40 = vunpack.c.l.bf16 %v4876_v29  ;;  %v4715_v41 = vunpack.c.h.bf16 %v4876_v29  ;;  %v4881_v42 = vld [vmem:[%s6063_s6 + $0x70] sm:$0xff]  }
  0x17   : > { %334 = vst.msk [vmem:[#allocation2 + $0x30] sm:$0xff] %vm327_vm1, %v4690_v20  ;;  %335 = vst.msk [vmem:[#allocation2 + $0x38] sm:$0xff] %vm327_vm1, %v4691_v21  ;;  %v4882_v43 = vld [vmem:[%s6063_s6 + $0x78] sm:$0xff]   ;;  %v4718_v44 = vunpack.c.l.bf16 %v4877_v30  ;;  %v4719_v45 = vunpack.c.h.bf16 %v4877_v30  ;;  %v4722_v46 = vunpack.c.l.bf16 %v4878_v31  ;;  %v4723_v47 = vunpack.c.h.bf16 %v4878_v31  ;;  %v4883_v48 = vld [vmem:[%s6063_s6 + $0x80] sm:$0xff]  }
  0x18   : > { %336 = vst.msk [vmem:[#allocation2 + $0x40] sm:$0xff] %vm327_vm1, %v4694_v25  ;;  %337 = vst.msk [vmem:[#allocation2 + $0x48] sm:$0xff] %vm327_vm1, %v4695_v26  ;;  %v4884_v49 = vld [vmem:[%s6063_s6 + $0x88] sm:$0xff]   ;;  %v4726_v50 = vunpack.c.l.bf16 %v4879_v36  ;;  %v4727_v51 = vunpack.c.h.bf16 %v4879_v36  ;;  %v4730_v52 = vunpack.c.l.bf16 %v4880_v37  ;;  %v4731_v53 = vunpack.c.h.bf16 %v4880_v37  ;;  %v4885_v54 = vld [vmem:[%s6063_s6 + $0x90] sm:$0xff]  }
  0x19   : > { %338 = vst.msk [vmem:[#allocation2 + $0x50] sm:$0xff] %vm327_vm1, %v4698_v27  ;;  %339 = vst.msk [vmem:[#allocation2 + $0x58] sm:$0xff] %vm327_vm1, %v4699_v28  ;;  %v4886_v55 = vld [vmem:[%s6063_s6 + $0x98] sm:$0xff]   ;;  %v4734_v56 = vunpack.c.l.bf16 %v4881_v42  ;;  %v4735_v57 = vunpack.c.h.bf16 %v4881_v42  ;;  %v4738_v58 = vunpack.c.l.bf16 %v4882_v43  ;;  %v4739_v59 = vunpack.c.h.bf16 %v4882_v43  ;;  %v4887_v60 = vld [vmem:[%s6063_s6 + $0xa0] sm:$0xff]  }
  0x1a   : > { %340 = vst.msk [vmem:[#allocation2 + $0x60] sm:$0xff] %vm327_vm1, %v4702_v32  ;;  %341 = vst.msk [vmem:[#allocation2 + $0x68] sm:$0xff] %vm327_vm1, %v4703_v33  ;;  %v4888_v61 = vld [vmem:[%s6063_s6 + $0xa8] sm:$0xff]   ;;  %v6128_v62 = vld [vmem:[%s6063_s6 + $0xb0] sm:$0xff]   ;;  %v4742_v63 = vunpack.c.l.bf16 %v4883_v48  ;;  %v4743_v0 = vunpack.c.h.bf16 %v4883_v48  ;;  %v4746_v1 = vunpack.c.l.bf16 %v4884_v49  ;;  %v4747_v2 = vunpack.c.h.bf16 %v4884_v49 }
  0x1b   : > { %342 = vst.msk [vmem:[#allocation2 + $0x70] sm:$0xff] %vm327_vm1, %v4706_v34  ;;  %343 = vst.msk [vmem:[#allocation2 + $0x78] sm:$0xff] %vm327_vm1, %v4707_v35  ;;  %v6135_v4 = vld [vmem:[%s6063_s6 + $0xb8] sm:$0xff]   ;;  %v6138_v5 = vld [vmem:[%s6113_s10] sm:$0xff]   ;;  %v4750_v11 = vunpack.c.l.bf16 %v4885_v54  ;;  %v4751_v12 = vunpack.c.h.bf16 %v4885_v54  ;;  %v4754_v13 = vunpack.c.l.bf16 %v4886_v55  ;;  %v4755_v14 = vunpack.c.h.bf16 %v4886_v55 }
  0x1c   : > { %344 = vst.msk [vmem:[#allocation2 + $0x80] sm:$0xff] %vm327_vm1, %v4710_v38  ;;  %345 = vst.msk [vmem:[#allocation2 + $0x88] sm:$0xff] %vm327_vm1, %v4711_v39  ;;  %v593_v6 = vld [vmem:[#allocation2 + $0x1] sm:$0xff]  ;;  %v594_v7 = vld [vmem:[#allocation2 + $0x9] sm:$0xff]  ;;  %v4758_v19 = vunpack.c.l.bf16 %v4887_v60  ;;  %v4759_v20 = vunpack.c.h.bf16 %v4887_v60  ;;  %v4762_v21 = vunpack.c.l.bf16 %v4888_v61  ;;  %v4763_v28 = vunpack.c.h.bf16 %v4888_v61 }
  0x1d   : > { %346 = vst.msk [vmem:[#allocation2 + $0x90] sm:$0xff] %vm327_vm1, %v4714_v40  ;;  %347 = vst.msk [vmem:[#allocation2 + $0x98] sm:$0xff] %vm327_vm1, %v4715_v41  ;;  %v2112_v8 = vld [vmem:[#allocation2 + $0x13] sm:$0xff]  ;;  %v641_v15 = vpack.c.bf16 %v594_v7, %v593_v6  ;;  %v2113_v16 = vld [vmem:[#allocation2 + $0x1b] sm:$0xff]  ;;  %v4766_v29 = vunpack.c.l.bf16 %v6128_v62  ;;  %v4767_v34 = vunpack.c.h.bf16 %v6128_v62  ;;  %v4770_v35 = vunpack.c.l.bf16 %v6135_v4 }
  0x1e   : > { %348 = vst.msk [vmem:[#allocation2 + $0xa0] sm:$0xff] %vm327_vm1, %v4718_v44  ;;  %349 = vst.msk [vmem:[#allocation2 + $0xa8] sm:$0xff] %vm327_vm1, %v4719_v45  ;;  %v595_v17 = vld [vmem:[#allocation2 + $0x11] sm:$0xff]  ;;  %v596_v18 = vld [vmem:[#allocation2 + $0x19] sm:$0xff]  ;;  %v2160_v22 = vpack.c.bf16 %v2113_v16, %v2112_v8  ;;  %v4771_v36 = vunpack.c.h.bf16 %v6135_v4  ;;  %v4774_v39 = vunpack.c.l.bf16 %v6138_v5 }
  0x1f   : > { %350 = vst.msk [vmem:[#allocation2 + $0xb0] sm:$0xff] %vm327_vm1, %v4722_v46  ;;  %351 = vst.msk [vmem:[#allocation2 + $0xb8] sm:$0xff] %vm327_vm1, %v4723_v47  ;;  %v642_v23 = vpack.c.bf16 %v596_v18, %v595_v17  ;;  %v2114_v24 = vld [vmem:[#allocation2 + $0x23] sm:$0xff]  ;;  %v2115_v25 = vld [vmem:[#allocation2 + $0x2b] sm:$0xff]  ;;  %5141 = vmatprep.mubr.msk.bf16.mxu1 %vm327_vm1, %v641_v15 }
  0x20   : > { %352 = vst.msk [vmem:[#allocation2 + $0xc0] sm:$0xff] %vm327_vm1, %v4726_v50  ;;  %353 = vst.msk [vmem:[#allocation2 + $0xc8] sm:$0xff] %vm327_vm1, %v4727_v51  ;;  %v597_v26 = vld [vmem:[#allocation2 + $0x21] sm:$0xff]  ;;  %v6151_v27 = vld [vmem:[%s6787_s2 + $0xc] sm:$0x3]  ;;  %v2161_v30 = vpack.c.bf16 %v2115_v25, %v2114_v24  ;;  %5341 = vmatprep.mubr.msk.bf16.mxu0 %vm327_vm1, %v2160_v22 }
  0x21   : > { %354 = vst.msk [vmem:[#allocation2 + $0xd0] sm:$0xff] %vm327_vm1, %v4730_v52  ;;  %355 = vst.msk [vmem:[#allocation2 + $0xd8] sm:$0xff] %vm327_vm1, %v4731_v53  ;;  %v598_v31 = vld [vmem:[#allocation2 + $0x29] sm:$0xff]  ;;  %v2116_v32 = vld [vmem:[#allocation2 + $0x33] sm:$0xff]  ;;  %5142 = vmatmul.mubr.msk.bf16.vlgmr.msra.gmra.mrb[0].mxu1 %vm327_vm1, %v642_v23 }
  0x22   : > { %356 = vst.msk [vmem:[#allocation2 + $0xe0] sm:$0xff] %vm327_vm1, %v4734_v56  ;;  %357 = vst.msk [vmem:[#allocation2 + $0xe8] sm:$0xff] %vm327_vm1, %v4735_v57  ;;  %v2117_v33 = vld [vmem:[#allocation2 + $0x3b] sm:$0xff]  ;;  %v643_v37 = vpack.c.bf16 %v598_v31, %v597_v26  ;;  %v6173_v40 = vld [vmem:[%s6787_s2 + $0x4] sm:$0x3]  ;;  %5190 = vmatpush3.bf16.msra.mxu1 %v6069_v9  ;;  %5342 = vmatmul.mubr.msk.bf16.vlgmr.msra.gmra.mrb[0].mxu0 %vm327_vm1, %v2161_v30 }
  0x23   : > { %358 = vst.msk [vmem:[#allocation2 + $0xf0] sm:$0xff] %vm327_vm1, %v4738_v58  ;;  %359 = vst.msk [vmem:[#allocation2 + $0xf8] sm:$0xff] %vm327_vm1, %v4739_v59  ;;  %v2162_v38 = vpack.c.bf16 %v2117_v33, %v2116_v32  ;;  %v599_v41 = vld [vmem:[#allocation2 + $0x31] sm:$0xff]  ;;  %v600_v42 = vld [vmem:[#allocation2 + $0x39] sm:$0xff]  ;;  %5390 = vmatpush3.bf16.msra.mxu0 %v6072_v10  ;;  %5977 = vmatprep.subr.msk.bf16.mxu1 %vm739_vm0, %v6173_v40  ;;  %v4775_v10 = vunpack.c.h.bf16 %v6138_v5 }
  0x24   : > { %360 = vst.msk [vmem:[#allocation2 + $0x100] sm:$0xff] %vm327_vm1, %v4742_v63  ;;  %361 = vst.msk [vmem:[#allocation2 + $0x108] sm:$0xff] %vm327_vm1, %v4743_v0  ;;  %v2118_v43 = vld [vmem:[#allocation2 + $0x43] sm:$0xff]  ;;  %5145 = vmatprep.mubr.msk.bf16.mxu1 %vm327_vm1, %v643_v37  ;;  %v2119_v44 = vld [vmem:[#allocation2 + $0x4b] sm:$0xff]  ;;  %5982 = vmatprep.subr.msk.bf16.mxu0 %vm739_vm0, %v6151_v27  ;;  %v644_v48 = vpack.c.bf16 %v600_v42, %v599_v41 }
  0x25   : > { %362 = vst.msk [vmem:[#allocation2 + $0x110] sm:$0xff] %vm327_vm1, %v4746_v1  ;;  %363 = vst.msk [vmem:[#allocation2 + $0x118] sm:$0xff] %vm327_vm1, %v4747_v2  ;;  %v601_v45 = vld [vmem:[#allocation2 + $0x41] sm:$0xff]  ;;  %v602_v46 = vld [vmem:[#allocation2 + $0x49] sm:$0xff]  ;;  %5345 = vmatprep.mubr.msk.bf16.mxu0 %vm327_vm1, %v2162_v38  ;;  %v2163_v49 = vpack.c.bf16 %v2119_v44, %v2118_v43 }
  0x26   : > { %364 = vst.msk [vmem:[#allocation2 + $0x120] sm:$0xff] %vm327_vm1, %v4750_v11  ;;  %365 = vst.msk [vmem:[#allocation2 + $0x128] sm:$0xff] %vm327_vm1, %v4751_v12  ;;  %v2120_v9 = vld [vmem:[#allocation2 + $0x53] sm:$0xff]  ;;  %v2121_v47 = vld [vmem:[#allocation2 + $0x5b] sm:$0xff]  ;;  %v645_v50 = vpack.c.bf16 %v602_v46, %v601_v45 }
  0x27   : > { %366 = vst.msk [vmem:[#allocation2 + $0x130] sm:$0xff] %vm327_vm1, %v4754_v13  ;;  %367 = vst.msk [vmem:[#allocation2 + $0x138] sm:$0xff] %vm327_vm1, %v4755_v14  ;;  %v2164_v51 = vpack.c.bf16 %v2121_v47, %v2120_v9  ;;  %v603_v52 = vld [vmem:[#allocation2 + $0x51] sm:$0xff]  ;;  %v604_v53 = vld [vmem:[#allocation2 + $0x59] sm:$0xff] }
  0x28   : > { %368 = vst.msk [vmem:[#allocation2 + $0x140] sm:$0xff] %vm327_vm1, %v4758_v19  ;;  %369 = vst.msk [vmem:[#allocation2 + $0x148] sm:$0xff] %vm327_vm1, %v4759_v20  ;;  %v2122_v54 = vld [vmem:[#allocation2 + $0x63] sm:$0xff]  ;;  %v2123_v55 = vld [vmem:[#allocation2 + $0x6b] sm:$0xff]  ;;  %v646_v60 = vpack.c.bf16 %v604_v53, %v603_v52 }
  0x29   : > { %370 = vst.msk [vmem:[#allocation2 + $0x150] sm:$0xff] %vm327_vm1, %v4762_v21  ;;  %371 = vst.msk [vmem:[#allocation2 + $0x158] sm:$0xff] %vm327_vm1, %v4763_v28  ;;  %5146 = vmatmul.mubr.msk.bf16.gmra.mrb[4].mxu1 %vm327_vm1, %v644_v48  ;;  %v605_v56 = vld [vmem:[#allocation2 + $0x61] sm:$0xff]  ;;  %v606_v57 = vld [vmem:[#allocation2 + $0x69] sm:$0xff]  ;;  %v2165_v61 = vpack.c.bf16 %v2123_v55, %v2122_v54 }
  0x2a   : > { %372 = vst.msk [vmem:[#allocation2 + $0x160] sm:$0xff] %vm327_vm1, %v4766_v29  ;;  %373 = vst.msk [vmem:[#allocation2 + $0x168] sm:$0xff] %vm327_vm1, %v4767_v34  ;;  %5346 = vmatmul.mubr.msk.bf16.gmra.mrb[4].mxu0 %vm327_vm1, %v2163_v49  ;;  %5149 = vmatprep.mubr.msk.bf16.mxu1 %vm327_vm1, %v645_v50  ;;  %v2124_v58 = vld [vmem:[#allocation2 + $0x73] sm:$0xff]  ;;  %v2125_v59 = vld [vmem:[#allocation2 + $0x7b] sm:$0xff]  ;;  %v647_v62 = vpack.c.bf16 %v606_v57, %v605_v56 }
  0x2b   : > { %374 = vst.msk [vmem:[#allocation2 + $0x170] sm:$0xff] %vm327_vm1, %v4770_v35  ;;  %375 = vst.msk [vmem:[#allocation2 + $0x178] sm:$0xff] %vm327_vm1, %v4771_v36  ;;  %5349 = vmatprep.mubr.msk.bf16.mxu0 %vm327_vm1, %v2164_v51  ;;  %v2166_v63 = vpack.c.bf16 %v2125_v59, %v2124_v58  ;;  %v607_v0 = vld [vmem:[#allocation2 + $0x71] sm:$0xff]  ;;  %v608_v1 = vld [vmem:[#allocation2 + $0x79] sm:$0xff]  ;;  %v3103_v51 = vsel %vm739_vm0, %v6151_v27, 0 }
  0x2c   : > { %472 = vst.msk [vmem:[#allocation2 + $0x180] sm:$0xff] %vm327_vm1, %v4774_v39  ;;  %473 = vst.msk [vmem:[#allocation2 + $0x188] sm:$0xff] %vm327_vm1, %v4775_v10  ;;  %v2126_v2 = vld [vmem:[#allocation2 + $0x83] sm:$0xff]  ;;  %v2127_v4 = vld [vmem:[#allocation2 + $0x8b] sm:$0xff]  ;;  %v648_v11 = vpack.c.bf16 %v608_v1, %v607_v0 }
  0x2d   : > { %v609_v5 = vld [vmem:[#allocation2 + $0x81] sm:$0xff]  ;;  %v610_v6 = vld [vmem:[#allocation2 + $0x89] sm:$0xff]  ;;  %v2128_v7 = vld [vmem:[#allocation2 + $0x93] sm:$0xff]  ;;  %v2167_v12 = vpack.c.bf16 %v2127_v4, %v2126_v2 }
  0x2e   : > { %v2129_v8 = vld [vmem:[#allocation2 + $0x9b] sm:$0xff]  ;;  %v649_v13 = vpack.c.bf16 %v610_v6, %v609_v5  ;;  %v611_v15 = vld [vmem:[#allocation2 + $0x91] sm:$0xff]  ;;  %v2130_v17 = vld [vmem:[#allocation2 + $0xa3] sm:$0xff] }
  0x2f   : > { %v2168_v14 = vpack.c.bf16 %v2129_v8, %v2128_v7  ;;  %v612_v16 = vld [vmem:[#allocation2 + $0x99] sm:$0xff]  ;;  %v2131_v18 = vld [vmem:[#allocation2 + $0xab] sm:$0xff]  ;;  %v613_v19 = vld [vmem:[#allocation2 + $0xa1] sm:$0xff] }
  0x30   : > { %v614_v20 = vld [vmem:[#allocation2 + $0xa9] sm:$0xff]  ;;  %v2132_v21 = vld [vmem:[#allocation2 + $0xb3] sm:$0xff]  ;;  %v2133_v22 = vld [vmem:[#allocation2 + $0xbb] sm:$0xff]  ;;  %v650_v23 = vpack.c.bf16 %v612_v16, %v611_v15  ;;  %v2169_v24 = vpack.c.bf16 %v2131_v18, %v2130_v17 }
  0x31   : > { %5150 = vmatmul.mubr.msk.bf16.gmra.mrb[8].mxu1 %vm327_vm1, %v646_v60  ;;  %v651_v25 = vpack.c.bf16 %v614_v20, %v613_v19  ;;  %v2170_v26 = vpack.c.bf16 %v2133_v22, %v2132_v21  ;;  %v615_v28 = vld [vmem:[#allocation2 + $0xb1] sm:$0xff]  ;;  %v616_v29 = vld [vmem:[#allocation2 + $0xb9] sm:$0xff]  ;;  %v2134_v30 = vld [vmem:[#allocation2 + $0xc3] sm:$0xff] }
  0x32   : > { %5350 = vmatmul.mubr.msk.bf16.gmra.mrb[8].mxu0 %vm327_vm1, %v2165_v61  ;;  %5153 = vmatprep.mubr.msk.bf16.mxu1 %vm327_vm1, %v647_v62  ;;  %v2135_v31 = vld [vmem:[#allocation2 + $0xcb] sm:$0xff]  ;;  %v617_v32 = vld [vmem:[#allocation2 + $0xc1] sm:$0xff]  ;;  %v2534_v34 = vld [vmem:[#allocation2 + $0x14] sm:$0xff]  ;;  %v652_v36 = vpack.c.bf16 %v616_v29, %v615_v28 }
  0x33   : > { %5353 = vmatprep.mubr.msk.bf16.mxu0 %vm327_vm1, %v2166_v63  ;;  %v618_v33 = vld [vmem:[#allocation2 + $0xc9] sm:$0xff]  ;;  %v2535_v35 = vld [vmem:[#allocation2 + $0x1c] sm:$0xff]  ;;  %v2171_v37 = vpack.c.bf16 %v2135_v31, %v2134_v30  ;;  %v619_v41 = vld [vmem:[#allocation2 + $0xd1] sm:$0xff] }
  0x34   : > { %v653_v38 = vpack.c.bf16 %v618_v33, %v617_v32  ;;  %v2582_v39 = vpack.c.bf16 %v2535_v35, %v2534_v34  ;;  %v620_v42 = vld [vmem:[#allocation2 + $0xd9] sm:$0xff]  ;;  %v2536_v43 = vld [vmem:[#allocation2 + $0x24] sm:$0xff]  ;;  %v2537_v44 = vld [vmem:[#allocation2 + $0x2c] sm:$0xff] }
  0x35   : > { %v621_v45 = vld [vmem:[#allocation2 + $0xe1] sm:$0xff]  ;;  %v622_v46 = vld [vmem:[#allocation2 + $0xe9] sm:$0xff]  ;;  %v2538_v9 = vld [vmem:[#allocation2 + $0x34] sm:$0xff]  ;;  %v654_v48 = vpack.c.bf16 %v620_v42, %v619_v41  ;;  %v6210_v10 = vpack.c.bf16 %v2537_v44, %v2536_v43 }
  0x36   : > { %v2539_v47 = vld [vmem:[#allocation2 + $0x3c] sm:$0xff]  ;;  %v655_v49 = vpack.c.bf16 %v622_v46, %v621_v45  ;;  %v623_v52 = vld [vmem:[#allocation2 + $0xf1] sm:$0xff]  ;;  %v6218_v53 = vld [vmem:[%s6113_s10 + $0x8] sm:$0xff]  }
  0x37   : > { %v6212_v50 = vpack.c.bf16 %v2539_v47, %v2538_v9  ;;  %v624_v54 = vld [vmem:[#allocation2 + $0xf9] sm:$0xff]  ;;  %v2540_v55 = vld [vmem:[#allocation2 + $0x44] sm:$0xff]  ;;  %v2541_v56 = vld [vmem:[#allocation2 + $0x4c] sm:$0xff]  ;;  %v4778_v57 = vunpack.c.l.bf16 %v6218_v53 }
  0x38   : > { %v625_v27 = vld [vmem:[#allocation2 + $0x101] sm:$0xff]  ;;  %v626_v58 = vld [vmem:[#allocation2 + $0x109] sm:$0xff]  ;;  %v2542_v60 = vld [vmem:[#allocation2 + $0x54] sm:$0xff]  ;;  %v656_v62 = vpack.c.bf16 %v624_v54, %v623_v52  ;;  %v6234_v63 = vpack.c.bf16 %v2541_v56, %v2540_v55 }
  0x39   : > { %5154 = vmatmul.mubr.msk.bf16.gmra.mrb[12].mxu1 %vm327_vm1, %v648_v11  ;;  %v6229_v59 = vld [vmem:[%s6787_s2 + $0xe] sm:$0x3]  ;;  %v2543_v61 = vld [vmem:[#allocation2 + $0x5c] sm:$0xff]  ;;  %474 = vst.msk [vmem:[#allocation2 + $0x190] sm:$0xff] %vm327_vm1, %v4778_v57  ;;  %v657_v0 = vpack.c.bf16 %v626_v58, %v625_v27  ;;  %v627_v2 = vld [vmem:[#allocation2 + $0x111] sm:$0xff] }
  0x3a   : > { %5354 = vmatmul.mubr.msk.bf16.gmra.mrb[12].mxu0 %vm327_vm1, %v2167_v12  ;;  %5157 = vmatprep.mubr.msk.bf16.mxu1 %vm327_vm1, %v649_v13  ;;  %v6236_v1 = vpack.c.bf16 %v2543_v61, %v2542_v60  ;;  %v628_v4 = vld [vmem:[#allocation2 + $0x119] sm:$0xff]  ;;  %v2544_v5 = vld [vmem:[#allocation2 + $0x64] sm:$0xff]  ;;  %v2545_v6 = vld [vmem:[#allocation2 + $0x6c] sm:$0xff] }
  0x3b   : > { %5357 = vmatprep.mubr.msk.bf16.mxu0 %vm327_vm1, %v2168_v14  ;;  %v629_v7 = vld [vmem:[#allocation2 + $0x121] sm:$0xff]  ;;  %v630_v8 = vld [vmem:[#allocation2 + $0x129] sm:$0xff]  ;;  %v2546_v11 = vld [vmem:[#allocation2 + $0x74] sm:$0xff]  ;;  %v658_v13 = vpack.c.bf16 %v628_v4, %v627_v2  ;;  %v6244_v14 = vpack.c.bf16 %v2545_v6, %v2544_v5  ;;  %v4779_v6 = vunpack.c.h.bf16 %v6218_v53 }
  0x3c   : > { %v2547_v12 = vld [vmem:[#allocation2 + $0x7c] sm:$0xff]  ;;  %v659_v15 = vpack.c.bf16 %v630_v8, %v629_v7  ;;  %v631_v17 = vld [vmem:[#allocation2 + $0x131] sm:$0xff]  ;;  %v2548_v19 = vld [vmem:[#allocation2 + $0x84] sm:$0xff]  ;;  %v1415_v8 = vsel %vm739_vm0, %v6173_v40, 0 }
  0x3d   : > { %v6246_v16 = vpack.c.bf16 %v2547_v12, %v2546_v11  ;;  %v632_v18 = vld [vmem:[#allocation2 + $0x139] sm:$0xff]  ;;  %v2549_v20 = vld [vmem:[#allocation2 + $0x8c] sm:$0xff]  ;;  %v633_v21 = vld [vmem:[#allocation2 + $0x141] sm:$0xff]  ;;  %475 = vst.msk [vmem:[#allocation2 + $0x198] sm:$0xff] %vm327_vm1, %v4779_v6 }
  0x3e   : > { %v634_v22 = vld [vmem:[#allocation2 + $0x149] sm:$0xff]  ;;  %v635_v30 = vld [vmem:[#allocation2 + $0x151] sm:$0xff]  ;;  %v636_v31 = vld [vmem:[#allocation2 + $0x159] sm:$0xff] }
  0x3f   : > { %v661_v28 = vpack.c.bf16 %v634_v22, %v633_v21  ;;  %v2552_v32 = vld [vmem:[#allocation2 + $0xa4] sm:$0xff]  ;;  %v2553_v33 = vld [vmem:[#allocation2 + $0xac] sm:$0xff]  ;;  %v640_v44 = vld [vmem:[#allocation2 + $0x179] sm:$0xff] }
  0x40   : > { %v637_v34 = vld [vmem:[#allocation2 + $0x161] sm:$0xff]  ;;  %v638_v35 = vld [vmem:[#allocation2 + $0x169] sm:$0xff]  ;;  %v639_v43 = vld [vmem:[#allocation2 + $0x171] sm:$0xff] }
  0x41   : > { %5158 = vmatmul.mubr.msk.bf16.gmra.mrb[16].mxu1 %vm327_vm1, %v650_v23  ;;  %v2550_v23 = vld [vmem:[#allocation2 + $0x94] sm:$0xff]  ;;  %v663_v41 = vpack.c.bf16 %v638_v35, %v637_v34  ;;  %v2556_v45 = vld [vmem:[#allocation2 + $0xc4] sm:$0xff]  ;;  %v2557_v46 = vld [vmem:[#allocation2 + $0xcc] sm:$0xff] }
  0x42   : > { %5358 = vmatmul.mubr.msk.bf16.gmra.mrb[16].mxu0 %vm327_vm1, %v2169_v24  ;;  %5161 = vmatprep.mubr.msk.bf16.mxu1 %vm327_vm1, %v651_v25  ;;  %v2551_v24 = vld [vmem:[#allocation2 + $0x9c] sm:$0xff]  ;;  %v660_v25 = vpack.c.bf16 %v632_v18, %v631_v17  ;;  %v521_v47 = vld [vmem:[#allocation2 + $0x8] sm:$0xff]  ;;  %v6274_v52 = vpack.c.bf16 %v2557_v46, %v2556_v45  ;;  %v522_v56 = vld [vmem:[#allocation2 + $0x10] sm:$0xff] }
  0x43   : > { %5361 = vmatprep.mubr.msk.bf16.mxu0 %vm327_vm1, %v2170_v26  ;;  %v6254_v26 = vpack.c.bf16 %v2549_v20, %v2548_v19  ;;  %v6256_v29 = vpack.c.bf16 %v2551_v24, %v2550_v23  ;;  %v520_v9 = vld [vmem:[#allocation2] sm:$0xff]  ;;  %v523_v57 = vld [vmem:[#allocation2 + $0x18] sm:$0xff]  ;;  %v2561_v58 = vld [vmem:[#allocation2 + $0xec] sm:$0xff] }
  0x44   : > { %v568_v54 = vpack.c.bf16 %v521_v47, %v520_v9  ;;  %v2560_v27 = vld [vmem:[#allocation2 + $0xe4] sm:$0xff]  ;;  %v569_v2 = vpack.c.bf16 %v523_v57, %v522_v56  ;;  %v4892_v4 = vld [vmem:[%s6113_s10 + $0x10] sm:$0xff]   ;;  %v527_v40 = vld [vmem:[#allocation2 + $0x38] sm:$0xff] }
  0x45   : > { %v524_v60 = vld [vmem:[#allocation2 + $0x20] sm:$0xff]  ;;  %v525_v61 = vld [vmem:[#allocation2 + $0x28] sm:$0xff]  ;;  %v6285_v5 = vpack.c.bf16 %v2561_v58, %v2560_v27  ;;  %v4782_v7 = vunpack.c.l.bf16 %v4892_v4  ;;  %v526_v53 = vld [vmem:[#allocation2 + $0x30] sm:$0xff] }
  0x46   : > { %v570_v11 = vpack.c.bf16 %v525_v61, %v524_v60  ;;  %v2565_v17 = vld [vmem:[#allocation2 + $0x10c] sm:$0xff]  ;;  %v528_v18 = vld [vmem:[#allocation2 + $0x40] sm:$0xff]  ;;  %v2566_v20 = vld [vmem:[#allocation2 + $0x114] sm:$0xff]  ;;  %v571_v22 = vpack.c.bf16 %v527_v40, %v526_v53 }
  0x47   : > { %476 = vst.msk [vmem:[#allocation2 + $0x1a0] sm:$0xff] %vm327_vm1, %v4782_v7  ;;  %v529_v19 = vld [vmem:[#allocation2 + $0x48] sm:$0xff]  ;;  %v2567_v21 = vld [vmem:[#allocation2 + $0x11c] sm:$0xff]  ;;  %v2570_v35 = vld [vmem:[#allocation2 + $0x134] sm:$0xff] }
  0x48   : > { %v572_v24 = vpack.c.bf16 %v529_v19, %v528_v18  ;;  %v533_v34 = vld [vmem:[#allocation2 + $0x68] sm:$0xff]  ;;  %v535_v45 = vld [vmem:[#allocation2 + $0x78] sm:$0xff]  ;;  %v536_v47 = vld [vmem:[#allocation2 + $0x80] sm:$0xff] }
  0x49   : > { %5162 = vmatmul.mubr.msk.bf16.gmra.mrb[20].mxu1 %vm327_vm1, %v652_v36  ;;  %v2554_v36 = vld [vmem:[#allocation2 + $0xb4] sm:$0xff]  ;;  %v2572_v46 = vld [vmem:[#allocation2 + $0x144] sm:$0xff]  ;;  %v2573_v9 = vld [vmem:[#allocation2 + $0x14c] sm:$0xff] }
  0x4a   : > { %5362 = vmatmul.mubr.msk.bf16.gmra.mrb[20].mxu0 %vm327_vm1, %v2171_v37  ;;  %5165 = vmatprep.mubr.msk.bf16.mxu1 %vm327_vm1, %v653_v38  ;;  %v2555_v37 = vld [vmem:[#allocation2 + $0xbc] sm:$0xff]  ;;  %v662_v38 = vpack.c.bf16 %v636_v31, %v635_v30  ;;  %v2568_v31 = vld [vmem:[#allocation2 + $0x124] sm:$0xff]  ;;  %v6327_v56 = vpack.c.bf16 %v2573_v9, %v2572_v46  ;;  %v538_v58 = vld [vmem:[#allocation2 + $0x90] sm:$0xff] }
  0x4b   : > { %5391 = vmatprep.mubr.msk.bf16.mxu0 %vm327_vm1, %v2582_v39  ;;  %v6264_v39 = vpack.c.bf16 %v2553_v33, %v2552_v32  ;;  %v6266_v42 = vpack.c.bf16 %v2555_v37, %v2554_v36  ;;  %v531_v30 = vld [vmem:[#allocation2 + $0x58] sm:$0xff]  ;;  %v2569_v32 = vld [vmem:[#allocation2 + $0x12c] sm:$0xff]  ;;  %v532_v33 = vld [vmem:[#allocation2 + $0x60] sm:$0xff] }
  0x4c   : > { %v2571_v36 = vld [vmem:[#allocation2 + $0x13c] sm:$0xff]  ;;  %v2576_v61 = vld [vmem:[#allocation2 + $0x164] sm:$0xff]  ;;  %v2578_v4 = vld [vmem:[#allocation2 + $0x174] sm:$0xff] }
  0x4d   : > { %v539_v60 = vld [vmem:[#allocation2 + $0x98] sm:$0xff]  ;;  %v542_v40 = vld [vmem:[#allocation2 + $0xb0] sm:$0xff]  ;;  %v544_v19 = vld [vmem:[#allocation2 + $0xc0] sm:$0xff] }
  0x4e   : > { %v2579_v6 = vld [vmem:[#allocation2 + $0x17c] sm:$0xff]  ;;  %v577_v7 = vpack.c.bf16 %v539_v60, %v538_v58  ;;  %v2581_v18 = vld [vmem:[#allocation2 + $0x18c] sm:$0xff] }
  0x4f   : > { %v6339_v53 = vpack.c.bf16 %v2579_v6, %v2578_v4  ;;  %v555_v46 = vld [vmem:[#allocation2 + $0x118] sm:$0xff]  ;;  %v557_v9 = vld [vmem:[#allocation2 + $0x128] sm:$0xff]  ;;  %v562_v58 = vld [vmem:[#allocation2 + $0x150] sm:$0xff] }
  0x50   : > { %v564_v60 = vld [vmem:[#allocation2 + $0x160] sm:$0xff]  ;;  %v1269_v4 = vld [vmem:[#allocation2 + $0xa] sm:$0xff] }
  0x51   : > { %5166 = vmatmul.mubr.msk.bf16.gmra.mrb[24].mxu1 %vm327_vm1, %v654_v48  ;;  %v2558_v48 = vld [vmem:[#allocation2 + $0xd4] sm:$0xff] }
  0x52   : > { %5392 = vmatmul.mubr.msk.bf16.vlgmr.msra.gmra.mrb[0].mxu0 %vm327_vm1, %v6210_v10  ;;  %5169 = vmatprep.mubr.msk.bf16.mxu1 %vm327_vm1, %v655_v49  ;;  %v2559_v49 = vld [vmem:[#allocation2 + $0xdc] sm:$0xff] }
  0x53   : > { %5440 = vmatpush3.bf16.msra.mxu0 %v3103_v51  ;;  %5395 = vmatprep.mubr.msk.bf16.mxu0 %vm327_vm1, %v6212_v50  ;;  %v664_v51 = vpack.c.bf16 %v640_v44, %v639_v43  ;;  %v6276_v55 = vpack.c.bf16 %v2559_v49, %v2558_v48  ;;  %v6319_v43 = vpack.c.bf16 %v2571_v36, %v2570_v35  ;;  %v534_v44 = vld [vmem:[#allocation2 + $0x70] sm:$0xff]  ;;  %v537_v48 = vld [vmem:[#allocation2 + $0x88] sm:$0xff]  ;;  %v3525_v35 = vsel %vm739_vm0, %v6229_v59, 0 }
  0x54   : > { %5983 = vmatprep.subr.msk.bf16.mxu0 %vm739_vm0, %v6229_v59  ;;  %v2574_v49 = vld [vmem:[#allocation2 + $0x154] sm:$0xff]  ;;  %v576_v57 = vpack.c.bf16 %v537_v48, %v536_v47  ;;  %v6361_v36 = vld [vmem:[%s6787_s2 + $0x10] sm:$0x3]  ;;  %v553_v59 = vld [vmem:[#allocation2 + $0x108] sm:$0xff] }
  0x59   : > { %5170 = vmatmul.mubr.msk.bf16.gmra.mrb[28].mxu1 %vm327_vm1, %v656_v62  ;;  %v2562_v62 = vld [vmem:[#allocation2 + $0xf4] sm:$0xff] }
  0x5a   : > { %5396 = vmatmul.mubr.msk.bf16.gmra.mrb[4].mxu0 %vm327_vm1, %v6234_v63  ;;  %5173 = vmatprep.mubr.msk.bf16.mxu1 %vm327_vm1, %v657_v0  ;;  %v2563_v0 = vld [vmem:[#allocation2 + $0xfc] sm:$0xff] }
  0x5b   : > { %5399 = vmatprep.mubr.msk.bf16.mxu0 %vm327_vm1, %v6236_v1  ;;  %v6290_v12 = vpack.c.bf16 %v2563_v0, %v2562_v62  ;;  %v2577_v62 = vld [vmem:[#allocation2 + $0x16c] sm:$0xff]  ;;  %v540_v0 = vld [vmem:[#allocation2 + $0xa0] sm:$0xff] }
  0x61   : > { %5174 = vmatmul.mubr.msk.bf16.gmra.mrb[32].mxu1 %vm327_vm1, %v658_v13  ;;  %v6298_v13 = vld [vmem:[%s6787_s2 + $0x6] sm:$0x3] }
  0x62   : > { %5400 = vmatmul.mubr.msk.bf16.gmra.mrb[8].mxu0 %vm327_vm1, %v6244_v14  ;;  %5177 = vmatprep.mubr.msk.bf16.mxu1 %vm327_vm1, %v659_v15  ;;  %v2564_v15 = vld [vmem:[#allocation2 + $0x104] sm:$0xff] }
  0x63   : > { %5403 = vmatprep.mubr.msk.bf16.mxu0 %vm327_vm1, %v6246_v16  ;;  %v6307_v23 = vpack.c.bf16 %v2565_v17, %v2564_v15  ;;  %v543_v15 = vld [vmem:[#allocation2 + $0xb8] sm:$0xff]  ;;  %v2580_v17 = vld [vmem:[#allocation2 + $0x184] sm:$0xff] }
  0x69   : > { %5178 = vmatmul.mubr.msk.bf16.gmra.mrb[36].mxu1 %vm327_vm1, %v660_v25  ;;  %v6309_v25 = vpack.c.bf16 %v2567_v21, %v2566_v20  ;;  %v545_v20 = vld [vmem:[#allocation2 + $0xc8] sm:$0xff]  ;;  %v579_v21 = vpack.c.bf16 %v543_v15, %v542_v40 }
  0x6a   : > { %5404 = vmatmul.mubr.msk.bf16.gmra.mrb[12].mxu0 %vm327_vm1, %v6254_v26  ;;  %5181 = vmatprep.mubr.msk.bf16.mxu1 %vm327_vm1, %v661_v28  ;;  %v530_v28 = vld [vmem:[#allocation2 + $0x50] sm:$0xff] }
  0x6b   : > { %5407 = vmatprep.mubr.msk.bf16.mxu0 %vm327_vm1, %v6256_v29  ;;  %v573_v37 = vpack.c.bf16 %v531_v30, %v530_v28  ;;  %v546_v28 = vld [vmem:[#allocation2 + $0xd0] sm:$0xff]  ;;  %v547_v30 = vld [vmem:[#allocation2 + $0xd8] sm:$0xff] }
  0x6c   : > { %v1273_v40 = vld [vmem:[#allocation2 + $0x2a] sm:$0xff] }
  0x71   : > { %5182 = vmatmul.mubr.msk.bf16.gmra.mrb[40].mxu1 %vm327_vm1, %v662_v38  ;;  %v6317_v38 = vpack.c.bf16 %v2569_v32, %v2568_v31  ;;  %v548_v31 = vld [vmem:[#allocation2 + $0xe0] sm:$0xff]  ;;  %v549_v32 = vld [vmem:[#allocation2 + $0xe8] sm:$0xff] }
  0x72   : > { %5408 = vmatmul.mubr.msk.bf16.gmra.mrb[16].mxu0 %vm327_vm1, %v6264_v39  ;;  %5185 = vmatprep.mubr.msk.bf16.mxu1 %vm327_vm1, %v663_v41  ;;  %v574_v41 = vpack.c.bf16 %v533_v34, %v532_v33  ;;  %v581_v33 = vpack.c.bf16 %v547_v30, %v546_v28  ;;  %v582_v34 = vpack.c.bf16 %v549_v32, %v548_v31  ;;  %v1281_v28 = vld [vmem:[#allocation2 + $0x6a] sm:$0xff]  ;;  %v1283_v32 = vld [vmem:[#allocation2 + $0x7a] sm:$0xff] }
  0x73   : > { %5411 = vmatprep.mubr.msk.bf16.mxu0 %vm327_vm1, %v6266_v42 }
  0x79   : > { %5186 = vmatmul.mubr.msk.bf16.gmra.mrb[44].mxu1 %vm327_vm1, %v664_v51  ;;  %v2575_v51 = vld [vmem:[#allocation2 + $0x15c] sm:$0xff] }
  0x7a   : > { %5412 = vmatmul.mubr.msk.bf16.gmra.mrb[20].mxu0 %vm327_vm1, %v6274_v52  ;;  %5191 = vmatprep.mubr.msk.bf16.mxu1 %vm327_vm1, %v568_v54  ;;  %v575_v54 = vpack.c.bf16 %v535_v45, %v534_v44  ;;  %v6329_v27 = vpack.c.bf16 %v2575_v51, %v2574_v49  ;;  %v558_v49 = vld [vmem:[#allocation2 + $0x130] sm:$0xff]  ;;  %v560_v51 = vld [vmem:[#allocation2 + $0x140] sm:$0xff] }
  0x7b   : > { %5415 = vmatprep.mubr.msk.bf16.mxu0 %vm327_vm1, %v6276_v55 }
  0x81   : > { %5192 = vmatmul.mubr.msk.bf16.vlgmr.msra.gmra.mrb[0].mxu1 %vm327_vm1, %v569_v2  ;;  %v541_v2 = vld [vmem:[#allocation2 + $0xa8] sm:$0xff] }
  0x82   : > { %5240 = vmatpush3.bf16.msra.mxu1 %v1415_v8  ;;  %5416 = vmatmul.mubr.msk.bf16.gmra.mrb[24].mxu0 %vm327_vm1, %v6285_v5  ;;  %v6337_v8 = vpack.c.bf16 %v2577_v62, %v2576_v61  ;;  %v565_v61 = vld [vmem:[#allocation2 + $0x168] sm:$0xff] }
  0x83   : > { %5195 = vmatprep.mubr.msk.bf16.mxu1 %vm327_vm1, %v570_v11  ;;  %5419 = vmatprep.mubr.msk.bf16.mxu0 %vm327_vm1, %v6290_v12  ;;  %v578_v11 = vpack.c.bf16 %v541_v2, %v540_v0  ;;  %v566_v0 = vld [vmem:[#allocation2 + $0x170] sm:$0xff]  ;;  %v1268_v2 = vld [vmem:[#allocation2 + $0x2] sm:$0xff] }
  0x84   : > { %5978 = vmatprep.subr.msk.bf16.mxu1 %vm739_vm0, %v6298_v13 }
  0x89   : > { %5196 = vmatmul.mubr.msk.bf16.gmra.mrb[4].mxu1 %vm327_vm1, %v571_v22  ;;  %v6347_v22 = vpack.c.bf16 %v2581_v18, %v2580_v17  ;;  %v1275_v18 = vld [vmem:[#allocation2 + $0x3a] sm:$0xff] }
  0x8a   : > { %5420 = vmatmul.mubr.msk.bf16.gmra.mrb[28].mxu0 %vm327_vm1, %v6307_v23  ;;  %5199 = vmatprep.mubr.msk.bf16.mxu1 %vm327_vm1, %v572_v24  ;;  %v580_v24 = vpack.c.bf16 %v545_v20, %v544_v19  ;;  %v1277_v19 = vld [vmem:[#allocation2 + $0x4a] sm:$0xff] }
  0x8b   : > { %5423 = vmatprep.mubr.msk.bf16.mxu0 %vm327_vm1, %v6309_v25 }
  0x91   : > { %5200 = vmatmul.mubr.msk.bf16.gmra.mrb[8].mxu1 %vm327_vm1, %v573_v37  ;;  %v551_v37 = vld [vmem:[#allocation2 + $0xf8] sm:$0xff] }
  0x92   : > { %5424 = vmatmul.mubr.msk.bf16.gmra.mrb[32].mxu0 %vm327_vm1, %v6317_v38  ;;  %5203 = vmatprep.mubr.msk.bf16.mxu1 %vm327_vm1, %v574_v41  ;;  %v552_v41 = vld [vmem:[#allocation2 + $0x100] sm:$0xff] }
  0x93   : > { %5427 = vmatprep.mubr.msk.bf16.mxu0 %vm327_vm1, %v6319_v43  ;;  %v584_v45 = vpack.c.bf16 %v553_v59, %v552_v41 }
  0x99   : > { %5204 = vmatmul.mubr.msk.bf16.gmra.mrb[12].mxu1 %vm327_vm1, %v575_v54  ;;  %v561_v54 = vld [vmem:[#allocation2 + $0x148] sm:$0xff] }
  0x9a   : > { %5428 = vmatmul.mubr.msk.bf16.gmra.mrb[36].mxu0 %vm327_vm1, %v6327_v56  ;;  %5207 = vmatprep.mubr.msk.bf16.mxu1 %vm327_vm1, %v576_v57 }
  0x9b   : > { %5431 = vmatprep.mubr.msk.bf16.mxu0 %vm327_vm1, %v6329_v27 }
  0xa1   : > { %5208 = vmatmul.mubr.msk.bf16.gmra.mrb[16].mxu1 %vm327_vm1, %v577_v7  ;;  %v1270_v7 = vld [vmem:[#allocation2 + $0x12] sm:$0xff] }
  0xa2   : > { %5432 = vmatmul.mubr.msk.bf16.gmra.mrb[40].mxu0 %vm327_vm1, %v6337_v8  ;;  %5211 = vmatprep.mubr.msk.bf16.mxu1 %vm327_vm1, %v578_v11  ;;  %v1272_v11 = vld [vmem:[#allocation2 + $0x22] sm:$0xff] }
  0xa3   : > { %5435 = vmatprep.mubr.msk.bf16.mxu0 %vm327_vm1, %v6339_v53  ;;  %v6404_v17 = vpack.c.bf16 %v1273_v40, %v1272_v11  ;;  %v3387_v11 = vld [vmem:[#allocation2 + $0x6d] sm:$0xff] }
  0xa9   : > { %5212 = vmatmul.mubr.msk.bf16.gmra.mrb[20].mxu1 %vm327_vm1, %v579_v21 }
  0xaa   : > { %5436 = vmatmul.mubr.msk.bf16.gmra.mrb[44].mxu0 %vm327_vm1, %v6347_v22  ;;  %5215 = vmatprep.mubr.msk.bf16.mxu1 %vm327_vm1, %v580_v24  ;;  %v1280_v24 = vld [vmem:[#allocation2 + $0x62] sm:$0xff] }
  0xab   : > { %5441 = vmatprep.mubr.msk.bf16.mxu0 %vm327_vm1, %v6210_v10  ;;  %v550_v10 = vld [vmem:[#allocation2 + $0xf0] sm:$0xff]  ;;  %v6432_v31 = vpack.c.bf16 %v1281_v28, %v1280_v24  ;;  %v3390_v24 = vld [vmem:[#allocation2 + $0x85] sm:$0xff] }
  0xac   : > { %v583_v44 = vpack.c.bf16 %v551_v37, %v550_v10  ;;  %v1287_v10 = vld [vmem:[#allocation2 + $0x9a] sm:$0xff]  ;;  %v1289_v37 = vld [vmem:[#allocation2 + $0xaa] sm:$0xff] }
  0xad   : > { %v3391_v28 = vld [vmem:[#allocation2 + $0x8d] sm:$0xff] }
  0xb1   : > { %5216 = vmatmul.mubr.msk.bf16.gmra.mrb[24].mxu1 %vm327_vm1, %v581_v33  ;;  %v1285_v33 = vld [vmem:[#allocation2 + $0x8a] sm:$0xff] }
  0xb2   : > { %5442 = vmatmul.mubr.msk.bf16.vlgmr.msra.gmra.mrb[0].mxu0 %vm327_vm1, %v6212_v50  ;;  %5219 = vmatprep.mubr.msk.bf16.mxu1 %vm327_vm1, %v582_v34  ;;  %v554_v50 = vld [vmem:[#allocation2 + $0x110] sm:$0xff] }
  0xb3   : > { %5490 = vmatpush3.bf16.msra.mxu0 %v3525_v35  ;;  %5445 = vmatprep.mubr.msk.bf16.mxu0 %vm327_vm1, %v6234_v63  ;;  %v556_v63 = vld [vmem:[#allocation2 + $0x120] sm:$0xff]  ;;  %v585_v47 = vpack.c.bf16 %v555_v46, %v554_v50  ;;  %v1293_v46 = vld [vmem:[#allocation2 + $0xca] sm:$0xff] }
  0xb4   : > { %5984 = vmatprep.subr.msk.bf16.mxu0 %vm739_vm0, %v6361_v36  ;;  %v586_v48 = vpack.c.bf16 %v557_v9, %v556_v63  ;;  %v1292_v50 = vld [vmem:[#allocation2 + $0xc2] sm:$0xff]  ;;  %v3379_v9 = vld [vmem:[#allocation2 + $0x2d] sm:$0xff] }
  0xb5   : > { %v3378_v63 = vld [vmem:[#allocation2 + $0x25] sm:$0xff] }
  0xb9   : > { %5220 = vmatmul.mubr.msk.bf16.gmra.mrb[28].mxu1 %vm327_vm1, %v583_v44  ;;  %v1291_v44 = vld [vmem:[#allocation2 + $0xba] sm:$0xff] }
  0xba   : > { %5446 = vmatmul.mubr.msk.bf16.gmra.mrb[4].mxu0 %vm327_vm1, %v6236_v1  ;;  %5223 = vmatprep.mubr.msk.bf16.mxu1 %vm327_vm1, %v584_v45  ;;  %v559_v1 = vld [vmem:[#allocation2 + $0x138] sm:$0xff] }
  0xbb   : > { %5449 = vmatprep.mubr.msk.bf16.mxu0 %vm327_vm1, %v6244_v14  ;;  %v587_v57 = vpack.c.bf16 %v559_v1, %v558_v49  ;;  %v588_v14 = vpack.c.bf16 %v561_v54, %v560_v51  ;;  %v3002_v45 = vld [vmem:[#allocation2 + $0x194] sm:$0xff]  ;;  %v6468_v49 = vpack.c.bf16 %v1293_v46, %v1292_v50  ;;  %v3381_v54 = vld [vmem:[#allocation2 + $0x3d] sm:$0xff] }
  0xbc   : > { %v1295_v1 = vld [vmem:[#allocation2 + $0xda] sm:$0xff] }
  0xbd   : > { %v3380_v51 = vld [vmem:[#allocation2 + $0x35] sm:$0xff] }
  0xc1   : > { %5224 = vmatmul.mubr.msk.bf16.gmra.mrb[32].mxu1 %vm327_vm1, %v585_v47 }
  0xc2   : > { %5450 = vmatmul.mubr.msk.bf16.gmra.mrb[8].mxu0 %vm327_vm1, %v6246_v16  ;;  %5227 = vmatprep.mubr.msk.bf16.mxu1 %vm327_vm1, %v586_v48  ;;  %v563_v16 = vld [vmem:[#allocation2 + $0x158] sm:$0xff] }
  0xc3   : > { %5453 = vmatprep.mubr.msk.bf16.mxu0 %vm327_vm1, %v6254_v26  ;;  %v589_v62 = vpack.c.bf16 %v563_v16, %v562_v58  ;;  %v590_v26 = vpack.c.bf16 %v565_v61, %v564_v60  ;;  %v3382_v58 = vld [vmem:[#allocation2 + $0x45] sm:$0xff]  ;;  %v3383_v16 = vld [vmem:[#allocation2 + $0x4d] sm:$0xff]  ;;  %v3427_v61 = vpack.c.bf16 %v3381_v54, %v3380_v51 }
  0xc4   : > { %v1312_v51 = vld [vmem:[#allocation2 + $0x162] sm:$0xff]  ;;  %v1313_v54 = vld [vmem:[#allocation2 + $0x16a] sm:$0xff] }
  0xc9   : > { %5228 = vmatmul.mubr.msk.bf16.gmra.mrb[36].mxu1 %vm327_vm1, %v587_v57  ;;  %v1296_v57 = vld [vmem:[#allocation2 + $0xe2] sm:$0xff] }
  0xca   : > { %5454 = vmatmul.mubr.msk.bf16.gmra.mrb[12].mxu0 %vm327_vm1, %v6256_v29  ;;  %5231 = vmatprep.mubr.msk.bf16.mxu1 %vm327_vm1, %v588_v14  ;;  %v567_v29 = vld [vmem:[#allocation2 + $0x178] sm:$0xff]  ;;  %v1297_v14 = vld [vmem:[#allocation2 + $0xea] sm:$0xff] }
  0xcb   : > { %5457 = vmatprep.mubr.msk.bf16.mxu0 %vm327_vm1, %v6264_v39  ;;  %v591_v6 = vpack.c.bf16 %v567_v29, %v566_v0  ;;  %v1316_v39 = vpack.c.bf16 %v1269_v4, %v1268_v2  ;;  %v3947_v0 = vsel %vm739_vm0, %v6361_v36, 0  ;;  %v1298_v29 = vld [vmem:[#allocation2 + $0xf2] sm:$0xff]  ;;  %v1299_v2 = vld [vmem:[#allocation2 + $0xfa] sm:$0xff] }
  0xcc   : > { %v3384_v4 = vld [vmem:[#allocation2 + $0x55] sm:$0xff]  ;;  %v6488_v36 = vpack.c.bf16 %v1299_v2, %v1298_v29 }
  0xcd   : > { %v1315_v29 = vld [vmem:[#allocation2 + $0x17a] sm:$0xff] }
  0xce   : > { %v3400_v2 = vld [vmem:[#allocation2 + $0xd5] sm:$0xff] }
  0xd1   : > { %5232 = vmatmul.mubr.msk.bf16.gmra.mrb[40].mxu1 %vm327_vm1, %v589_v62  ;;  %v6478_v62 = vpack.c.bf16 %v1297_v14, %v1296_v57  ;;  %v3398_v57 = vld [vmem:[#allocation2 + $0xc5] sm:$0xff]  ;;  %v3399_v14 = vld [vmem:[#allocation2 + $0xcd] sm:$0xff] }
  0xd2   : > { %5458 = vmatmul.mubr.msk.bf16.gmra.mrb[16].mxu0 %vm327_vm1, %v6266_v42  ;;  %5235 = vmatprep.mubr.msk.bf16.mxu1 %vm327_vm1, %v590_v26  ;;  %v1271_v42 = vld [vmem:[#allocation2 + $0x1a] sm:$0xff]  ;;  %v3428_v26 = vpack.c.bf16 %v3383_v16, %v3382_v58 }
  0xd3   : > { %5461 = vmatprep.mubr.msk.bf16.mxu0 %vm327_vm1, %v6274_v52  ;;  %v6400_v15 = vpack.c.bf16 %v1271_v42, %v1270_v7  ;;  %v1837_v52 = vsel %vm739_vm0, %v6298_v13, 0  ;;  %v5993_v13 = vld [vmem:[%s6787_s2 + $0x8] sm:$0x3]  ;;  %v1301_v7 = vld [vmem:[#allocation2 + $0x10a] sm:$0xff] }
  0xd4   : > { %v3386_v42 = vld [vmem:[#allocation2 + $0x65] sm:$0xff] }
  0xd9   : > { %5236 = vmatmul.mubr.msk.bf16.gmra.mrb[44].mxu1 %vm327_vm1, %v591_v6  ;;  %v3385_v6 = vld [vmem:[#allocation2 + $0x5d] sm:$0xff] }
  0xda   : > { %5462 = vmatmul.mubr.msk.bf16.gmra.mrb[20].mxu0 %vm327_vm1, %v6276_v55  ;;  %5241 = vmatprep.mubr.msk.bf16.mxu1 %vm327_vm1, %v1316_v39  ;;  %v1274_v55 = vld [vmem:[#allocation2 + $0x32] sm:$0xff]  ;;  %v1300_v39 = vld [vmem:[#allocation2 + $0x102] sm:$0xff]  ;;  %v3429_v40 = vpack.c.bf16 %v3385_v6, %v3384_v4 }
  0xdb   : > { %5465 = vmatprep.mubr.msk.bf16.mxu0 %vm327_vm1, %v6285_v5  ;;  %v1276_v5 = vld [vmem:[#allocation2 + $0x42] sm:$0xff]  ;;  %v6418_v20 = vpack.c.bf16 %v1275_v18, %v1274_v55  ;;  %v3430_v55 = vpack.c.bf16 %v3387_v11, %v3386_v42  ;;  %v1302_v18 = vld [vmem:[#allocation2 + $0x112] sm:$0xff] }
  0xdc   : > { %v6420_v21 = vpack.c.bf16 %v1277_v19, %v1276_v5  ;;  %v1303_v5 = vld [vmem:[#allocation2 + $0x11a] sm:$0xff]  ;;  %v3402_v6 = vld [vmem:[#allocation2 + $0xe5] sm:$0xff] }
  0xdd   : > { %v3388_v19 = vld [vmem:[#allocation2 + $0x75] sm:$0xff]  ;;  %v3401_v4 = vld [vmem:[#allocation2 + $0xdd] sm:$0xff] }
  0xde   : > { %v3437_v42 = vpack.c.bf16 %v3401_v4, %v3400_v2  ;;  %v3812_v2 = vld [vmem:[#allocation2 + $0x86] sm:$0xff]  ;;  %v3813_v4 = vld [vmem:[#allocation2 + $0x8e] sm:$0xff] }
  0xe1   : > { %5242 = vmatmul.mubr.msk.bf16.vlgmr.msra.gmra.mrb[0].mxu1 %vm327_vm1, %v6400_v15 }
  0xe2   : > { %5290 = vmatpush3.bf16.msra.mxu1 %v1837_v52  ;;  %5466 = vmatmul.mubr.msk.bf16.gmra.mrb[24].mxu0 %vm327_vm1, %v6290_v12  ;;  %v1278_v12 = vld [vmem:[#allocation2 + $0x52] sm:$0xff]  ;;  %v6490_v52 = vpack.c.bf16 %v1301_v7, %v1300_v39 }
  0xe3   : > { %5245 = vmatprep.mubr.msk.bf16.mxu1 %vm327_vm1, %v6404_v17  ;;  %5469 = vmatprep.mubr.msk.bf16.mxu0 %vm327_vm1, %v6307_v23  ;;  %v1279_v23 = vld [vmem:[#allocation2 + $0x5a] sm:$0xff]  ;;  %v3403_v39 = vld [vmem:[#allocation2 + $0xed] sm:$0xff] }
  0xe4   : > { %5980 = vmatprep.subr.msk.bf16.mxu1 %vm739_vm0, %v5993_v13  ;;  %v6430_v30 = vpack.c.bf16 %v1279_v23, %v1278_v12  ;;  %v3389_v13 = vld [vmem:[#allocation2 + $0x7d] sm:$0xff]  ;;  %v1305_v23 = vld [vmem:[#allocation2 + $0x12a] sm:$0xff]  ;;  %v3438_v11 = vpack.c.bf16 %v3403_v39, %v3402_v6  ;;  %v3854_v39 = vpack.c.bf16 %v3813_v4, %v3812_v2 }
  0xe5   : > { %v1304_v12 = vld [vmem:[#allocation2 + $0x122] sm:$0xff]  ;;  %v2151_v4 = vld [vmem:[#allocation2 + $0x14b] sm:$0xff] }
  0xe6   : > { %v2150_v2 = vld [vmem:[#allocation2 + $0x143] sm:$0xff] }
  0xe9   : > { %5246 = vmatmul.mubr.msk.bf16.gmra.mrb[4].mxu1 %vm327_vm1, %v6418_v20 }
  0xea   : > { %5470 = vmatmul.mubr.msk.bf16.gmra.mrb[28].mxu0 %vm327_vm1, %v6309_v25  ;;  %5249 = vmatprep.mubr.msk.bf16.mxu1 %vm327_vm1, %v6420_v21  ;;  %v1282_v25 = vld [vmem:[#allocation2 + $0x72] sm:$0xff] }
  0xeb   : > { %5473 = vmatprep.mubr.msk.bf16.mxu0 %vm327_vm1, %v6317_v38  ;;  %v1284_v38 = vld [vmem:[#allocation2 + $0x82] sm:$0xff]  ;;  %v6442_v34 = vpack.c.bf16 %v1283_v32, %v1282_v25  ;;  %v6498_v25 = vpack.c.bf16 %v1303_v5, %v1302_v18  ;;  %v3431_v32 = vpack.c.bf16 %v3389_v13, %v3388_v19  ;;  %v3407_v5 = vld [vmem:[#allocation2 + $0x10d] sm:$0xff] }
  0xec   : > { %v6444_v35 = vpack.c.bf16 %v1285_v33, %v1284_v38  ;;  %v6500_v38 = vpack.c.bf16 %v1305_v23, %v1304_v12  ;;  %v3432_v33 = vpack.c.bf16 %v3391_v28, %v3390_v24  ;;  %v3406_v18 = vld [vmem:[#allocation2 + $0x105] sm:$0xff]  ;;  %v3409_v12 = vld [vmem:[#allocation2 + $0x11d] sm:$0xff]  ;;  %v3411_v24 = vld [vmem:[#allocation2 + $0x12d] sm:$0xff] }
  0xed   : > { %v3440_v13 = vpack.c.bf16 %v3407_v5, %v3406_v18  ;;  %v3410_v23 = vld [vmem:[#allocation2 + $0x125] sm:$0xff]  ;;  %v3821_v5 = vld [vmem:[#allocation2 + $0xce] sm:$0xff] }
  0xee   : > { %v3820_v18 = vld [vmem:[#allocation2 + $0xc6] sm:$0xff] }
  0xf1   : > { %5250 = vmatmul.mubr.msk.bf16.gmra.mrb[8].mxu1 %vm327_vm1, %v6430_v30 }
  0xf2   : > { %5474 = vmatmul.mubr.msk.bf16.gmra.mrb[32].mxu0 %vm327_vm1, %v6319_v43  ;;  %5253 = vmatprep.mubr.msk.bf16.mxu1 %vm327_vm1, %v6432_v31  ;;  %v1286_v43 = vld [vmem:[#allocation2 + $0x92] sm:$0xff] }
  0xf3   : > { %5477 = vmatprep.mubr.msk.bf16.mxu0 %vm327_vm1, %v6327_v56  ;;  %v1288_v56 = vld [vmem:[#allocation2 + $0xa2] sm:$0xff]  ;;  %v6454_v41 = vpack.c.bf16 %v1287_v10, %v1286_v43  ;;  %v1306_v43 = vld [vmem:[#allocation2 + $0x132] sm:$0xff]  ;;  %v1307_v10 = vld [vmem:[#allocation2 + $0x13a] sm:$0xff] }
  0xf4   : > { %v6456_v59 = vpack.c.bf16 %v1289_v37, %v1288_v56  ;;  %v3392_v56 = vld [vmem:[#allocation2 + $0x95] sm:$0xff]  ;;  %v3393_v37 = vld [vmem:[#allocation2 + $0x9d] sm:$0xff]  ;;  %v6508_v50 = vpack.c.bf16 %v1307_v10, %v1306_v43 }
  0xf5   : > { %v3433_v46 = vpack.c.bf16 %v3393_v37, %v3392_v56  ;;  %v3418_v56 = vld [vmem:[#allocation2 + $0x165] sm:$0xff]  ;;  %v3419_v37 = vld [vmem:[#allocation2 + $0x16d] sm:$0xff] }
  0xf9   : > { %5254 = vmatmul.mubr.msk.bf16.gmra.mrb[12].mxu1 %vm327_vm1, %v6442_v34 }
  0xfa   : > { %5478 = vmatmul.mubr.msk.bf16.gmra.mrb[36].mxu0 %vm327_vm1, %v6329_v27  ;;  %5257 = vmatprep.mubr.msk.bf16.mxu1 %vm327_vm1, %v6444_v35  ;;  %v1290_v27 = vld [vmem:[#allocation2 + $0xb2] sm:$0xff] }
  0xfb   : > { %5481 = vmatprep.mubr.msk.bf16.mxu0 %vm327_vm1, %v6337_v8  ;;  %v3003_v8 = vld [vmem:[#allocation2 + $0x19c] sm:$0xff]  ;;  %v6466_v47 = vpack.c.bf16 %v1291_v44, %v1290_v27  ;;  %v1309_v44 = vld [vmem:[#allocation2 + $0x14a] sm:$0xff] }
  0xfc   : > { %v3027_v48 = vpack.c.bf16 %v3003_v8, %v3002_v45  ;;  %v1308_v27 = vld [vmem:[#allocation2 + $0x142] sm:$0xff]  ;;  %v3395_v8 = vld [vmem:[#allocation2 + $0xad] sm:$0xff] }
  0xfd   : > { %v3394_v45 = vld [vmem:[#allocation2 + $0xa5] sm:$0xff] }
 0x101   : > { %5258 = vmatmul.mubr.msk.bf16.gmra.mrb[16].mxu1 %vm327_vm1, %v6454_v41 }
 0x102   : > { %5482 = vmatmul.mubr.msk.bf16.gmra.mrb[40].mxu0 %vm327_vm1, %v6339_v53  ;;  %5261 = vmatprep.mubr.msk.bf16.mxu1 %vm327_vm1, %v6456_v59  ;;  %v3426_v53 = vpack.c.bf16 %v3379_v9, %v3378_v63  ;;  %v6510_v63 = vpack.c.bf16 %v1309_v44, %v1308_v27  ;;  %v3434_v9 = vpack.c.bf16 %v3395_v8, %v3394_v45  ;;  %v3422_v45 = vld [vmem:[#allocation2 + $0x185] sm:$0xff]  ;;  %v3423_v8 = vld [vmem:[#allocation2 + $0x18d] sm:$0xff] }
 0x103   : > { %5485 = vmatprep.mubr.msk.bf16.mxu0 %vm327_vm1, %v6347_v22  ;;  %v1294_v22 = vld [vmem:[#allocation2 + $0xd2] sm:$0xff]  ;;  %v3446_v44 = vpack.c.bf16 %v3419_v37, %v3418_v56  ;;  %v3828_v56 = vld [vmem:[#allocation2 + $0x106] sm:$0xff] }
 0x104   : > { %v6476_v60 = vpack.c.bf16 %v1295_v1, %v1294_v22  ;;  %v3396_v22 = vld [vmem:[#allocation2 + $0xb5] sm:$0xff]  ;;  %v3397_v1 = vld [vmem:[#allocation2 + $0xbd] sm:$0xff] }
 0x105   : > { %v3435_v16 = vpack.c.bf16 %v3397_v1, %v3396_v22  ;;  %v3829_v37 = vld [vmem:[#allocation2 + $0x10e] sm:$0xff] }
 0x109   : > { %5262 = vmatmul.mubr.msk.bf16.gmra.mrb[20].mxu1 %vm327_vm1, %v6466_v47 }
 0x10a   : > { %5486 = vmatmul.mubr.msk.bf16.gmra.mrb[44].mxu0 %vm327_vm1, %v3027_v48  ;;  %5265 = vmatprep.mubr.msk.bf16.mxu1 %vm327_vm1, %v6468_v49  ;;  %v1310_v48 = vld [vmem:[#allocation2 + $0x152] sm:$0xff] }
 0x10b   : > { %5491 = vmatprep.mubr.msk.bf16.mxu0 %vm327_vm1, %v3426_v53  ;;  %v1311_v53 = vld [vmem:[#allocation2 + $0x15a] sm:$0xff] }
 0x10c   : > { %v6518_v58 = vpack.c.bf16 %v1311_v53, %v1310_v48  ;;  %v3800_v48 = vld [vmem:[#allocation2 + $0x26] sm:$0xff]  ;;  %v3801_v53 = vld [vmem:[#allocation2 + $0x2e] sm:$0xff] }
 0x10d   : > { %v3848_v1 = vpack.c.bf16 %v3801_v53, %v3800_v48  ;;  %v3832_v48 = vld [vmem:[#allocation2 + $0x126] sm:$0xff]  ;;  %v3833_v53 = vld [vmem:[#allocation2 + $0x12e] sm:$0xff] }
 0x111   : > { %5266 = vmatmul.mubr.msk.bf16.gmra.mrb[24].mxu1 %vm327_vm1, %v6476_v60 }
 0x112   : > { %5492 = vmatmul.mubr.msk.bf16.vlgmr.msra.gmra.mrb[0].mxu0 %vm327_vm1, %v3427_v61  ;;  %5269 = vmatprep.mubr.msk.bf16.mxu1 %vm327_vm1, %v6478_v62  ;;  %v6520_v61 = vpack.c.bf16 %v1313_v54, %v1312_v51  ;;  %v3804_v51 = vld [vmem:[#allocation2 + $0x46] sm:$0xff]  ;;  %v3805_v54 = vld [vmem:[#allocation2 + $0x4e] sm:$0xff] }
 0x113   : > { %5540 = vmatpush3.bf16.msra.mxu0 %v3947_v0  ;;  %5495 = vmatprep.mubr.msk.bf16.mxu0 %vm327_vm1, %v3428_v26  ;;  %v3436_v26 = vpack.c.bf16 %v3399_v14, %v3398_v57  ;;  %v1314_v0 = vld [vmem:[#allocation2 + $0x172] sm:$0xff]  ;;  %v3850_v14 = vpack.c.bf16 %v3805_v54, %v3804_v51  ;;  %v2146_v51 = vld [vmem:[#allocation2 + $0x123] sm:$0xff] }
 0x114   : > { %v6528_v7 = vpack.c.bf16 %v1315_v29, %v1314_v0  ;;  %v2147_v54 = vld [vmem:[#allocation2 + $0x12b] sm:$0xff] }
 0x119   : > { %5270 = vmatmul.mubr.msk.bf16.gmra.mrb[28].mxu1 %vm327_vm1, %v6488_v36 }
 0x11a   : > { %5496 = vmatmul.mubr.msk.bf16.gmra.mrb[4].mxu0 %vm327_vm1, %v3429_v40  ;;  %5273 = vmatprep.mubr.msk.bf16.mxu1 %vm327_vm1, %v6490_v52  ;;  %v3404_v40 = vld [vmem:[#allocation2 + $0xf5] sm:$0xff] }
 0x11b   : > { %5499 = vmatprep.mubr.msk.bf16.mxu0 %vm327_vm1, %v3430_v55  ;;  %v3405_v55 = vld [vmem:[#allocation2 + $0xfd] sm:$0xff] }
 0x11c   : > { %v3439_v19 = vpack.c.bf16 %v3405_v55, %v3404_v40 }
 0x121   : > { %5274 = vmatmul.mubr.msk.bf16.gmra.mrb[32].mxu1 %vm327_vm1, %v6498_v25 }
 0x122   : > { %5500 = vmatmul.mubr.msk.bf16.gmra.mrb[8].mxu0 %vm327_vm1, %v3431_v32  ;;  %5277 = vmatprep.mubr.msk.bf16.mxu1 %vm327_vm1, %v6500_v38  ;;  %v3442_v32 = vpack.c.bf16 %v3411_v24, %v3410_v23  ;;  %v2136_v23 = vld [vmem:[#allocation2 + $0xd3] sm:$0xff]  ;;  %v2137_v24 = vld [vmem:[#allocation2 + $0xdb] sm:$0xff] }
 0x123   : > { %5503 = vmatprep.mubr.msk.bf16.mxu0 %vm327_vm1, %v3432_v33  ;;  %v3415_v33 = vld [vmem:[#allocation2 + $0x14d] sm:$0xff] }
 0x129   : > { %5278 = vmatmul.mubr.msk.bf16.gmra.mrb[36].mxu1 %vm327_vm1, %v6508_v50 }
 0x12a   : > { %5504 = vmatmul.mubr.msk.bf16.gmra.mrb[12].mxu0 %vm327_vm1, %v3433_v46  ;;  %5281 = vmatprep.mubr.msk.bf16.mxu1 %vm327_vm1, %v6510_v63 }
 0x12b   : > { %5507 = vmatprep.mubr.msk.bf16.mxu0 %vm327_vm1, %v3434_v9  ;;  %v3448_v9 = vpack.c.bf16 %v3423_v8, %v3422_v45  ;;  %v2142_v45 = vld [vmem:[#allocation2 + $0x103] sm:$0xff]  ;;  %v2143_v8 = vld [vmem:[#allocation2 + $0x10b] sm:$0xff] }
 0x131   : > { %5282 = vmatmul.mubr.msk.bf16.gmra.mrb[40].mxu1 %vm327_vm1, %v6518_v58 }
 0x132   : > { %5508 = vmatmul.mubr.msk.bf16.gmra.mrb[16].mxu0 %vm327_vm1, %v3435_v16  ;;  %5285 = vmatprep.mubr.msk.bf16.mxu1 %vm327_vm1, %v6520_v61  ;;  %v3808_v16 = vld [vmem:[#allocation2 + $0x66] sm:$0xff] }
 0x133   : > { %5511 = vmatprep.mubr.msk.bf16.mxu0 %vm327_vm1, %v3436_v26  ;;  %v3809_v26 = vld [vmem:[#allocation2 + $0x6e] sm:$0xff] }
 0x134   : > { %v3852_v29 = vpack.c.bf16 %v3809_v26, %v3808_v16  ;;  %v3836_v16 = vld [vmem:[#allocation2 + $0x146] sm:$0xff]  ;;  %v3837_v26 = vld [vmem:[#allocation2 + $0x14e] sm:$0xff] }
 0x139   : > { %5286 = vmatmul.mubr.msk.bf16.gmra.mrb[44].mxu1 %vm327_vm1, %v6528_v7 }
 0x13a   : > { %5512 = vmatmul.mubr.msk.bf16.gmra.mrb[20].mxu0 %vm327_vm1, %v3437_v42  ;;  %5291 = vmatprep.mubr.msk.bf16.mxu1 %vm327_vm1, %v6400_v15  ;;  %v3408_v15 = vld [vmem:[#allocation2 + $0x115] sm:$0xff]  ;;  %v3816_v42 = vld [vmem:[#allocation2 + $0xa6] sm:$0xff] }
 0x13b   : > { %5515 = vmatprep.mubr.msk.bf16.mxu0 %vm327_vm1, %v3438_v11  ;;  %v3441_v28 = vpack.c.bf16 %v3409_v12, %v3408_v15  ;;  %v3817_v11 = vld [vmem:[#allocation2 + $0xae] sm:$0xff]  ;;  %v3822_v12 = vld [vmem:[#allocation2 + $0xd6] sm:$0xff] }
 0x13c   : > { %v3856_v55 = vpack.c.bf16 %v3817_v11, %v3816_v42  ;;  %v1737_v15 = vld [vmem:[#allocation2 + $0x18a] sm:$0xff] }
 0x13d   : > { %v3840_v42 = vld [vmem:[#allocation2 + $0x166] sm:$0xff]  ;;  %v3841_v11 = vld [vmem:[#allocation2 + $0x16e] sm:$0xff] }
 0x141   : > { %5292 = vmatmul.mubr.msk.bf16.vlgmr.msra.gmra.mrb[0].mxu1 %vm327_vm1, %v6404_v17  ;;  %v3413_v17 = vld [vmem:[#allocation2 + $0x13d] sm:$0xff] }
 0x142   : > { %5590 = vmatpush3.bf16.msra.mxu1 %v6047_v3  ;;  %5516 = vmatmul.mubr.msk.bf16.gmra.mrb[24].mxu0 %vm327_vm1, %v3439_v19  ;;  %v3412_v3 = vld [vmem:[#allocation2 + $0x135] sm:$0xff] }
 0x143   : > { %5295 = vmatprep.mubr.msk.bf16.mxu1 %vm327_vm1, %v6418_v20  ;;  %5519 = vmatprep.mubr.msk.bf16.mxu0 %vm327_vm1, %v3440_v13  ;;  %v3414_v20 = vld [vmem:[#allocation2 + $0x145] sm:$0xff]  ;;  %v3443_v43 = vpack.c.bf16 %v3413_v17, %v3412_v3  ;;  %v3858_v13 = vpack.c.bf16 %v3821_v5, %v3820_v18 }
 0x144   : > { %v3444_v10 = vpack.c.bf16 %v3415_v33, %v3414_v20  ;;  %v2172_v20 = vpack.c.bf16 %v2137_v24, %v2136_v23  ;;  %v2154_v18 = vld [vmem:[#allocation2 + $0x163] sm:$0xff]  ;;  %v2155_v5 = vld [vmem:[#allocation2 + $0x16b] sm:$0xff] }
 0x145   : > { %v2181_v23 = vpack.c.bf16 %v2155_v5, %v2154_v18 }
 0x149   : > { %5296 = vmatmul.mubr.msk.bf16.gmra.mrb[4].mxu1 %vm327_vm1, %v6420_v21  ;;  %v3416_v21 = vld [vmem:[#allocation2 + $0x155] sm:$0xff] }
 0x14a   : > { %5520 = vmatmul.mubr.msk.bf16.gmra.mrb[28].mxu0 %vm327_vm1, %v3441_v28  ;;  %5299 = vmatprep.mubr.msk.bf16.mxu1 %vm327_vm1, %v6430_v30  ;;  %v3417_v30 = vld [vmem:[#allocation2 + $0x15d] sm:$0xff]  ;;  %v3824_v28 = vld [vmem:[#allocation2 + $0xe6] sm:$0xff] }
 0x14b   : > { %5523 = vmatprep.mubr.msk.bf16.mxu0 %vm327_vm1, %v3442_v32  ;;  %v3445_v27 = vpack.c.bf16 %v3417_v30, %v3416_v21  ;;  %v3825_v32 = vld [vmem:[#allocation2 + $0xee] sm:$0xff]  ;;  %v2141_v30 = vld [vmem:[#allocation2 + $0xfb] sm:$0xff] }
 0x14c   : > { %v3860_v33 = vpack.c.bf16 %v3825_v32, %v3824_v28  ;;  %v2140_v21 = vld [vmem:[#allocation2 + $0xf3] sm:$0xff] }
 0x151   : > { %5300 = vmatmul.mubr.msk.bf16.gmra.mrb[8].mxu1 %vm327_vm1, %v6432_v31  ;;  %v3420_v31 = vld [vmem:[#allocation2 + $0x175] sm:$0xff] }
 0x152   : > { %5524 = vmatmul.mubr.msk.bf16.gmra.mrb[32].mxu0 %vm327_vm1, %v3443_v43  ;;  %5303 = vmatprep.mubr.msk.bf16.mxu1 %vm327_vm1, %v6442_v34  ;;  %v3421_v34 = vld [vmem:[#allocation2 + $0x17d] sm:$0xff] }
 0x153   : > { %5527 = vmatprep.mubr.msk.bf16.mxu0 %vm327_vm1, %v3444_v10  ;;  %v3447_v46 = vpack.c.bf16 %v3421_v34, %v3420_v31  ;;  %v3826_v43 = vld [vmem:[#allocation2 + $0xf6] sm:$0xff]  ;;  %v3827_v10 = vld [vmem:[#allocation2 + $0xfe] sm:$0xff]  ;;  %v2174_v31 = vpack.c.bf16 %v2141_v30, %v2140_v21  ;;  %v3862_v34 = vpack.c.bf16 %v3829_v37, %v3828_v56 }
 0x159   : > { %5304 = vmatmul.mubr.msk.bf16.gmra.mrb[12].mxu1 %vm327_vm1, %v6444_v35  ;;  %v3424_v35 = vld [vmem:[#allocation2 + $0x195] sm:$0xff] }
 0x15a   : > { %5528 = vmatmul.mubr.msk.bf16.gmra.mrb[36].mxu0 %vm327_vm1, %v3445_v27  ;;  %5307 = vmatprep.mubr.msk.bf16.mxu1 %vm327_vm1, %v6454_v41  ;;  %v3425_v41 = vld [vmem:[#allocation2 + $0x19d] sm:$0xff] }
 0x15b   : > { %5531 = vmatprep.mubr.msk.bf16.mxu0 %vm327_vm1, %v3446_v44  ;;  %v3449_v22 = vpack.c.bf16 %v3425_v41, %v3424_v35  ;;  %v3861_v44 = vpack.c.bf16 %v3827_v10, %v3826_v43  ;;  %v2144_v35 = vld [vmem:[#allocation2 + $0x113] sm:$0xff]  ;;  %v2145_v41 = vld [vmem:[#allocation2 + $0x11b] sm:$0xff] }
 0x161   : > { %5308 = vmatmul.mubr.msk.bf16.gmra.mrb[16].mxu1 %vm327_vm1, %v6456_v59  ;;  %v3802_v59 = vld [vmem:[#allocation2 + $0x36] sm:$0xff] }
 0x162   : > { %5532 = vmatmul.mubr.msk.bf16.gmra.mrb[40].mxu0 %vm327_vm1, %v3447_v46  ;;  %5311 = vmatprep.mubr.msk.bf16.mxu1 %vm327_vm1, %v6466_v47  ;;  %v3803_v47 = vld [vmem:[#allocation2 + $0x3e] sm:$0xff]  ;;  %v3830_v46 = vld [vmem:[#allocation2 + $0x116] sm:$0xff] }
 0x163   : > { %5535 = vmatprep.mubr.msk.bf16.mxu0 %vm327_vm1, %v3448_v9  ;;  %v3849_v57 = vpack.c.bf16 %v3803_v47, %v3802_v59  ;;  %v3831_v9 = vld [vmem:[#allocation2 + $0x11e] sm:$0xff]  ;;  %v2176_v59 = vpack.c.bf16 %v2145_v41, %v2144_v35  ;;  %v3864_v47 = vpack.c.bf16 %v3833_v53, %v3832_v48 }
 0x169   : > { %5312 = vmatmul.mubr.msk.bf16.gmra.mrb[20].mxu1 %vm327_vm1, %v6468_v49  ;;  %v3806_v49 = vld [vmem:[#allocation2 + $0x56] sm:$0xff] }
 0x16a   : > { %5536 = vmatmul.mubr.msk.bf16.gmra.mrb[44].mxu0 %vm327_vm1, %v3449_v22  ;;  %5315 = vmatprep.mubr.msk.bf16.mxu1 %vm327_vm1, %v6476_v60  ;;  %v3807_v60 = vld [vmem:[#allocation2 + $0x5e] sm:$0xff]  ;;  %v2175_v22 = vpack.c.bf16 %v2143_v8, %v2142_v45 }
 0x16b   : > { %5541 = vmatprep.mubr.msk.bf16.mxu0 %vm327_vm1, %v3848_v1  ;;  %v3851_v0 = vpack.c.bf16 %v3807_v60, %v3806_v49  ;;  %v3863_v1 = vpack.c.bf16 %v3831_v9, %v3830_v46  ;;  %v2148_v49 = vld [vmem:[#allocation2 + $0x133] sm:$0xff]  ;;  %v2149_v60 = vld [vmem:[#allocation2 + $0x13b] sm:$0xff] }
 0x171   : > { %5316 = vmatmul.mubr.msk.bf16.gmra.mrb[24].mxu1 %vm327_vm1, %v6478_v62  ;;  %v3810_v62 = vld [vmem:[#allocation2 + $0x76] sm:$0xff] }
 0x172   : > { %5542 = vmatmul.mubr.msk.bf16.vlgmr.msra.gmra.mrb[0].mxu0 %vm327_vm1, %v3849_v57  ;;  %5319 = vmatprep.mubr.msk.bf16.mxu1 %vm327_vm1, %v6488_v36  ;;  %v3811_v36 = vld [vmem:[#allocation2 + $0x7e] sm:$0xff]  ;;  %v3834_v57 = vld [vmem:[#allocation2 + $0x136] sm:$0xff] }
 0x173   : > { %5545 = vmatprep.mubr.msk.bf16.mxu0 %vm327_vm1, %v3850_v14  ;;  %v3853_v6 = vpack.c.bf16 %v3811_v36, %v3810_v62  ;;  %v3835_v14 = vld [vmem:[#allocation2 + $0x13e] sm:$0xff]  ;;  %v2178_v62 = vpack.c.bf16 %v2149_v60, %v2148_v49  ;;  %v3866_v36 = vpack.c.bf16 %v3837_v26, %v3836_v16 }
 0x179   : > { %5320 = vmatmul.mubr.msk.bf16.gmra.mrb[28].mxu1 %vm327_vm1, %v6490_v52  ;;  %v3814_v52 = vld [vmem:[#allocation2 + $0x96] sm:$0xff] }
 0x17a   : > { %5546 = vmatmul.mubr.msk.bf16.gmra.mrb[4].mxu0 %vm327_vm1, %v3851_v0  ;;  %5323 = vmatprep.mubr.msk.bf16.mxu1 %vm327_vm1, %v6498_v25  ;;  %v3815_v25 = vld [vmem:[#allocation2 + $0x9e] sm:$0xff]  ;;  %v2177_v0 = vpack.c.bf16 %v2147_v54, %v2146_v51 }
 0x17b   : > { %5549 = vmatprep.mubr.msk.bf16.mxu0 %vm327_vm1, %v3852_v29  ;;  %v3855_v40 = vpack.c.bf16 %v3815_v25, %v3814_v52  ;;  %v3865_v29 = vpack.c.bf16 %v3835_v14, %v3834_v57  ;;  %v2152_v52 = vld [vmem:[#allocation2 + $0x153] sm:$0xff]  ;;  %v2153_v25 = vld [vmem:[#allocation2 + $0x15b] sm:$0xff] }
 0x17c   : > { %v6664_v14 = vld [vmem:[%s6788_s3] ss:$0 sm:$0xff] }
 0x181   : > { %5324 = vmatmul.mubr.msk.bf16.gmra.mrb[32].mxu1 %vm327_vm1, %v6500_v38  ;;  %v3818_v38 = vld [vmem:[#allocation2 + $0xb6] sm:$0xff] }
 0x182   : > { %5550 = vmatmul.mubr.msk.bf16.gmra.mrb[8].mxu0 %vm327_vm1, %v3853_v6  ;;  %5327 = vmatprep.mubr.msk.bf16.mxu1 %vm327_vm1, %v6508_v50  ;;  %v3819_v50 = vld [vmem:[#allocation2 + $0xbe] sm:$0xff]  ;;  %v3838_v6 = vld [vmem:[#allocation2 + $0x156] sm:$0xff] }
 0x183   : > { %5553 = vmatprep.mubr.msk.bf16.mxu0 %vm327_vm1, %v3854_v39  ;;  %v3857_v19 = vpack.c.bf16 %v3819_v50, %v3818_v38  ;;  %v3839_v39 = vld [vmem:[#allocation2 + $0x15e] sm:$0xff]  ;;  %v2180_v38 = vpack.c.bf16 %v2153_v25, %v2152_v52  ;;  %v3868_v50 = vpack.c.bf16 %v3841_v11, %v3840_v42 }
 0x189   : > { %5328 = vmatmul.mubr.msk.bf16.gmra.mrb[36].mxu1 %vm327_vm1, %v6510_v63  ;;  %v1736_v63 = vld [vmem:[#allocation2 + $0x182] sm:$0xff] }
 0x18a   : > { %5554 = vmatmul.mubr.msk.bf16.gmra.mrb[12].mxu0 %vm327_vm1, %v3855_v40  ;;  %5331 = vmatprep.mubr.msk.bf16.mxu1 %vm327_vm1, %v6518_v58  ;;  %v3823_v58 = vld [vmem:[#allocation2 + $0xde] sm:$0xff]  ;;  %v1761_v3 = vpack.c.bf16 %v1737_v15, %v1736_v63  ;;  %v2179_v40 = vpack.c.bf16 %v2151_v4, %v2150_v2  ;;  %v2156_v63 = vld [vmem:[#allocation2 + $0x173] sm:$0xff] }
 0x18b   : > { %5557 = vmatprep.mubr.msk.bf16.mxu0 %vm327_vm1, %v3856_v55  ;;  %v3859_v17 = vpack.c.bf16 %v3823_v58, %v3822_v12  ;;  %v3867_v55 = vpack.c.bf16 %v3839_v39, %v3838_v6  ;;  %v2157_v15 = vld [vmem:[#allocation2 + $0x17b] sm:$0xff]  ;;  %v3844_v12 = vld [vmem:[#allocation2 + $0x186] sm:$0xff]  ;;  %v3845_v58 = vld [vmem:[#allocation2 + $0x18e] sm:$0xff] }
 0x18c   : > { %v2182_v28 = vpack.c.bf16 %v2157_v15, %v2156_v63  ;;  %v3870_v32 = vpack.c.bf16 %v3845_v58, %v3844_v12 }
 0x191   : > { %5332 = vmatmul.mubr.msk.bf16.gmra.mrb[40].mxu1 %vm327_vm1, %v6520_v61  ;;  %v2138_v61 = vld [vmem:[#allocation2 + $0xe3] sm:$0xff] }
 0x192   : > { %5558 = vmatmul.mubr.msk.bf16.gmra.mrb[16].mxu0 %vm327_vm1, %v3857_v19  ;;  %5335 = vmatprep.mubr.msk.bf16.mxu1 %vm327_vm1, %v6528_v7  ;;  %v2139_v7 = vld [vmem:[#allocation2 + $0xeb] sm:$0xff]  ;;  %v3842_v19 = vld [vmem:[#allocation2 + $0x176] sm:$0xff] }
 0x193   : > { %5561 = vmatprep.mubr.msk.bf16.mxu0 %vm327_vm1, %v3858_v13  ;;  %v2173_v27 = vpack.c.bf16 %v2139_v7, %v2138_v61  ;;  %v3843_v13 = vld [vmem:[#allocation2 + $0x17e] sm:$0xff] }
 0x194   : > { %v3869_v24 = vpack.c.bf16 %v3843_v13, %v3842_v19 }
 0x199   : > { %5336 = vmatmul.mubr.msk.bf16.gmra.mrb[44].mxu1 %vm327_vm1, %v1761_v3  ;;  %v2158_v3 = vld [vmem:[#allocation2 + $0x183] sm:$0xff] }
 0x19a   : > { %5562 = vmatmul.mubr.msk.bf16.gmra.mrb[20].mxu0 %vm327_vm1, %v3859_v17  ;;  %5365 = vmatprep.mubr.msk.bf16.mxu1 %vm327_vm1, %v2172_v20  ;;  %v2159_v17 = vld [vmem:[#allocation2 + $0x18b] sm:$0xff]  ;;  %v3846_v20 = vld [vmem:[#allocation2 + $0x196] sm:$0xff] }
 0x19b   : > { %5565 = vmatprep.mubr.msk.bf16.mxu0 %vm327_vm1, %v3860_v33  ;;  %v3847_v33 = vld [vmem:[#allocation2 + $0x19e] sm:$0xff]  ;;  %v2183_v61 = vpack.c.bf16 %v2159_v17, %v2158_v3 }
 0x19c   : > { %v3871_v7 = vpack.c.bf16 %v3847_v33, %v3846_v20 }
 0x1a1   : > { %5366 = vmatmul.mubr.msk.bf16.vlgmr.msra.gmra.mrb[24].mxu1 %vm327_vm1, %v2173_v27 }
 0x1a2   : > { %5566 = vmatmul.mubr.msk.bf16.gmra.mrb[24].mxu0 %vm327_vm1, %v3861_v44  ;;  %5369 = vmatprep.mubr.msk.bf16.mxu1 %vm327_vm1, %v2174_v31 }
 0x1a3   : > { %5569 = vmatprep.mubr.msk.bf16.mxu0 %vm327_vm1, %v3862_v34 }
 0x1a9   : > { %5370 = vmatmul.mubr.msk.bf16.gmra.mrb[28].mxu1 %vm327_vm1, %v2175_v22 }
 0x1aa   : > { %5570 = vmatmul.mubr.msk.bf16.gmra.mrb[28].mxu0 %vm327_vm1, %v3863_v1  ;;  %5373 = vmatprep.mubr.msk.bf16.mxu1 %vm327_vm1, %v2176_v59 }
 0x1ab   : > { %5573 = vmatprep.mubr.msk.bf16.mxu0 %vm327_vm1, %v3864_v47 }
 0x1b1   : > { %5374 = vmatmul.mubr.msk.bf16.gmra.mrb[32].mxu1 %vm327_vm1, %v2177_v0 }
 0x1b2   : > { %5574 = vmatmul.mubr.msk.bf16.gmra.mrb[32].mxu0 %vm327_vm1, %v3865_v29  ;;  %5377 = vmatprep.mubr.msk.bf16.mxu1 %vm327_vm1, %v2178_v62 }
 0x1b3   : > { %5577 = vmatprep.mubr.msk.bf16.mxu0 %vm327_vm1, %v3866_v36 }
 0x1b9   : > { %5378 = vmatmul.mubr.msk.bf16.gmra.mrb[36].mxu1 %vm327_vm1, %v2179_v40 }
 0x1ba   : > { %5578 = vmatmul.mubr.msk.bf16.gmra.mrb[36].mxu0 %vm327_vm1, %v3867_v55  ;;  %5381 = vmatprep.mubr.msk.bf16.mxu1 %vm327_vm1, %v2180_v38 }
 0x1bb   : > { %5581 = vmatprep.mubr.msk.bf16.mxu0 %vm327_vm1, %v3868_v50 }
 0x1c1   : > { %5382 = vmatmul.mubr.msk.bf16.gmra.mrb[40].mxu1 %vm327_vm1, %v2181_v23 }
 0x1c2   : > { %5582 = vmatmul.mubr.msk.bf16.gmra.mrb[40].mxu0 %vm327_vm1, %v3869_v24  ;;  %5385 = vmatprep.mubr.msk.bf16.mxu1 %vm327_vm1, %v2182_v28 }
 0x1c3   : > { %5585 = vmatprep.mubr.msk.bf16.mxu0 %vm327_vm1, %v3870_v32 }
 0x1c9   : > { %5386 = vmatmul.mubr.msk.bf16.gmra.mrb[44].mxu1 %vm327_vm1, %v2183_v61 }
 0x1ca   : > { %5586 = vmatmul.mubr.msk.bf16.gmra.mrb[44].mxu0 %vm327_vm1, %v3871_v7 }
 0x214   : > { %v5293_v43 = vpop.f32.mrb[0].mxu1 }
 0x215   : > { %v1873_v10 = vpop.f32.mrb[1].mxu1 }
 0x216   : > { %v5294_v21 = vpop.f32.mrb[2].mxu1 }
 0x217   : > { %v1876_v30 = vpop.f32.mrb[3].mxu1 }
 0x21c   : > { %v5297_v56 = vpop.f32.mrb[4].mxu1 }
 0x21d   : > { %v1889_v37 = vpop.f32.mrb[5].mxu1 }
 0x21e   : > { %v5298_v27 = vpop.f32.mrb[6].mxu1 }
 0x21f   : > { %v1892_v44 = vpop.f32.mrb[7].mxu1 }
 0x224   : > { %v5301_v31 = vpop.f32.mrb[8].mxu1 }
 0x225   : > { %v6629_v34 = vpop.f32.mrb[9].mxu1 }
 0x226   : > { %v6631_v45 = vpop.f32.mrb[10].mxu1 }
 0x227   : > { %v6633_v8 = vpop.f32.mrb[11].mxu1 }
 0x22c   : > { %v6635_v46 = vpop.f32.mrb[12].mxu1 }
 0x22d   : > { %v6637_v9 = vpop.f32.mrb[13].mxu1 }
 0x22e   : > { %v6639_v35 = vpop.f32.mrb[14].mxu1 }
 0x22f   : > { %v6641_v41 = vpop.f32.mrb[15].mxu1 }
 0x234   : > { %v6643_v48 = vpop.f32.mrb[16].mxu1 }
 0x235   : > { %v6645_v53 = vpop.f32.mrb[17].mxu1 }
 0x236   : > { %v6647_v22 = vpop.f32.mrb[18].mxu1 }
 0x237   : > { %v6649_v1 = vpop.f32.mrb[19].mxu1 }
 0x23c   : > { %v6651_v59 = vpop.f32.mrb[20].mxu1 }
 0x23d   : > { %v6653_v47 = vpop.f32.mrb[21].mxu1 }
 0x23e   : > { %v6655_v51 = vpop.f32.mrb[22].mxu1 }
 0x23f   : > { %v6658_v54 = vpop.f32.mrb[23].mxu1 }
 0x245   : > { %v5543_v57 = vpop.f32.mrb[0].mxu0 }
 0x246   : > { %v5591_v49 = vadd.f32 %v5543_v57, %v5293_v43  ;;  %v3983_v60 = vpop.f32.mrb[1].mxu0 }
 0x247   : > { %v5592_v16 = vadd.f32 %v3983_v60, %v1873_v10  ;;  %v5544_v26 = vpop.f32.mrb[2].mxu0 }
 0x248   : > { %v4231_v0 = vadd.f32 %v5591_v49, %v6664_v14  ;;  %v5593_v29 = vadd.f32 %v5544_v26, %v5294_v21  ;;  %v3986_v62 = vpop.f32.mrb[3].mxu0 }
 0x249   : > { %v4229_v36 = vadd.f32 %v5592_v16, %v6664_v14  ;;  %v5594_v2 = vadd.f32 %v3986_v62, %v1876_v30 }
 0x24a   : > { %v4279_v4 = vmax.f32 %v4231_v0, 0.0  ;;  %v4232_v6 = vadd.f32 %v5593_v29, %v6664_v14 }
 0x24b   : > { %v4277_v39 = vmax.f32 %v4229_v36, 0.0  ;;  %v4230_v52 = vadd.f32 %v5594_v2, %v6664_v14 }
 0x24c   : > { %4327 = vst [vmem:[%s6670_s30 + $0x10] sm:$0xff] %v4279_v4  ;;  %v4280_v25 = vmax.f32 %v4232_v6, 0.0 }
 0x24d   : > { %4325 = vst [vmem:[%s6670_s30] sm:$0xff] %v4277_v39  ;;  %v4278_v42 = vmax.f32 %v4230_v52, 0.0  ;;  %v5547_v11 = vpop.f32.mrb[4].mxu0 }
 0x24e   : > { %4328 = vst [vmem:[%s6670_s30 + $0x18] sm:$0xff] %v4280_v25  ;;  %v5595_v40 = vadd.f32 %v5547_v11, %v5297_v56  ;;  %v3999_v55 = vpop.f32.mrb[5].mxu0 }
 0x24f   : > { %4326 = vst [vmem:[%s6670_s30 + $0x8] sm:$0xff] %v4278_v42  ;;  %v5596_v38 = vadd.f32 %v3999_v55, %v1889_v37  ;;  %v5548_v50 = vpop.f32.mrb[6].mxu0 }
 0x250   : > { %v4235_v18 = vadd.f32 %v5595_v40, %v6664_v14  ;;  %v5597_v5 = vadd.f32 %v5548_v50, %v5298_v27  ;;  %v4002_v19 = vpop.f32.mrb[7].mxu0 }
 0x251   : > { %v4233_v13 = vadd.f32 %v5596_v38, %v6664_v14  ;;  %v5598_v63 = vadd.f32 %v4002_v19, %v1892_v44 }
 0x252   : > { %v4283_v15 = vmax.f32 %v4235_v18, 0.0  ;;  %v4236_v12 = vadd.f32 %v5597_v5, %v6664_v14 }
 0x253   : > { %v4281_v58 = vmax.f32 %v4233_v13, 0.0  ;;  %v4234_v23 = vadd.f32 %v5598_v63, %v6664_v14 }
 0x254   : > { %4331 = vst [vmem:[%s6670_s30 + $0x30] sm:$0xff] %v4283_v15  ;;  %v4284_v24 = vmax.f32 %v4236_v12, 0.0 }
 0x255   : > { %4329 = vst [vmem:[%s6670_s30 + $0x20] sm:$0xff] %v4281_v58  ;;  %v4282_v28 = vmax.f32 %v4234_v23, 0.0  ;;  %v5551_v32 = vpop.f32.mrb[8].mxu0 }
 0x256   : > { %4332 = vst [vmem:[%s6670_s30 + $0x38] sm:$0xff] %v4284_v24  ;;  %v5599_v3 = vadd.f32 %v5551_v32, %v5301_v31  ;;  %v4015_v17 = vpop.f32.mrb[9].mxu0 }
 0x257   : > { %4330 = vst [vmem:[%s6670_s30 + $0x28] sm:$0xff] %v4282_v28  ;;  %v5600_v20 = vadd.f32 %v4015_v17, %v6629_v34  ;;  %v5552_v33 = vpop.f32.mrb[10].mxu0 }
 0x258   : > { %v4239_v61 = vadd.f32 %v5599_v3, %v6664_v14  ;;  %v5601_v7 = vadd.f32 %v5552_v33, %v6631_v45  ;;  %v4018_v43 = vpop.f32.mrb[11].mxu0 }
 0x259   : > { %v4237_v10 = vadd.f32 %v5600_v20, %v6664_v14  ;;  %v5602_v21 = vadd.f32 %v4018_v43, %v6633_v8 }
 0x25a   : > { %v4287_v30 = vmax.f32 %v4239_v61, 0.0  ;;  %v4240_v56 = vadd.f32 %v5601_v7, %v6664_v14 }
 0x25b   : > { %v4285_v37 = vmax.f32 %v4237_v10, 0.0  ;;  %v4238_v27 = vadd.f32 %v5602_v21, %v6664_v14 }
 0x25c   : > { %4335 = vst [vmem:[%s6670_s30 + $0x50] sm:$0xff] %v4287_v30  ;;  %v4288_v44 = vmax.f32 %v4240_v56, 0.0 }
 0x25d   : > { %4333 = vst [vmem:[%s6670_s30 + $0x40] sm:$0xff] %v4285_v37  ;;  %v4286_v31 = vmax.f32 %v4238_v27, 0.0  ;;  %v5555_v34 = vpop.f32.mrb[12].mxu0 }
 0x25e   : > { %4336 = vst [vmem:[%s6670_s30 + $0x58] sm:$0xff] %v4288_v44  ;;  %v5603_v45 = vadd.f32 %v5555_v34, %v6635_v46  ;;  %v4031_v57 = vpop.f32.mrb[13].mxu0 }
 0x25f   : > { %4334 = vst [vmem:[%s6670_s30 + $0x48] sm:$0xff] %v4286_v31  ;;  %v5604_v8 = vadd.f32 %v4031_v57, %v6637_v9  ;;  %v5556_v49 = vpop.f32.mrb[14].mxu0 }
 0x260   : > { %v4243_v60 = vadd.f32 %v5603_v45, %v6664_v14  ;;  %v5605_v16 = vadd.f32 %v5556_v49, %v6639_v35  ;;  %v4034_v26 = vpop.f32.mrb[15].mxu0 }
 0x261   : > { %v4241_v0 = vadd.f32 %v5604_v8, %v6664_v14  ;;  %v5606_v29 = vadd.f32 %v4034_v26, %v6641_v41 }
 0x262   : > { %v4291_v62 = vmax.f32 %v4243_v60, 0.0  ;;  %v4244_v46 = vadd.f32 %v5605_v16, %v6664_v14 }
 0x263   : > { %v4289_v36 = vmax.f32 %v4241_v0, 0.0  ;;  %v4242_v2 = vadd.f32 %v5606_v29, %v6664_v14 }
 0x264   : > { %4339 = vst [vmem:[%s6670_s30 + $0x70] sm:$0xff] %v4291_v62  ;;  %v4292_v9 = vmax.f32 %v4244_v46, 0.0 }
 0x265   : > { %4337 = vst [vmem:[%s6670_s30 + $0x60] sm:$0xff] %v4289_v36  ;;  %v4290_v4 = vmax.f32 %v4242_v2, 0.0  ;;  %v5559_v6 = vpop.f32.mrb[16].mxu0 }
 0x266   : > { %4340 = vst [vmem:[%s6670_s30 + $0x78] sm:$0xff] %v4292_v9  ;;  %v5607_v35 = vadd.f32 %v5559_v6, %v6643_v48  ;;  %v4047_v39 = vpop.f32.mrb[17].mxu0 }
 0x267   : > { %4338 = vst [vmem:[%s6670_s30 + $0x68] sm:$0xff] %v4290_v4  ;;  %v5608_v41 = vadd.f32 %v4047_v39, %v6645_v53  ;;  %v5560_v52 = vpop.f32.mrb[18].mxu0 }
 0x268   : > { %v4247_v25 = vadd.f32 %v5607_v35, %v6664_v14  ;;  %v5609_v42 = vadd.f32 %v5560_v52, %v6647_v22  ;;  %v4050_v11 = vpop.f32.mrb[19].mxu0 }
 0x269   : > { %v4245_v40 = vadd.f32 %v5608_v41, %v6664_v14  ;;  %v5610_v55 = vadd.f32 %v4050_v11, %v6649_v1 }
 0x26a   : > { %v4295_v38 = vmax.f32 %v4247_v25, 0.0  ;;  %v4248_v48 = vadd.f32 %v5609_v42, %v6664_v14 }
 0x26b   : > { %v4293_v50 = vmax.f32 %v4245_v40, 0.0  ;;  %v4246_v18 = vadd.f32 %v5610_v55, %v6664_v14 }
 0x26c   : > { %4343 = vst [vmem:[%s6670_s30 + $0x90] sm:$0xff] %v4295_v38  ;;  %v4296_v53 = vmax.f32 %v4248_v48, 0.0 }
 0x26d   : > { %4341 = vst [vmem:[%s6670_s30 + $0x80] sm:$0xff] %v4293_v50  ;;  %v4294_v5 = vmax.f32 %v4246_v18, 0.0  ;;  %v5563_v19 = vpop.f32.mrb[20].mxu0 }
 0x26e   : > { %4344 = vst [vmem:[%s6670_s30 + $0x98] sm:$0xff] %v4296_v53  ;;  %v5611_v22 = vadd.f32 %v5563_v19, %v6651_v59  ;;  %v4063_v13 = vpop.f32.mrb[21].mxu0 }
 0x26f   : > { %4342 = vst [vmem:[%s6670_s30 + $0x88] sm:$0xff] %v4294_v5  ;;  %v5612_v1 = vadd.f32 %v4063_v13, %v6653_v47  ;;  %v5564_v63 = vpop.f32.mrb[22].mxu0 }
 0x270   : > { %v4251_v15 = vadd.f32 %v5611_v22, %v6664_v14  ;;  %v5613_v12 = vadd.f32 %v5564_v63, %v6655_v51  ;;  %v4066_v58 = vpop.f32.mrb[23].mxu0 }
 0x271   : > { %v4249_v23 = vadd.f32 %v5612_v1, %v6664_v14  ;;  %v5614_v24 = vadd.f32 %v4066_v58, %v6658_v54 }
 0x272   : > { %v4299_v28 = vmax.f32 %v4251_v15, 0.0  ;;  %v4252_v59 = vadd.f32 %v5613_v12, %v6664_v14 }
 0x273   : > { %v4297_v32 = vmax.f32 %v4249_v23, 0.0  ;;  %v4250_v3 = vadd.f32 %v5614_v24, %v6664_v14 }
 0x274   : > { %4347 = vst [vmem:[%s6670_s30 + $0xb0] sm:$0xff] %v4299_v28  ;;  %v4300_v47 = vmax.f32 %v4252_v59, 0.0  ;;  %v5367_v17 = vpop.f32.mrb[24].mxu1 }
 0x275   : > { %4345 = vst [vmem:[%s6670_s30 + $0xa0] sm:$0xff] %v4297_v32  ;;  %v4298_v20 = vmax.f32 %v4250_v3, 0.0  ;;  %v5567_v33 = vpop.f32.mrb[24].mxu0  ;;  %v2391_v61 = vpop.f32.mrb[25].mxu1 }
 0x276   : > { %4348 = vst [vmem:[%s6670_s30 + $0xb8] sm:$0xff] %v4300_v47  ;;  %v5615_v51 = vadd.f32 %v5567_v33, %v5367_v17  ;;  %v4079_v7 = vpop.f32.mrb[25].mxu0  ;;  %v5368_v43 = vpop.f32.mrb[26].mxu1 }
 0x277   : > { %4346 = vst [vmem:[%s6670_s30 + $0xa8] sm:$0xff] %v4298_v20  ;;  %v5616_v54 = vadd.f32 %v4079_v7, %v2391_v61  ;;  %v5568_v10 = vpop.f32.mrb[26].mxu0  ;;  %v2394_v21 = vpop.f32.mrb[27].mxu1 }
 0x278   : > { %v4255_v30 = vadd.f32 %v5615_v51, %v6664_v14  ;;  %v5617_v56 = vadd.f32 %v5568_v10, %v5368_v43  ;;  %v4082_v37 = vpop.f32.mrb[27].mxu0 }
 0x279   : > { %v4253_v27 = vadd.f32 %v5616_v54, %v6664_v14  ;;  %v5618_v44 = vadd.f32 %v4082_v37, %v2394_v21 }
 0x27a   : > { %v4303_v31 = vmax.f32 %v4255_v30, 0.0  ;;  %v4256_v34 = vadd.f32 %v5617_v56, %v6664_v14 }
 0x27b   : > { %v4301_v45 = vmax.f32 %v4253_v27, 0.0  ;;  %v4254_v57 = vadd.f32 %v5618_v44, %v6664_v14 }
 0x27c   : > { %4351 = vst [vmem:[%s6670_s30 + $0xd0] sm:$0xff] %v4303_v31  ;;  %v4304_v8 = vmax.f32 %v4256_v34, 0.0  ;;  %v5371_v49 = vpop.f32.mrb[28].mxu1 }
 0x27d   : > { %4349 = vst [vmem:[%s6670_s30 + $0xc0] sm:$0xff] %v4301_v45  ;;  %v4302_v60 = vmax.f32 %v4254_v57, 0.0  ;;  %v5571_v16 = vpop.f32.mrb[28].mxu0  ;;  %v2407_v26 = vpop.f32.mrb[29].mxu1 }
 0x27e   : > { %4352 = vst [vmem:[%s6670_s30 + $0xd8] sm:$0xff] %v4304_v8  ;;  %v5619_v0 = vadd.f32 %v5571_v16, %v5371_v49  ;;  %v4095_v29 = vpop.f32.mrb[29].mxu0  ;;  %v5372_v62 = vpop.f32.mrb[30].mxu1 }
 0x27f   : > { %4350 = vst [vmem:[%s6670_s30 + $0xc8] sm:$0xff] %v4302_v60  ;;  %v5620_v46 = vadd.f32 %v4095_v29, %v2407_v26  ;;  %v5572_v36 = vpop.f32.mrb[30].mxu0  ;;  %v2410_v2 = vpop.f32.mrb[31].mxu1 }
 0x280   : > { %v4259_v9 = vadd.f32 %v5619_v0, %v6664_v14  ;;  %v5621_v4 = vadd.f32 %v5572_v36, %v5372_v62  ;;  %v4098_v6 = vpop.f32.mrb[31].mxu0 }
 0x281   : > { %v4257_v35 = vadd.f32 %v5620_v46, %v6664_v14  ;;  %v5622_v39 = vadd.f32 %v4098_v6, %v2410_v2 }
 0x282   : > { %v4307_v41 = vmax.f32 %v4259_v9, 0.0  ;;  %v4260_v52 = vadd.f32 %v5621_v4, %v6664_v14 }
 0x283   : > { %v4305_v25 = vmax.f32 %v4257_v35, 0.0  ;;  %v4258_v42 = vadd.f32 %v5622_v39, %v6664_v14 }
 0x284   : > { %4355 = vst [vmem:[%s6670_s30 + $0xf0] sm:$0xff] %v4307_v41  ;;  %v4308_v11 = vmax.f32 %v4260_v52, 0.0  ;;  %v5375_v40 = vpop.f32.mrb[32].mxu1 }
 0x285   : > { %4353 = vst [vmem:[%s6670_s30 + $0xe0] sm:$0xff] %v4305_v25  ;;  %v4306_v55 = vmax.f32 %v4258_v42, 0.0  ;;  %v5575_v38 = vpop.f32.mrb[32].mxu0  ;;  %v2423_v48 = vpop.f32.mrb[33].mxu1 }
 0x286   : > { %4356 = vst [vmem:[%s6670_s30 + $0xf8] sm:$0xff] %v4308_v11  ;;  %v5623_v50 = vadd.f32 %v5575_v38, %v5375_v40  ;;  %v4111_v18 = vpop.f32.mrb[33].mxu0  ;;  %v5376_v53 = vpop.f32.mrb[34].mxu1 }
 0x287   : > { %4354 = vst [vmem:[%s6670_s30 + $0xe8] sm:$0xff] %v4306_v55  ;;  %v5624_v5 = vadd.f32 %v4111_v18, %v2423_v48  ;;  %v5576_v19 = vpop.f32.mrb[34].mxu0  ;;  %v2426_v22 = vpop.f32.mrb[35].mxu1 }
 0x288   : > { %v4263_v13 = vadd.f32 %v5623_v50, %v6664_v14  ;;  %v5625_v1 = vadd.f32 %v5576_v19, %v5376_v53  ;;  %v4114_v63 = vpop.f32.mrb[35].mxu0 }
 0x289   : > { %v4261_v15 = vadd.f32 %v5624_v5, %v6664_v14  ;;  %v5626_v12 = vadd.f32 %v4114_v63, %v2426_v22 }
 0x28a   : > { %v4311_v58 = vmax.f32 %v4263_v13, 0.0  ;;  %v4264_v23 = vadd.f32 %v5625_v1, %v6664_v14 }
 0x28b   : > { %v4309_v24 = vmax.f32 %v4261_v15, 0.0  ;;  %v4262_v28 = vadd.f32 %v5626_v12, %v6664_v14 }
 0x28c   : > { %4359 = vst [vmem:[%s6670_s30 + $0x110] sm:$0xff] %v4311_v58  ;;  %v4312_v59 = vmax.f32 %v4264_v23, 0.0  ;;  %v5379_v32 = vpop.f32.mrb[36].mxu1 }
 0x28d   : > { %4357 = vst [vmem:[%s6670_s30 + $0x100] sm:$0xff] %v4309_v24  ;;  %v4310_v3 = vmax.f32 %v4262_v28, 0.0  ;;  %v5579_v47 = vpop.f32.mrb[36].mxu0  ;;  %v2439_v17 = vpop.f32.mrb[37].mxu1 }
 0x28e   : > { %4360 = vst [vmem:[%s6670_s30 + $0x118] sm:$0xff] %v4312_v59  ;;  %v5627_v20 = vadd.f32 %v5579_v47, %v5379_v32  ;;  %v4127_v33 = vpop.f32.mrb[37].mxu0  ;;  %v5380_v61 = vpop.f32.mrb[38].mxu1 }
 0x28f   : > { %4358 = vst [vmem:[%s6670_s30 + $0x108] sm:$0xff] %v4310_v3  ;;  %v5628_v51 = vadd.f32 %v4127_v33, %v2439_v17  ;;  %v5580_v7 = vpop.f32.mrb[38].mxu0  ;;  %v2442_v43 = vpop.f32.mrb[39].mxu1 }
 0x290   : > { %v4267_v54 = vadd.f32 %v5627_v20, %v6664_v14  ;;  %v5629_v10 = vadd.f32 %v5580_v7, %v5380_v61  ;;  %v4130_v21 = vpop.f32.mrb[39].mxu0 }
 0x291   : > { %v4265_v30 = vadd.f32 %v5628_v51, %v6664_v14  ;;  %v5630_v56 = vadd.f32 %v4130_v21, %v2442_v43 }
 0x292   : > { %v4315_v37 = vmax.f32 %v4267_v54, 0.0  ;;  %v4268_v27 = vadd.f32 %v5629_v10, %v6664_v14 }
 0x293   : > { %v4313_v44 = vmax.f32 %v4265_v30, 0.0  ;;  %v4266_v31 = vadd.f32 %v5630_v56, %v6664_v14 }
 0x294   : > { %4363 = vst [vmem:[%s6670_s30 + $0x130] sm:$0xff] %v4315_v37  ;;  %v4316_v34 = vmax.f32 %v4268_v27, 0.0  ;;  %v5383_v45 = vpop.f32.mrb[40].mxu1 }
 0x295   : > { %4361 = vst [vmem:[%s6670_s30 + $0x120] sm:$0xff] %v4313_v44  ;;  %v4314_v57 = vmax.f32 %v4266_v31, 0.0  ;;  %v5583_v8 = vpop.f32.mrb[40].mxu0  ;;  %v2455_v49 = vpop.f32.mrb[41].mxu1 }
 0x296   : > { %4364 = vst [vmem:[%s6670_s30 + $0x138] sm:$0xff] %v4316_v34  ;;  %v5631_v60 = vadd.f32 %v5583_v8, %v5383_v45  ;;  %v4143_v16 = vpop.f32.mrb[41].mxu0  ;;  %v5384_v26 = vpop.f32.mrb[42].mxu1 }
 0x297   : > { %4362 = vst [vmem:[%s6670_s30 + $0x128] sm:$0xff] %v4314_v57  ;;  %v5632_v0 = vadd.f32 %v4143_v16, %v2455_v49  ;;  %v5584_v29 = vpop.f32.mrb[42].mxu0  ;;  %v2458_v62 = vpop.f32.mrb[43].mxu1 }
 0x298   : > { %v4271_v46 = vadd.f32 %v5631_v60, %v6664_v14  ;;  %v5633_v36 = vadd.f32 %v5584_v29, %v5384_v26  ;;  %v4146_v2 = vpop.f32.mrb[43].mxu0 }
 0x299   : > { %v4269_v9 = vadd.f32 %v5632_v0, %v6664_v14  ;;  %v5634_v4 = vadd.f32 %v4146_v2, %v2458_v62 }
 0x29a   : > { %v4319_v6 = vmax.f32 %v4271_v46, 0.0  ;;  %v4272_v35 = vadd.f32 %v5633_v36, %v6664_v14 }
 0x29b   : > { %v4317_v39 = vmax.f32 %v4269_v9, 0.0  ;;  %v4270_v41 = vadd.f32 %v5634_v4, %v6664_v14 }
 0x29c   : > { %4367 = vst [vmem:[%s6670_s30 + $0x150] sm:$0xff] %v4319_v6  ;;  %v4320_v52 = vmax.f32 %v4272_v35, 0.0  ;;  %v5387_v25 = vpop.f32.mrb[44].mxu1 }
 0x29d   : > { %4365 = vst [vmem:[%s6670_s30 + $0x140] sm:$0xff] %v4317_v39  ;;  %v4318_v42 = vmax.f32 %v4270_v41, 0.0  ;;  %v5587_v11 = vpop.f32.mrb[44].mxu0  ;;  %v2471_v40 = vpop.f32.mrb[45].mxu1 }
 0x29e   : > { %4368 = vst [vmem:[%s6670_s30 + $0x158] sm:$0xff] %v4320_v52  ;;  %v5635_v55 = vadd.f32 %v5587_v11, %v5387_v25  ;;  %v4159_v38 = vpop.f32.mrb[45].mxu0  ;;  %v5388_v48 = vpop.f32.mrb[46].mxu1 }
 0x29f   : > { %4366 = vst [vmem:[%s6670_s30 + $0x148] sm:$0xff] %v4318_v42  ;;  %v5636_v50 = vadd.f32 %v4159_v38, %v2471_v40  ;;  %v5588_v18 = vpop.f32.mrb[46].mxu0  ;;  %v2474_v53 = vpop.f32.mrb[47].mxu1 }
 0x2a0   : > { %v4275_v5 = vadd.f32 %v5635_v55, %v6664_v14  ;;  %v5637_v19 = vadd.f32 %v5588_v18, %v5388_v48  ;;  %v4162_v22 = vpop.f32.mrb[47].mxu0 }
 0x2a1   : > { %v4273_v13 = vadd.f32 %v5636_v50, %v6664_v14  ;;  %v5638_v1 = vadd.f32 %v4162_v22, %v2474_v53 }
 0x2a2   : > { %v4323_v63 = vmax.f32 %v4275_v5, 0.0  ;;  %v4276_v15 = vadd.f32 %v5637_v19, %v6664_v14 }
 0x2a3   : > { %v4321_v12 = vmax.f32 %v4273_v13, 0.0  ;;  %v4274_v58 = vadd.f32 %v5638_v1, %v6664_v14 }
 0x2a4   : > { %4371 = vst [vmem:[%s6670_s30 + $0x170] sm:$0xff] %v4323_v63  ;;  %v4324_v23 = vmax.f32 %v4276_v15, 0.0 }
 0x2a5   : > { %4369 = vst [vmem:[%s6670_s30 + $0x160] sm:$0xff] %v4321_v12  ;;  %v4322_v24 = vmax.f32 %v4274_v58, 0.0 }
 0x2a6   : > { %4372 = vst [vmem:[%s6670_s30 + $0x178] sm:$0xff] %v4324_v23 }
 0x2a7   : > { %4370 = vst [vmem:[%s6670_s30 + $0x168] sm:$0xff] %v4322_v24 }
 0x2a8 PF: > { %s14_s15 = sadd.s32 1, %s6000_s15  }
 0x2a9   : > { %p11_p6 = scmp.ge.s32.totalorder %s14_s15, 4  }
 0x2ab   :  { %13 = sbr.rel (!%p11_p6) target bundleno = 1 (0x1), region = 77 }

</bundles_post_ra>
